<compile_context>
chip_gen: v7x
topology: tpu7x:2x2x1
jax: 0.10.0
libtpu: 0.0.40
codegen_flags: <defaults>
</compile_context>

<pallas_src>
import numpy as np
import jax
import jax.numpy as jnp
from jax import lax
from jax.experimental import pallas as pl
from jax.experimental.pallas import tpu as pltpu


_LP = 8   # left halo pad  -> interior store starts at a sublane-aligned column
_RP = 8   # right halo pad -> aligned 8-wide zero block


def _make_kernel(B, H, W, Cin, Cout, dot_dtype):
    Hq, Wq = H // 2, W // 2
    WP = _LP + W + _RP

    def mm(a, b):
        return jnp.dot(a.astype(dot_dtype), b.astype(dot_dtype),
                       preferred_element_type=jnp.float32)

    def kernel(x_ref, w1_ref, w3a_ref, w3b_ref, o_ref, pad_a, pad_b):
        # x_ref   : (B, H, W, Cin)        batch tile, NHWC (channels on lanes)
        # w1_ref  : (Cin, Cout)           1x1 conv weight
        # w3a_ref : (9, Cin, Cout)        3x3 conv #1, tap k = ky*3 + kx (leading dim)
        # w3b_ref : (9, Cout, Cout)       3x3 conv #2
        # o_ref   : (B, Hq, Wq, Cout)     pooled output tile
        # pad_a   : (B, H+2, WP, Cin)     zero-bordered halo scratch for conv #1 input
        # pad_b   : (B, H+2, WP, Cout)    zero-bordered halo scratch for conv #2 input

        # ---- zero ONLY the halo border (per step -> safe under "parallel"
        #      megacore sharding); the interior is fully overwritten below ----
        for pad_ref, C in ((pad_a, Cin), (pad_b, Cout)):
            zrow = jnp.zeros((B, 1, WP, C), jnp.float32)
            pad_ref[:, 0:1, :, :] = zrow                      # top halo row
            pad_ref[:, H + 1:H + 2, :, :] = zrow              # bottom halo row
            pad_ref[:, :, 0:_LP, :] = jnp.zeros((B, H + 2, _LP, C), jnp.float32)
            pad_ref[:, :, _LP + W:, :] = jnp.zeros((B, H + 2, _RP, C), jnp.float32)

        def conv3x3(pad_ref, xin, w_ref, C):
            # xin: (B, H, W, C).  One sublane-ALIGNED interior store, then 9
            # statically shifted window reads, each one (M, C) x (C, Cout) MXU
            # matmul accumulated in f32.
            pad_ref[:, 1:H + 1, _LP:_LP + W, :] = xin
            acc = None
            for k in range(9):                                # unrolled taps
                ky, kx = k // 3, k % 3
                win = pad_ref[:, ky:ky + H, _LP - 1 + kx:_LP - 1 + kx + W, :]
                part = mm(win.reshape(B * H * W, C), w_ref[k])
                acc = part if acc is None else acc + part     # init with tap 0
            return acc.reshape(B, H, W, Cout)

        x = x_ref[...]                                        # (B, H, W, Cin)

        # ---- residual branch: pool first (pool commutes with a 1x1 conv) ----
        xe = x_ref[:, :, pl.ds(0, Wq, stride=2), :]           # even W columns
        xo = x_ref[:, :, pl.ds(1, Wq, stride=2), :]           # odd  W columns
        xs = (xe + xo).reshape(B, Hq, 2, Wq, Cin)             # leading-dim H split
        xp = 0.25 * (xs[:, :, 0] + xs[:, :, 1])               # (B, Hq, Wq, Cin)
        x_res = mm(xp.reshape(B * Hq * Wq, Cin),
                   w1_ref[...]).reshape(B, Hq, Wq, Cout)

        # ---- plain branch: ReLU -> 3x3 -> ReLU -> 3x3 ----
        y1 = conv3x3(pad_a, jnp.maximum(x, 0.0), w3a_ref, Cin)
        y2 = conv3x3(pad_b, jnp.maximum(y1, 0.0), w3b_ref, Cout)

        # ---- 2x2 avg-pool of the plain branch ----
        ys = y2.reshape(B, Hq, 2, W, Cout)                    # leading-dim H split
        yh = ys[:, :, 0] + ys[:, :, 1]                        # H pool (free addressing)
        # stage H-pooled rows in the now-dead conv-2 halo scratch (no extra VMEM)
        pad_b[:, 0:Hq, 0:W, :] = yh
        pe = pad_b[:, 0:Hq, pl.ds(0, Wq, stride=2), :]        # W pool
        po = pad_b[:, 0:Hq, pl.ds(1, Wq, stride=2), :]
        x_plain = 0.25 * (pe + po)                            # (B, Hq, Wq, Cout)

        o_ref[...] = x_plain + x_res

    return kernel


def resblockdown_forward(x_nchw, w1, w3a, w3b, *, b_tile=None, dot_dtype=None):
    """x_nchw: (N, Cin, H, W) f32.
    w1: (Cin, Cout)  ~ torch (Cout, Cin, 1, 1) transposed.
    w3a: (9, Cin, Cout), w3b: (9, Cout, Cout), tap k = ky*3 + kx.
    Returns (N, Cout, H//2, W//2)."""
    N, Cin, H, W = x_nchw.shape
    Cout = w1.shape[1]
    Hq, Wq = H // 2, W // 2
    assert H % 2 == 0 and W % 2 == 0

    if b_tile is None:
        # several images per step, but keep >= 2 grid steps when possible so a
        # v7x megacore gets both TensorCores busy and input DMA pipelines.
        b_tile = max(1, min(8, N // 2))
        while N % b_tile:
            b_tile -= 1
    assert N % b_tile == 0

    if dot_dtype is None:
        # bf16 MXU operands (f32 accumulation) once channels are production
        # sized; f32 for toy configs keeps the reference check tight.
        dot_dtype = jnp.bfloat16 if min(Cin, Cout) >= 128 else jnp.float32

    x_nhwc = jnp.transpose(x_nchw, (0, 2, 3, 1)).astype(jnp.float32)
    WP = _LP + W + _RP

    # Explicit scoped-VMEM budget: double-buffered blocks + halo scratches +
    # slack for in-kernel temporaries. Capped at 64 MiB (v7x physical VMEM).
    def nbytes(*shape):
        return 4 * int(np.prod(shape))
    vmem_bytes = (
        2 * nbytes(b_tile, H, W, Cin)                    # input block x2 buffers
        + 2 * nbytes(b_tile, Hq, Wq, Cout)               # output block x2 buffers
        + 2 * (nbytes(Cin, Cout) + nbytes(9, Cin, Cout) + nbytes(9, Cout, Cout))
        + nbytes(b_tile, H + 2, WP, Cin)                 # pad_a
        + nbytes(b_tile, H + 2, WP, Cout)                # pad_b
        + 8 * nbytes(b_tile, H, W, max(Cin, Cout))       # live temporaries
    )
    vmem_limit = int(min(max(int(vmem_bytes * 1.5), 8 << 20), 64 << 20))

    kernel = _make_kernel(b_tile, H, W, Cin, Cout, dot_dtype)

    out_nhwc = pl.pallas_call(
        kernel,
        out_shape=jax.ShapeDtypeStruct((N, Hq, Wq, Cout), jnp.float32),
        grid=(N // b_tile,),
        in_specs=[
            pl.BlockSpec((b_tile, H, W, Cin), lambda b: (b, 0, 0, 0)),
            pl.BlockSpec((Cin, Cout), lambda b: (0, 0)),
            pl.BlockSpec((9, Cin, Cout), lambda b: (0, 0, 0)),
            pl.BlockSpec((9, Cout, Cout), lambda b: (0, 0, 0)),
        ],
        out_specs=pl.BlockSpec((b_tile, Hq, Wq, Cout), lambda b: (b, 0, 0, 0)),
        scratch_shapes=[
            pltpu.VMEM((b_tile, H + 2, WP, Cin), jnp.float32),
            pltpu.VMEM((b_tile, H + 2, WP, Cout), jnp.float32),
        ],
        compiler_params=pltpu.CompilerParams(
            dimension_semantics=("parallel",),
            vmem_limit_bytes=vmem_limit),
    )(x_nhwc, w1, w3a, w3b)

    # (N, Hq, Wq, Cout) -> (N, Cout, Hq, Wq)
    return jnp.transpose(out_nhwc, (0, 3, 1, 2))


def _reference_forward(x_nchw, w1, w3a, w3b):
    """Plain-JAX reference (NHWC convs) for the correctness check."""
    N, Cin, H, W = x_nchw.shape
    Cout = w1.shape[1]
    x = jnp.transpose(x_nchw, (0, 2, 3, 1))                      # NHWC
    dn = ('NHWC', 'HWIO', 'NHWC')

    def pool(y):                                                 # 2x2 avg pool
        n, h, w, c = y.shape
        return y.reshape(n, h // 2, 2, w // 2, 2, c).mean(axis=(2, 4))

    k1 = w1.reshape(1, 1, Cin, Cout)
    k3a = w3a.reshape(3, 3, Cin, Cout)
    k3b = w3b.reshape(3, 3, Cout, Cout)

    x_res = lax.conv_general_dilated(x, k1, (1, 1), 'VALID', dimension_numbers=dn)
    x_res = pool(x_res)
    xp = jnp.maximum(x, 0.0)
    xp = lax.conv_general_dilated(xp, k3a, (1, 1), 'SAME', dimension_numbers=dn)
    xp = jnp.maximum(xp, 0.0)
    xp = lax.conv_general_dilated(xp, k3b, (1, 1), 'SAME', dimension_numbers=dn)
    xp = pool(xp)
    out = x_res + xp
    return jnp.transpose(out, (0, 3, 1, 2))                      # back to NCHW


if __name__ == "__main__":
    # Shapes consistent with ResBlockDown(in_dim=4, out_dim=8) on a 16x16 input.
    N, Cin, Cout, H, W = 2, 4, 8, 16, 16

    key = jax.random.PRNGKey(0)
    kx, k1, k2, k3 = jax.random.split(key, 4)

    x = jax.random.normal(kx, (N, Cin, H, W), dtype=jnp.float32)

    # Deterministic parameters (bias=False as in conv_nxn), kernel-friendly layout:
    #   w1  : (Cin, Cout)      ~ torch (Cout, Cin, 1, 1) transposed
    #   w3a : (9, Cin, Cout)   ~ torch (Cout, Cin, 3, 3), tap index k = ky*3 + kx
    #   w3b : (9, Cout, Cout)
    w1 = jax.random.normal(k1, (Cin, Cout), dtype=jnp.float32) / np.sqrt(Cin)
    w3a = jax.random.normal(k2, (9, Cin, Cout), dtype=jnp.float32) / np.sqrt(9 * Cin)
    w3b = jax.random.normal(k3, (9, Cout, Cout), dtype=jnp.float32) / np.sqrt(9 * Cout)

    out = jax.block_until_ready(resblockdown_forward(x, w1, w3a, w3b))
    assert out.shape == (N, Cout, H // 2, W // 2), out.shape

    ref = jax.block_until_ready(_reference_forward(x, w1, w3a, w3b))
    max_err = float(jnp.max(jnp.abs(out - ref)))
    assert max_err < 1e-2, f"max abs error {max_err}"

    print("KERNEL_OK")
</pallas_src>

<mosaic_0001>
module attributes {stable_mosaic.version = 11 : i64} {
  func.func @kernel(%arg0: i32, %arg1: memref<1x16x16x4xf32, #tpu.memory_space<vmem>>, %arg2: memref<4x8xf32, #tpu.memory_space<vmem>>, %arg3: memref<9x4x8xf32, #tpu.memory_space<vmem>>, %arg4: memref<9x8x8xf32, #tpu.memory_space<vmem>>, %arg5: memref<1x8x8x8xf32, #tpu.memory_space<vmem>>, %arg6: memref<1x18x32x4xf32, #tpu.memory_space<vmem>>, %arg7: memref<1x18x32x8xf32, #tpu.memory_space<vmem>>) attributes {dimension_semantics = [#tpu.dimension_semantics<parallel>], iteration_bounds = array<i64: 2>, scalar_prefetch = 0 : i64, scratch_operands = 2 : i64, tpu.core_type = #tpu.core_type<tc>, window_params = [{transform_indices = @transform_0, window_bounds = array<i64: 1, 16, 16, 4>}, {pipeline_mode = #tpu.pipeline_mode<synchronous>, transform_indices = @transform_1, window_bounds = array<i64: 4, 8>}, {pipeline_mode = #tpu.pipeline_mode<synchronous>, transform_indices = @transform_2, window_bounds = array<i64: 9, 4, 8>}, {pipeline_mode = #tpu.pipeline_mode<synchronous>, transform_indices = @transform_3, window_bounds = array<i64: 9, 8, 8>}, {transform_indices = @transform_4, window_bounds = array<i64: 1, 8, 8, 8>}]} {
    %cst = arith.constant 0.000000e+00 : f32
    %0 = vector.broadcast %cst : f32 to vector<1x1x32x4xf32>
    %c0 = arith.constant 0 : index
    %c0_0 = arith.constant 0 : index
    %c0_1 = arith.constant 0 : index
    %c0_2 = arith.constant 0 : index
    %1 = vector.load %arg6[%c0, %c0_0, %c0_1, %c0_2] : memref<1x18x32x4xf32, #tpu.memory_space<vmem>>, vector<1x1x32x4xf32>
    tpu.vector_store %arg6[%c0, %c0_0, %c0_1, %c0_2], %0 {strides = array<i32>} : memref<1x18x32x4xf32, #tpu.memory_space<vmem>>, vector<1x1x32x4xf32>,
    %c0_3 = arith.constant 0 : index
    %c17 = arith.constant 17 : index
    %c0_4 = arith.constant 0 : index
    %c0_5 = arith.constant 0 : index
    %2 = vector.load %arg6[%c0_3, %c17, %c0_4, %c0_5] : memref<1x18x32x4xf32, #tpu.memory_space<vmem>>, vector<1x1x32x4xf32>
    tpu.vector_store %arg6[%c0_3, %c17, %c0_4, %c0_5], %0 {strides = array<i32>} : memref<1x18x32x4xf32, #tpu.memory_space<vmem>>, vector<1x1x32x4xf32>,
    %cst_6 = arith.constant 0.000000e+00 : f32
    %3 = vector.broadcast %cst_6 : f32 to vector<1x18x8x4xf32>
    %c0_7 = arith.constant 0 : index
    %c0_8 = arith.constant 0 : index
    %c0_9 = arith.constant 0 : index
    %c0_10 = arith.constant 0 : index
    %4 = vector.load %arg6[%c0_7, %c0_8, %c0_9, %c0_10] : memref<1x18x32x4xf32, #tpu.memory_space<vmem>>, vector<1x18x8x4xf32>
    tpu.vector_store %arg6[%c0_7, %c0_8, %c0_9, %c0_10], %3 {strides = array<i32>} : memref<1x18x32x4xf32, #tpu.memory_space<vmem>>, vector<1x18x8x4xf32>,
    %cst_11 = arith.constant 0.000000e+00 : f32
    %5 = vector.broadcast %cst_11 : f32 to vector<1x18x8x4xf32>
    %c0_12 = arith.constant 0 : index
    %c0_13 = arith.constant 0 : index
    %c24 = arith.constant 24 : index
    %c0_14 = arith.constant 0 : index
    %6 = vector.load %arg6[%c0_12, %c0_13, %c24, %c0_14] : memref<1x18x32x4xf32, #tpu.memory_space<vmem>>, vector<1x18x8x4xf32>
    tpu.vector_store %arg6[%c0_12, %c0_13, %c24, %c0_14], %5 {strides = array<i32>} : memref<1x18x32x4xf32, #tpu.memory_space<vmem>>, vector<1x18x8x4xf32>,
    %cst_15 = arith.constant 0.000000e+00 : f32
    %7 = vector.broadcast %cst_15 : f32 to vector<1x1x32x8xf32>
    %c0_16 = arith.constant 0 : index
    %c0_17 = arith.constant 0 : index
    %c0_18 = arith.constant 0 : index
    %c0_19 = arith.constant 0 : index
    %8 = vector.load %arg7[%c0_16, %c0_17, %c0_18, %c0_19] : memref<1x18x32x8xf32, #tpu.memory_space<vmem>>, vector<1x1x32x8xf32>
    tpu.vector_store %arg7[%c0_16, %c0_17, %c0_18, %c0_19], %7 {strides = array<i32>} : memref<1x18x32x8xf32, #tpu.memory_space<vmem>>, vector<1x1x32x8xf32>,
    %c0_20 = arith.constant 0 : index
    %c17_21 = arith.constant 17 : index
    %c0_22 = arith.constant 0 : index
    %c0_23 = arith.constant 0 : index
    %9 = vector.load %arg7[%c0_20, %c17_21, %c0_22, %c0_23] : memref<1x18x32x8xf32, #tpu.memory_space<vmem>>, vector<1x1x32x8xf32>
    tpu.vector_store %arg7[%c0_20, %c17_21, %c0_22, %c0_23], %7 {strides = array<i32>} : memref<1x18x32x8xf32, #tpu.memory_space<vmem>>, vector<1x1x32x8xf32>,
    %cst_24 = arith.constant 0.000000e+00 : f32
    %10 = vector.broadcast %cst_24 : f32 to vector<1x18x8x8xf32>
    %c0_25 = arith.constant 0 : index
    %c0_26 = arith.constant 0 : index
    %c0_27 = arith.constant 0 : index
    %c0_28 = arith.constant 0 : index
    %11 = vector.load %arg7[%c0_25, %c0_26, %c0_27, %c0_28] : memref<1x18x32x8xf32, #tpu.memory_space<vmem>>, vector<1x18x8x8xf32>
    tpu.vector_store %arg7[%c0_25, %c0_26, %c0_27, %c0_28], %10 {strides = array<i32>} : memref<1x18x32x8xf32, #tpu.memory_space<vmem>>, vector<1x18x8x8xf32>,
    %cst_29 = arith.constant 0.000000e+00 : f32
    %12 = vector.broadcast %cst_29 : f32 to vector<1x18x8x8xf32>
    %c0_30 = arith.constant 0 : index
    %c0_31 = arith.constant 0 : index
    %c24_32 = arith.constant 24 : index
    %c0_33 = arith.constant 0 : index
    %13 = vector.load %arg7[%c0_30, %c0_31, %c24_32, %c0_33] : memref<1x18x32x8xf32, #tpu.memory_space<vmem>>, vector<1x18x8x8xf32>
    tpu.vector_store %arg7[%c0_30, %c0_31, %c24_32, %c0_33], %12 {strides = array<i32>} : memref<1x18x32x8xf32, #tpu.memory_space<vmem>>, vector<1x18x8x8xf32>,
    %c0_34 = arith.constant 0 : index
    %c0_35 = arith.constant 0 : index
    %c0_36 = arith.constant 0 : index
    %c0_37 = arith.constant 0 : index
    %14 = vector.load %arg1[%c0_34, %c0_35, %c0_36, %c0_37] : memref<1x16x16x4xf32, #tpu.memory_space<vmem>>, vector<1x16x16x4xf32>
    %c0_38 = arith.constant 0 : index
    %c0_39 = arith.constant 0 : index
    %c0_40 = arith.constant 0 : index
    %c0_41 = arith.constant 0 : index
    %15 = tpu.strided_load %arg1[%c0_38, %c0_39, %c0_40, %c0_41] {strides = array<i32: 1, 1, 2, 1>} : memref<1x16x16x4xf32, #tpu.memory_space<vmem>>, vector<1x16x8x4xf32>
    %c0_42 = arith.constant 0 : index
    %c0_43 = arith.constant 0 : index
    %c1 = arith.constant 1 : index
    %c0_44 = arith.constant 0 : index
    %16 = tpu.strided_load %arg1[%c0_42, %c0_43, %c1, %c0_44] {strides = array<i32: 1, 1, 2, 1>} : memref<1x16x16x4xf32, #tpu.memory_space<vmem>>, vector<1x16x8x4xf32>
    %17 = arith.addf %15, %16 : vector<1x16x8x4xf32>
    %18 = vector.shape_cast %17 : vector<1x16x8x4xf32> to vector<1x8x2x8x4xf32>
    %19 = vector.extract_strided_slice %18 {offsets = [0, 0, 0, 0, 0], sizes = [1, 8, 1, 8, 4], strides = [1, 1, 1, 1, 1]} : vector<1x8x2x8x4xf32> to vector<1x8x1x8x4xf32>
    %20 = vector.shape_cast %19 : vector<1x8x1x8x4xf32> to vector<1x8x8x4xf32>
    %21 = vector.extract_strided_slice %18 {offsets = [0, 0, 1, 0, 0], sizes = [1, 8, 1, 8, 4], strides = [1, 1, 1, 1, 1]} : vector<1x8x2x8x4xf32> to vector<1x8x1x8x4xf32>
    %22 = vector.shape_cast %21 : vector<1x8x1x8x4xf32> to vector<1x8x8x4xf32>
    %23 = arith.addf %20, %22 : vector<1x8x8x4xf32>
    %cst_45 = arith.constant 2.500000e-01 : f32
    %24 = vector.broadcast %cst_45 : f32 to vector<1x8x8x4xf32>
    %25 = arith.mulf %24, %23 : vector<1x8x8x4xf32>
    %26 = vector.shape_cast %25 : vector<1x8x8x4xf32> to vector<64x4xf32>
    %c0_46 = arith.constant 0 : index
    %c0_47 = arith.constant 0 : index
    %27 = vector.load %arg2[%c0_46, %c0_47] : memref<4x8xf32, #tpu.memory_space<vmem>>, vector<4x8xf32>
    %cst_48 = arith.constant dense<0.000000e+00> : vector<64x8xf32>
    %28 = tpu.matmul %26, %27, %cst_48 {dimension_numbers = #tpu.dot_dimension_numbers<[1], [0], [0], [1], [0, 0, 1, 1], [], []>} : vector<64x4xf32>, vector<4x8xf32>, vector<64x8xf32> -> vector<64x8xf32>
    %29 = vector.shape_cast %28 : vector<64x8xf32> to vector<1x8x8x8xf32>
    %cst_49 = arith.constant 0.000000e+00 : f32
    %30 = vector.broadcast %cst_49 : f32 to vector<1x16x16x4xf32>
    %31 = arith.maximumf %14, %30 : vector<1x16x16x4xf32>
    %c0_50 = arith.constant 0 : index
    %c1_51 = arith.constant 1 : index
    %c8 = arith.constant 8 : index
    %c0_52 = arith.constant 0 : index
    %32 = vector.load %arg6[%c0_50, %c1_51, %c8, %c0_52] : memref<1x18x32x4xf32, #tpu.memory_space<vmem>>, vector<1x16x16x4xf32>
    tpu.vector_store %arg6[%c0_50, %c1_51, %c8, %c0_52], %31 {strides = array<i32>} : memref<1x18x32x4xf32, #tpu.memory_space<vmem>>, vector<1x16x16x4xf32>,
    %c0_53 = arith.constant 0 : index
    %c0_54 = arith.constant 0 : index
    %c7 = arith.constant 7 : index
    %c0_55 = arith.constant 0 : index
    %33 = vector.load %arg6[%c0_53, %c0_54, %c7, %c0_55] : memref<1x18x32x4xf32, #tpu.memory_space<vmem>>, vector<1x16x16x4xf32>
    %34 = vector.shape_cast %33 : vector<1x16x16x4xf32> to vector<256x4xf32>
    %c0_56 = arith.constant 0 : index
    %c0_57 = arith.constant 0 : index
    %c0_58 = arith.constant 0 : index
    %35 = vector.load %arg3[%c0_56, %c0_57, %c0_58] : memref<9x4x8xf32, #tpu.memory_space<vmem>>, vector<1x4x8xf32>
    %36 = vector.shape_cast %35 : vector<1x4x8xf32> to vector<4x8xf32>
    %cst_59 = arith.constant dense<0.000000e+00> : vector<256x8xf32>
    %37 = tpu.matmul %34, %36, %cst_59 {dimension_numbers = #tpu.dot_dimension_numbers<[1], [0], [0], [1], [0, 0, 1, 1], [], []>} : vector<256x4xf32>, vector<4x8xf32>, vector<256x8xf32> -> vector<256x8xf32>
    %c0_60 = arith.constant 0 : index
    %c0_61 = arith.constant 0 : index
    %c8_62 = arith.constant 8 : index
    %c0_63 = arith.constant 0 : index
    %38 = vector.load %arg6[%c0_60, %c0_61, %c8_62, %c0_63] : memref<1x18x32x4xf32, #tpu.memory_space<vmem>>, vector<1x16x16x4xf32>
    %39 = vector.shape_cast %38 : vector<1x16x16x4xf32> to vector<256x4xf32>
    %c1_64 = arith.constant 1 : index
    %c0_65 = arith.constant 0 : index
    %c0_66 = arith.constant 0 : index
    %40 = vector.load %arg3[%c1_64, %c0_65, %c0_66] : memref<9x4x8xf32, #tpu.memory_space<vmem>>, vector<1x4x8xf32>
    %41 = vector.shape_cast %40 : vector<1x4x8xf32> to vector<4x8xf32>
    %cst_67 = arith.constant dense<0.000000e+00> : vector<256x8xf32>
    %42 = tpu.matmul %39, %41, %cst_67 {dimension_numbers = #tpu.dot_dimension_numbers<[1], [0], [0], [1], [0, 0, 1, 1], [], []>} : vector<256x4xf32>, vector<4x8xf32>, vector<256x8xf32> -> vector<256x8xf32>
    %43 = arith.addf %37, %42 : vector<256x8xf32>
    %c0_68 = arith.constant 0 : index
    %c0_69 = arith.constant 0 : index
    %c9 = arith.constant 9 : index
    %c0_70 = arith.constant 0 : index
    %44 = vector.load %arg6[%c0_68, %c0_69, %c9, %c0_70] : memref<1x18x32x4xf32, #tpu.memory_space<vmem>>, vector<1x16x16x4xf32>
    %45 = vector.shape_cast %44 : vector<1x16x16x4xf32> to vector<256x4xf32>
    %c2 = arith.constant 2 : index
    %c0_71 = arith.constant 0 : index
    %c0_72 = arith.constant 0 : index
    %46 = vector.load %arg3[%c2, %c0_71, %c0_72] : memref<9x4x8xf32, #tpu.memory_space<vmem>>, vector<1x4x8xf32>
    %47 = vector.shape_cast %46 : vector<1x4x8xf32> to vector<4x8xf32>
    %cst_73 = arith.constant dense<0.000000e+00> : vector<256x8xf32>
    %48 = tpu.matmul %45, %47, %cst_73 {dimension_numbers = #tpu.dot_dimension_numbers<[1], [0], [0], [1], [0, 0, 1, 1], [], []>} : vector<256x4xf32>, vector<4x8xf32>, vector<256x8xf32> -> vector<256x8xf32>
    %49 = arith.addf %43, %48 : vector<256x8xf32>
    %c0_74 = arith.constant 0 : index
    %c1_75 = arith.constant 1 : index
    %c7_76 = arith.constant 7 : index
    %c0_77 = arith.constant 0 : index
    %50 = vector.load %arg6[%c0_74, %c1_75, %c7_76, %c0_77] : memref<1x18x32x4xf32, #tpu.memory_space<vmem>>, vector<1x16x16x4xf32>
    %51 = vector.shape_cast %50 : vector<1x16x16x4xf32> to vector<256x4xf32>
    %c3 = arith.constant 3 : index
    %c0_78 = arith.constant 0 : index
    %c0_79 = arith.constant 0 : index
    %52 = vector.load %arg3[%c3, %c0_78, %c0_79] : memref<9x4x8xf32, #tpu.memory_space<vmem>>, vector<1x4x8xf32>
    %53 = vector.shape_cast %52 : vector<1x4x8xf32> to vector<4x8xf32>
    %cst_80 = arith.constant dense<0.000000e+00> : vector<256x8xf32>
    %54 = tpu.matmul %51, %53, %cst_80 {dimension_numbers = #tpu.dot_dimension_numbers<[1], [0], [0], [1], [0, 0, 1, 1], [], []>} : vector<256x4xf32>, vector<4x8xf32>, vector<256x8xf32> -> vector<256x8xf32>
    %55 = arith.addf %49, %54 : vector<256x8xf32>
    %c0_81 = arith.constant 0 : index
    %c1_82 = arith.constant 1 : index
    %c8_83 = arith.constant 8 : index
    %c0_84 = arith.constant 0 : index
    %56 = vector.load %arg6[%c0_81, %c1_82, %c8_83, %c0_84] : memref<1x18x32x4xf32, #tpu.memory_space<vmem>>, vector<1x16x16x4xf32>
    %57 = vector.shape_cast %56 : vector<1x16x16x4xf32> to vector<256x4xf32>
    %c4 = arith.constant 4 : index
    %c0_85 = arith.constant 0 : index
    %c0_86 = arith.constant 0 : index
    %58 = vector.load %arg3[%c4, %c0_85, %c0_86] : memref<9x4x8xf32, #tpu.memory_space<vmem>>, vector<1x4x8xf32>
    %59 = vector.shape_cast %58 : vector<1x4x8xf32> to vector<4x8xf32>
    %cst_87 = arith.constant dense<0.000000e+00> : vector<256x8xf32>
    %60 = tpu.matmul %57, %59, %cst_87 {dimension_numbers = #tpu.dot_dimension_numbers<[1], [0], [0], [1], [0, 0, 1, 1], [], []>} : vector<256x4xf32>, vector<4x8xf32>, vector<256x8xf32> -> vector<256x8xf32>
    %61 = arith.addf %55, %60 : vector<256x8xf32>
    %c0_88 = arith.constant 0 : index
    %c1_89 = arith.constant 1 : index
    %c9_90 = arith.constant 9 : index
    %c0_91 = arith.constant 0 : index
    %62 = vector.load %arg6[%c0_88, %c1_89, %c9_90, %c0_91] : memref<1x18x32x4xf32, #tpu.memory_space<vmem>>, vector<1x16x16x4xf32>
    %63 = vector.shape_cast %62 : vector<1x16x16x4xf32> to vector<256x4xf32>
    %c5 = arith.constant 5 : index
    %c0_92 = arith.constant 0 : index
    %c0_93 = arith.constant 0 : index
    %64 = vector.load %arg3[%c5, %c0_92, %c0_93] : memref<9x4x8xf32, #tpu.memory_space<vmem>>, vector<1x4x8xf32>
    %65 = vector.shape_cast %64 : vector<1x4x8xf32> to vector<4x8xf32>
    %cst_94 = arith.constant dense<0.000000e+00> : vector<256x8xf32>
    %66 = tpu.matmul %63, %65, %cst_94 {dimension_numbers = #tpu.dot_dimension_numbers<[1], [0], [0], [1], [0, 0, 1, 1], [], []>} : vector<256x4xf32>, vector<4x8xf32>, vector<256x8xf32> -> vector<256x8xf32>
    %67 = arith.addf %61, %66 : vector<256x8xf32>
    %c0_95 = arith.constant 0 : index
    %c2_96 = arith.constant 2 : index
    %c7_97 = arith.constant 7 : index
    %c0_98 = arith.constant 0 : index
    %68 = vector.load %arg6[%c0_95, %c2_96, %c7_97, %c0_98] : memref<1x18x32x4xf32, #tpu.memory_space<vmem>>, vector<1x16x16x4xf32>
    %69 = vector.shape_cast %68 : vector<1x16x16x4xf32> to vector<256x4xf32>
    %c6 = arith.constant 6 : index
    %c0_99 = arith.constant 0 : index
    %c0_100 = arith.constant 0 : index
    %70 = vector.load %arg3[%c6, %c0_99, %c0_100] : memref<9x4x8xf32, #tpu.memory_space<vmem>>, vector<1x4x8xf32>
    %71 = vector.shape_cast %70 : vector<1x4x8xf32> to vector<4x8xf32>
    %cst_101 = arith.constant dense<0.000000e+00> : vector<256x8xf32>
    %72 = tpu.matmul %69, %71, %cst_101 {dimension_numbers = #tpu.dot_dimension_numbers<[1], [0], [0], [1], [0, 0, 1, 1], [], []>} : vector<256x4xf32>, vector<4x8xf32>, vector<256x8xf32> -> vector<256x8xf32>
    %73 = arith.addf %67, %72 : vector<256x8xf32>
    %c0_102 = arith.constant 0 : index
    %c2_103 = arith.constant 2 : index
    %c8_104 = arith.constant 8 : index
    %c0_105 = arith.constant 0 : index
    %74 = vector.load %arg6[%c0_102, %c2_103, %c8_104, %c0_105] : memref<1x18x32x4xf32, #tpu.memory_space<vmem>>, vector<1x16x16x4xf32>
    %75 = vector.shape_cast %74 : vector<1x16x16x4xf32> to vector<256x4xf32>
    %c7_106 = arith.constant 7 : index
    %c0_107 = arith.constant 0 : index
    %c0_108 = arith.constant 0 : index
    %76 = vector.load %arg3[%c7_106, %c0_107, %c0_108] : memref<9x4x8xf32, #tpu.memory_space<vmem>>, vector<1x4x8xf32>
    %77 = vector.shape_cast %76 : vector<1x4x8xf32> to vector<4x8xf32>
    %cst_109 = arith.constant dense<0.000000e+00> : vector<256x8xf32>
    %78 = tpu.matmul %75, %77, %cst_109 {dimension_numbers = #tpu.dot_dimension_numbers<[1], [0], [0], [1], [0, 0, 1, 1], [], []>} : vector<256x4xf32>, vector<4x8xf32>, vector<256x8xf32> -> vector<256x8xf32>
    %79 = arith.addf %73, %78 : vector<256x8xf32>
    %c0_110 = arith.constant 0 : index
    %c2_111 = arith.constant 2 : index
    %c9_112 = arith.constant 9 : index
    %c0_113 = arith.constant 0 : index
    %80 = vector.load %arg6[%c0_110, %c2_111, %c9_112, %c0_113] : memref<1x18x32x4xf32, #tpu.memory_space<vmem>>, vector<1x16x16x4xf32>
    %81 = vector.shape_cast %80 : vector<1x16x16x4xf32> to vector<256x4xf32>
    %c8_114 = arith.constant 8 : index
    %c0_115 = arith.constant 0 : index
    %c0_116 = arith.constant 0 : index
    %82 = vector.load %arg3[%c8_114, %c0_115, %c0_116] : memref<9x4x8xf32, #tpu.memory_space<vmem>>, vector<1x4x8xf32>
    %83 = vector.shape_cast %82 : vector<1x4x8xf32> to vector<4x8xf32>
    %cst_117 = arith.constant dense<0.000000e+00> : vector<256x8xf32>
    %84 = tpu.matmul %81, %83, %cst_117 {dimension_numbers = #tpu.dot_dimension_numbers<[1], [0], [0], [1], [0, 0, 1, 1], [], []>} : vector<256x4xf32>, vector<4x8xf32>, vector<256x8xf32> -> vector<256x8xf32>
    %85 = arith.addf %79, %84 : vector<256x8xf32>
    %86 = vector.shape_cast %85 : vector<256x8xf32> to vector<1x16x16x8xf32>
    %cst_118 = arith.constant 0.000000e+00 : f32
    %87 = vector.broadcast %cst_118 : f32 to vector<1x16x16x8xf32>
    %88 = arith.maximumf %86, %87 : vector<1x16x16x8xf32>
    %c0_119 = arith.constant 0 : index
    %c1_120 = arith.constant 1 : index
    %c8_121 = arith.constant 8 : index
    %c0_122 = arith.constant 0 : index
    %89 = vector.load %arg7[%c0_119, %c1_120, %c8_121, %c0_122] : memref<1x18x32x8xf32, #tpu.memory_space<vmem>>, vector<1x16x16x8xf32>
    tpu.vector_store %arg7[%c0_119, %c1_120, %c8_121, %c0_122], %88 {strides = array<i32>} : memref<1x18x32x8xf32, #tpu.memory_space<vmem>>, vector<1x16x16x8xf32>,
    %c0_123 = arith.constant 0 : index
    %c0_124 = arith.constant 0 : index
    %c7_125 = arith.constant 7 : index
    %c0_126 = arith.constant 0 : index
    %90 = vector.load %arg7[%c0_123, %c0_124, %c7_125, %c0_126] : memref<1x18x32x8xf32, #tpu.memory_space<vmem>>, vector<1x16x16x8xf32>
    %91 = vector.shape_cast %90 : vector<1x16x16x8xf32> to vector<256x8xf32>
    %c0_127 = arith.constant 0 : index
    %c0_128 = arith.constant 0 : index
    %c0_129 = arith.constant 0 : index
    %92 = vector.load %arg4[%c0_127, %c0_128, %c0_129] : memref<9x8x8xf32, #tpu.memory_space<vmem>>, vector<1x8x8xf32>
    %93 = vector.shape_cast %92 : vector<1x8x8xf32> to vector<8x8xf32>
    %cst_130 = arith.constant dense<0.000000e+00> : vector<256x8xf32>
    %94 = tpu.matmul %91, %93, %cst_130 {dimension_numbers = #tpu.dot_dimension_numbers<[1], [0], [0], [1], [0, 0, 1, 1], [], []>} : vector<256x8xf32>, vector<8x8xf32>, vector<256x8xf32> -> vector<256x8xf32>
    %c0_131 = arith.constant 0 : index
    %c0_132 = arith.constant 0 : index
    %c8_133 = arith.constant 8 : index
    %c0_134 = arith.constant 0 : index
    %95 = vector.load %arg7[%c0_131, %c0_132, %c8_133, %c0_134] : memref<1x18x32x8xf32, #tpu.memory_space<vmem>>, vector<1x16x16x8xf32>
    %96 = vector.shape_cast %95 : vector<1x16x16x8xf32> to vector<256x8xf32>
    %c1_135 = arith.constant 1 : index
    %c0_136 = arith.constant 0 : index
    %c0_137 = arith.constant 0 : index
    %97 = vector.load %arg4[%c1_135, %c0_136, %c0_137] : memref<9x8x8xf32, #tpu.memory_space<vmem>>, vector<1x8x8xf32>
    %98 = vector.shape_cast %97 : vector<1x8x8xf32> to vector<8x8xf32>
    %cst_138 = arith.constant dense<0.000000e+00> : vector<256x8xf32>
    %99 = tpu.matmul %96, %98, %cst_138 {dimension_numbers = #tpu.dot_dimension_numbers<[1], [0], [0], [1], [0, 0, 1, 1], [], []>} : vector<256x8xf32>, vector<8x8xf32>, vector<256x8xf32> -> vector<256x8xf32>
    %100 = arith.addf %94, %99 : vector<256x8xf32>
    %c0_139 = arith.constant 0 : index
    %c0_140 = arith.constant 0 : index
    %c9_141 = arith.constant 9 : index
    %c0_142 = arith.constant 0 : index
    %101 = vector.load %arg7[%c0_139, %c0_140, %c9_141, %c0_142] : memref<1x18x32x8xf32, #tpu.memory_space<vmem>>, vector<1x16x16x8xf32>
    %102 = vector.shape_cast %101 : vector<1x16x16x8xf32> to vector<256x8xf32>
    %c2_143 = arith.constant 2 : index
    %c0_144 = arith.constant 0 : index
    %c0_145 = arith.constant 0 : index
    %103 = vector.load %arg4[%c2_143, %c0_144, %c0_145] : memref<9x8x8xf32, #tpu.memory_space<vmem>>, vector<1x8x8xf32>
    %104 = vector.shape_cast %103 : vector<1x8x8xf32> to vector<8x8xf32>
    %cst_146 = arith.constant dense<0.000000e+00> : vector<256x8xf32>
    %105 = tpu.matmul %102, %104, %cst_146 {dimension_numbers = #tpu.dot_dimension_numbers<[1], [0], [0], [1], [0, 0, 1, 1], [], []>} : vector<256x8xf32>, vector<8x8xf32>, vector<256x8xf32> -> vector<256x8xf32>
    %106 = arith.addf %100, %105 : vector<256x8xf32>
    %c0_147 = arith.constant 0 : index
    %c1_148 = arith.constant 1 : index
    %c7_149 = arith.constant 7 : index
    %c0_150 = arith.constant 0 : index
    %107 = vector.load %arg7[%c0_147, %c1_148, %c7_149, %c0_150] : memref<1x18x32x8xf32, #tpu.memory_space<vmem>>, vector<1x16x16x8xf32>
    %108 = vector.shape_cast %107 : vector<1x16x16x8xf32> to vector<256x8xf32>
    %c3_151 = arith.constant 3 : index
    %c0_152 = arith.constant 0 : index
    %c0_153 = arith.constant 0 : index
    %109 = vector.load %arg4[%c3_151, %c0_152, %c0_153] : memref<9x8x8xf32, #tpu.memory_space<vmem>>, vector<1x8x8xf32>
    %110 = vector.shape_cast %109 : vector<1x8x8xf32> to vector<8x8xf32>
    %cst_154 = arith.constant dense<0.000000e+00> : vector<256x8xf32>
    %111 = tpu.matmul %108, %110, %cst_154 {dimension_numbers = #tpu.dot_dimension_numbers<[1], [0], [0], [1], [0, 0, 1, 1], [], []>} : vector<256x8xf32>, vector<8x8xf32>, vector<256x8xf32> -> vector<256x8xf32>
    %112 = arith.addf %106, %111 : vector<256x8xf32>
    %c0_155 = arith.constant 0 : index
    %c1_156 = arith.constant 1 : index
    %c8_157 = arith.constant 8 : index
    %c0_158 = arith.constant 0 : index
    %113 = vector.load %arg7[%c0_155, %c1_156, %c8_157, %c0_158] : memref<1x18x32x8xf32, #tpu.memory_space<vmem>>, vector<1x16x16x8xf32>
    %114 = vector.shape_cast %113 : vector<1x16x16x8xf32> to vector<256x8xf32>
    %c4_159 = arith.constant 4 : index
    %c0_160 = arith.constant 0 : index
    %c0_161 = arith.constant 0 : index
    %115 = vector.load %arg4[%c4_159, %c0_160, %c0_161] : memref<9x8x8xf32, #tpu.memory_space<vmem>>, vector<1x8x8xf32>
    %116 = vector.shape_cast %115 : vector<1x8x8xf32> to vector<8x8xf32>
    %cst_162 = arith.constant dense<0.000000e+00> : vector<256x8xf32>
    %117 = tpu.matmul %114, %116, %cst_162 {dimension_numbers = #tpu.dot_dimension_numbers<[1], [0], [0], [1], [0, 0, 1, 1], [], []>} : vector<256x8xf32>, vector<8x8xf32>, vector<256x8xf32> -> vector<256x8xf32>
    %118 = arith.addf %112, %117 : vector<256x8xf32>
    %c0_163 = arith.constant 0 : index
    %c1_164 = arith.constant 1 : index
    %c9_165 = arith.constant 9 : index
    %c0_166 = arith.constant 0 : index
    %119 = vector.load %arg7[%c0_163, %c1_164, %c9_165, %c0_166] : memref<1x18x32x8xf32, #tpu.memory_space<vmem>>, vector<1x16x16x8xf32>
    %120 = vector.shape_cast %119 : vector<1x16x16x8xf32> to vector<256x8xf32>
    %c5_167 = arith.constant 5 : index
    %c0_168 = arith.constant 0 : index
    %c0_169 = arith.constant 0 : index
    %121 = vector.load %arg4[%c5_167, %c0_168, %c0_169] : memref<9x8x8xf32, #tpu.memory_space<vmem>>, vector<1x8x8xf32>
    %122 = vector.shape_cast %121 : vector<1x8x8xf32> to vector<8x8xf32>
    %cst_170 = arith.constant dense<0.000000e+00> : vector<256x8xf32>
    %123 = tpu.matmul %120, %122, %cst_170 {dimension_numbers = #tpu.dot_dimension_numbers<[1], [0], [0], [1], [0, 0, 1, 1], [], []>} : vector<256x8xf32>, vector<8x8xf32>, vector<256x8xf32> -> vector<256x8xf32>
    %124 = arith.addf %118, %123 : vector<256x8xf32>
    %c0_171 = arith.constant 0 : index
    %c2_172 = arith.constant 2 : index
    %c7_173 = arith.constant 7 : index
    %c0_174 = arith.constant 0 : index
    %125 = vector.load %arg7[%c0_171, %c2_172, %c7_173, %c0_174] : memref<1x18x32x8xf32, #tpu.memory_space<vmem>>, vector<1x16x16x8xf32>
    %126 = vector.shape_cast %125 : vector<1x16x16x8xf32> to vector<256x8xf32>
    %c6_175 = arith.constant 6 : index
    %c0_176 = arith.constant 0 : index
    %c0_177 = arith.constant 0 : index
    %127 = vector.load %arg4[%c6_175, %c0_176, %c0_177] : memref<9x8x8xf32, #tpu.memory_space<vmem>>, vector<1x8x8xf32>
    %128 = vector.shape_cast %127 : vector<1x8x8xf32> to vector<8x8xf32>
    %cst_178 = arith.constant dense<0.000000e+00> : vector<256x8xf32>
    %129 = tpu.matmul %126, %128, %cst_178 {dimension_numbers = #tpu.dot_dimension_numbers<[1], [0], [0], [1], [0, 0, 1, 1], [], []>} : vector<256x8xf32>, vector<8x8xf32>, vector<256x8xf32> -> vector<256x8xf32>
    %130 = arith.addf %124, %129 : vector<256x8xf32>
    %c0_179 = arith.constant 0 : index
    %c2_180 = arith.constant 2 : index
    %c8_181 = arith.constant 8 : index
    %c0_182 = arith.constant 0 : index
    %131 = vector.load %arg7[%c0_179, %c2_180, %c8_181, %c0_182] : memref<1x18x32x8xf32, #tpu.memory_space<vmem>>, vector<1x16x16x8xf32>
    %132 = vector.shape_cast %131 : vector<1x16x16x8xf32> to vector<256x8xf32>
    %c7_183 = arith.constant 7 : index
    %c0_184 = arith.constant 0 : index
    %c0_185 = arith.constant 0 : index
    %133 = vector.load %arg4[%c7_183, %c0_184, %c0_185] : memref<9x8x8xf32, #tpu.memory_space<vmem>>, vector<1x8x8xf32>
    %134 = vector.shape_cast %133 : vector<1x8x8xf32> to vector<8x8xf32>
    %cst_186 = arith.constant dense<0.000000e+00> : vector<256x8xf32>
    %135 = tpu.matmul %132, %134, %cst_186 {dimension_numbers = #tpu.dot_dimension_numbers<[1], [0], [0], [1], [0, 0, 1, 1], [], []>} : vector<256x8xf32>, vector<8x8xf32>, vector<256x8xf32> -> vector<256x8xf32>
    %136 = arith.addf %130, %135 : vector<256x8xf32>
    %c0_187 = arith.constant 0 : index
    %c2_188 = arith.constant 2 : index
    %c9_189 = arith.constant 9 : index
    %c0_190 = arith.constant 0 : index
    %137 = vector.load %arg7[%c0_187, %c2_188, %c9_189, %c0_190] : memref<1x18x32x8xf32, #tpu.memory_space<vmem>>, vector<1x16x16x8xf32>
    %138 = vector.shape_cast %137 : vector<1x16x16x8xf32> to vector<256x8xf32>
    %c8_191 = arith.constant 8 : index
    %c0_192 = arith.constant 0 : index
    %c0_193 = arith.constant 0 : index
    %139 = vector.load %arg4[%c8_191, %c0_192, %c0_193] : memref<9x8x8xf32, #tpu.memory_space<vmem>>, vector<1x8x8xf32>
    %140 = vector.shape_cast %139 : vector<1x8x8xf32> to vector<8x8xf32>
    %cst_194 = arith.constant dense<0.000000e+00> : vector<256x8xf32>
    %141 = tpu.matmul %138, %140, %cst_194 {dimension_numbers = #tpu.dot_dimension_numbers<[1], [0], [0], [1], [0, 0, 1, 1], [], []>} : vector<256x8xf32>, vector<8x8xf32>, vector<256x8xf32> -> vector<256x8xf32>
    %142 = arith.addf %136, %141 : vector<256x8xf32>
    %143 = vector.shape_cast %142 : vector<256x8xf32> to vector<1x16x16x8xf32>
    %144 = vector.shape_cast %143 : vector<1x16x16x8xf32> to vector<1x8x2x16x8xf32>
    %145 = vector.extract_strided_slice %144 {offsets = [0, 0, 0, 0, 0], sizes = [1, 8, 1, 16, 8], strides = [1, 1, 1, 1, 1]} : vector<1x8x2x16x8xf32> to vector<1x8x1x16x8xf32>
    %146 = vector.shape_cast %145 : vector<1x8x1x16x8xf32> to vector<1x8x16x8xf32>
    %147 = vector.extract_strided_slice %144 {offsets = [0, 0, 1, 0, 0], sizes = [1, 8, 1, 16, 8], strides = [1, 1, 1, 1, 1]} : vector<1x8x2x16x8xf32> to vector<1x8x1x16x8xf32>
    %148 = vector.shape_cast %147 : vector<1x8x1x16x8xf32> to vector<1x8x16x8xf32>
    %149 = arith.addf %146, %148 : vector<1x8x16x8xf32>
    %c0_195 = arith.constant 0 : index
    %c0_196 = arith.constant 0 : index
    %c0_197 = arith.constant 0 : index
    %c0_198 = arith.constant 0 : index
    %150 = vector.load %arg7[%c0_195, %c0_196, %c0_197, %c0_198] : memref<1x18x32x8xf32, #tpu.memory_space<vmem>>, vector<1x8x16x8xf32>
    tpu.vector_store %arg7[%c0_195, %c0_196, %c0_197, %c0_198], %149 {strides = array<i32>} : memref<1x18x32x8xf32, #tpu.memory_space<vmem>>, vector<1x8x16x8xf32>,
    %c0_199 = arith.constant 0 : index
    %c0_200 = arith.constant 0 : index
    %c0_201 = arith.constant 0 : index
    %c0_202 = arith.constant 0 : index
    %151 = tpu.strided_load %arg7[%c0_199, %c0_200, %c0_201, %c0_202] {strides = array<i32: 1, 1, 2, 1>} : memref<1x18x32x8xf32, #tpu.memory_space<vmem>>, vector<1x8x8x8xf32>
    %c0_203 = arith.constant 0 : index
    %c0_204 = arith.constant 0 : index
    %c1_205 = arith.constant 1 : index
    %c0_206 = arith.constant 0 : index
    %152 = tpu.strided_load %arg7[%c0_203, %c0_204, %c1_205, %c0_206] {strides = array<i32: 1, 1, 2, 1>} : memref<1x18x32x8xf32, #tpu.memory_space<vmem>>, vector<1x8x8x8xf32>
    %153 = arith.addf %151, %152 : vector<1x8x8x8xf32>
    %cst_207 = arith.constant 2.500000e-01 : f32
    %154 = vector.broadcast %cst_207 : f32 to vector<1x8x8x8xf32>
    %155 = arith.mulf %154, %153 : vector<1x8x8x8xf32>
    %156 = arith.addf %155, %29 : vector<1x8x8x8xf32>
    %c0_208 = arith.constant 0 : index
    %c0_209 = arith.constant 0 : index
    %c0_210 = arith.constant 0 : index
    %c0_211 = arith.constant 0 : index
    %157 = vector.load %arg5[%c0_208, %c0_209, %c0_210, %c0_211] : memref<1x8x8x8xf32, #tpu.memory_space<vmem>>, vector<1x8x8x8xf32>
    tpu.vector_store %arg5[%c0_208, %c0_209, %c0_210, %c0_211], %156 {strides = array<i32>} : memref<1x8x8x8xf32, #tpu.memory_space<vmem>>, vector<1x8x8x8xf32>,
    return
  }
  func.func @transform_0(%arg0: i32) -> (i32, i32, i32, i32) {
    %c0_i32 = arith.constant 0 : i32
    %c0_i32_0 = arith.constant 0 : i32
    %c0_i32_1 = arith.constant 0 : i32
    %c0_i32_2 = arith.constant 0 : i32
    return %arg0, %c0_i32, %c0_i32_0, %c0_i32_1 : i32, i32, i32, i32
  }
  func.func @transform_1(%arg0: i32) -> (i32, i32) {
    %c0_i32 = arith.constant 0 : i32
    %c0_i32_0 = arith.constant 0 : i32
    %c0_i32_1 = arith.constant 0 : i32
    return %c0_i32, %c0_i32_0 : i32, i32
  }
  func.func @transform_2(%arg0: i32) -> (i32, i32, i32) {
    %c0_i32 = arith.constant 0 : i32
    %c0_i32_0 = arith.constant 0 : i32
    %c0_i32_1 = arith.constant 0 : i32
    %c0_i32_2 = arith.constant 0 : i32
    return %c0_i32, %c0_i32_0, %c0_i32_1 : i32, i32, i32
  }
  func.func @transform_3(%arg0: i32) -> (i32, i32, i32) {
    %c0_i32 = arith.constant 0 : i32
    %c0_i32_0 = arith.constant 0 : i32
    %c0_i32_1 = arith.constant 0 : i32
    %c0_i32_2 = arith.constant 0 : i32
    return %c0_i32, %c0_i32_0, %c0_i32_1 : i32, i32, i32
  }
  func.func @transform_4(%arg0: i32) -> (i32, i32, i32, i32) {
    %c0_i32 = arith.constant 0 : i32
    %c0_i32_0 = arith.constant 0 : i32
    %c0_i32_1 = arith.constant 0 : i32
    %c0_i32_2 = arith.constant 0 : i32
    return %arg0, %c0_i32, %c0_i32_0, %c0_i32_1 : i32, i32, i32, i32
  }
}

</mosaic_0001>

<bundles_post_ra>
// kernel: tpu_custom_call.1
= control target key start
LH: loop header
LB: loop body
LE: loop exit
PB: predicated region body
PF: predicated region fallthrough
CT: control target
= control target key end

     0   :  { %9 = vsyncpa [#allocation5], 0  ;;  %s12647_s0 = inlined_call_operand.vmem [shape: f32[2,16,16,4], index: 0, kind: input, shape index: {}]   ;;  %s12648_s1 = inlined_call_operand.vmem [shape: f32[4,8], index: 1, kind: input, shape index: {}]   ;;  %s12649_s2 = inlined_call_operand.vmem [shape: f32[9,4,8], index: 2, kind: input, shape index: {}]   ;;  %s12650_s3 = inlined_call_operand.vmem [shape: f32[9,8,8], index: 3, kind: input, shape index: {}]   ;;  %s12651_s4 = inlined_call_operand.hbm [shape: f32[2,8,8,8], index: 4, kind: output, shape index: {}]  }
   0x1   :  { %11 = vsyncpa [#allocation5 + $0x1], 0  ;;  %s10552_s15 = smov 0   ;;  %s10554_s16 = smov 0  }
   0x2   :  { %s10556_s17 = smov 0   ;;  %s10558_s18 = smov 0  }
   0x3 LB: > { %s10573_s19 = sadd.s32 4294967295, %s10521_s18   ;;  %s7715_s20 = sadd.s32 4294967294, %s10521_s18   ;;  %s10521_s18 = sphi %s10558_s18, %s12944_s18   ;;  %s10517_s17 = sphi %s10556_s17, %s12943_s17   ;;  %s10513_s16 = sphi %s10554_s16, %s12942_s16   ;;  %s10509_s15 = sphi %s10552_s15, %s12941_s15  }
   0x4   : > { %s10577_s21 = sadd.s32 1, %s10521_s18   ;;  %s113_s22 = sadd.s32 1, %s10517_s17 }
   0x5   : > { %s110_s23 = ssub.s32 %s10521_s18, %s10577_s21  ;;  %p123_p0 = scmp.ne.s32.totalorder %s10517_s17, %s10513_s16 }
   0x6   : > { %p111_p1 = scmp.eq.s32.totalorder %s110_s23, 0  ;;  %p124_p2 = scmp.eq.s32.totalorder %s10573_s19, 1 }
   0x7   : > { %p129_p3 = scmp.ne.s32.totalorder %s10513_s16, %s10509_s15  ;;  %p130_p4 = scmp.eq.s32.totalorder %s7715_s20, 1 }
   0x8   : > { %s10588_s24 = scalar_select %p111_p1, %s10517_s17, %s113_s22  }
   0x9   : > { %p10590_p5 = por %p124_p2, %p123_p0  ;;  %p10594_p6 = por %p130_p4, %p129_p3 }
   0xa   : > { %p7718_p7 = scmp.ge.s32.totalorder %s10521_s18, 1  ;;  %p165_p8 = scmp.lt.s32.totalorder %s10521_s18, 3 }
   0xc   : > { %p166_p9 = pnand %p7718_p7, %p165_p8 }
   0xe   : > { %169 = sbr.rel (%p166_p9) target bundleno = 1879 (0x757), region = 36 }
  0x15   : > { %v415_v0 = vld [vmem:[%s12648_s1] sm:$0xf]  ;;  %vm440_vm0 = vcmask 1043456   ;;  %p191_p10 = scmp.lt.s32.totalorder %s10573_s19, 1  ;;  %vm196_vm1 = vcmask 31744   ;;  %v12652_v2 = vmov 0.0  }
  0x16   : > { %9887 = vmatprep.subr.msk.mxu1 %vm440_vm0, %v415_v0  ;;  %v10608_v1 = vld [vmem:[%s12649_s2 + $0x4] sm:$0xf]  ;;  %198 = vst.msk [vmem:[#allocation2 + $0x8] sm:$0xff] %vm196_vm1, %v12652_v2  ;;  %197 = vst.msk [vmem:[#allocation2] sm:$0xff] %vm196_vm1, %v12652_v2  ;;  %8973 = vmatprep.subr.msk.mxu0 %vm440_vm0, %v415_v0  ;;  %v10730_v31 = vld [vmem:[%s12649_s2] sm:$0xf] }
  0x17   : > { %199 = vst.msk [vmem:[#allocation2 + $0x10] sm:$0xff] %vm196_vm1, %v12652_v2  ;;  %200 = vst.msk [vmem:[#allocation2 + $0x18] sm:$0xff] %vm196_vm1, %v12652_v2  ;;  %9888 = vmatpush3.msk.msra.mxu1 %vm440_vm0, %v415_v0  ;;  %s192_s5 = scalar_select %p191_p10, %s10573_s19, 1  ;;  %8974 = vmatpush3.msk.msra.mxu0 %vm440_vm0, %v415_v0  ;;  %vm242_vm2 = vcmask 64512  }
  0x18   : > { %202 = vst.msk [vmem:[#allocation2 + $0x220] sm:$0xff] %vm196_vm1, %v12652_v2  ;;  %203 = vst.msk [vmem:[#allocation2 + $0x228] sm:$0xff] %vm196_vm1, %v12652_v2  ;;  %8987 = vmatprep.subr.msk.mxu1 %vm440_vm0, %v10608_v1  ;;  %s188_s11 = sand.u32 1, %s10513_s16   ;;  %s8369_s13 = sshll.u32 %s10573_s19, 10 }
  0x19   : > { %204 = vst.msk [vmem:[#allocation2 + $0x230] sm:$0xff] %vm196_vm1, %v12652_v2  ;;  %205 = vst.msk [vmem:[#allocation2 + $0x238] sm:$0xff] %vm196_vm1, %v12652_v2  ;;  %s8368_s6 = sshll.u32 %s192_s5, 8  ;;  %s12597_s23 = scalar_lea.hbm %s12651_s4, %s8369_s13 }
  0x1a   : > { %207 = vst.msk [vmem:[#allocation2 + $0x20] sm:$0xff] %vm196_vm1, %v12652_v2  ;;  %208 = vst.msk [vmem:[#allocation2 + $0x40] sm:$0xff] %vm196_vm1, %v12652_v2  ;;  %s10709_s9 = scalar_lea.vmem %s12647_s0, %s8368_s6  ;;  %s12606_s27 = scalar_lea.sflag [#allocation5], %s188_s11 }
  0x1b   : > { %209 = vst.msk [vmem:[#allocation2 + $0x60] sm:$0xff] %vm196_vm1, %v12652_v2  ;;  %210 = vst.msk [vmem:[#allocation2 + $0x80] sm:$0xff] %vm196_vm1, %v12652_v2  ;;  %v7729_v3 = vld [vmem:[%s10709_s9 + $0x80] ss:$2 sm:$0xff]  ;;  %v7730_v4 = vld [vmem:[%s10709_s9 + $0x90] ss:$2 sm:$0xff] }
  0x1c   : > { %211 = vst.msk [vmem:[#allocation2 + $0xa0] sm:$0xff] %vm196_vm1, %v12652_v2  ;;  %212 = vst.msk [vmem:[#allocation2 + $0xc0] sm:$0xff] %vm196_vm1, %v12652_v2  ;;  %v7745_v5 = vld [vmem:[%s10709_s9 + $0x81] ss:$2 sm:$0xff]  ;;  %v7746_v6 = vld [vmem:[%s10709_s9 + $0x91] ss:$2 sm:$0xff] }
  0x1d   : > { %213 = vst.msk [vmem:[#allocation2 + $0xe0] sm:$0xff] %vm196_vm1, %v12652_v2  ;;  %214 = vst.msk [vmem:[#allocation2 + $0x100] sm:$0xff] %vm196_vm1, %v12652_v2  ;;  %v391_v7 = vadd.f32 %v7745_v5, %v7729_v3  ;;  %v7731_v8 = vld [vmem:[%s10709_s9 + $0xa0] ss:$2 sm:$0xff]  ;;  %v7732_v9 = vld [vmem:[%s10709_s9 + $0xb0] ss:$2 sm:$0xff]  ;;  %v392_v10 = vadd.f32 %v7746_v6, %v7730_v4 }
  0x1e   : > { %215 = vst.msk [vmem:[#allocation2 + $0x120] sm:$0xff] %vm196_vm1, %v12652_v2  ;;  %216 = vst.msk [vmem:[#allocation2 + $0x140] sm:$0xff] %vm196_vm1, %v12652_v2  ;;  %v7747_v11 = vld [vmem:[%s10709_s9 + $0xa1] ss:$2 sm:$0xff]  ;;  %v7748_v12 = vld [vmem:[%s10709_s9 + $0xb1] ss:$2 sm:$0xff] }
  0x1f   : > { %217 = vst.msk [vmem:[#allocation2 + $0x160] sm:$0xff] %vm196_vm1, %v12652_v2  ;;  %218 = vst.msk [vmem:[#allocation2 + $0x180] sm:$0xff] %vm196_vm1, %v12652_v2  ;;  %v7733_v13 = vld [vmem:[%s10709_s9 + $0xc0] ss:$2 sm:$0xff]  ;;  %v393_v14 = vadd.f32 %v7747_v11, %v7731_v8  ;;  %v394_v15 = vadd.f32 %v7748_v12, %v7732_v9  ;;  %v7734_v16 = vld [vmem:[%s10709_s9 + $0xd0] ss:$2 sm:$0xff]  ;;  %v403_v19 = vadd.f32 %v392_v10, %v391_v7 }
  0x20   : > { %219 = vst.msk [vmem:[#allocation2 + $0x1a0] sm:$0xff] %vm196_vm1, %v12652_v2  ;;  %220 = vst.msk [vmem:[#allocation2 + $0x1c0] sm:$0xff] %vm196_vm1, %v12652_v2  ;;  %v7749_v17 = vld [vmem:[%s10709_s9 + $0xc1] ss:$2 sm:$0xff]  ;;  %v7750_v18 = vld [vmem:[%s10709_s9 + $0xd1] ss:$2 sm:$0xff] }
  0x21   : > { %221 = vst.msk [vmem:[#allocation2 + $0x1e0] sm:$0xff] %vm196_vm1, %v12652_v2  ;;  %222 = vst.msk [vmem:[#allocation2 + $0x200] sm:$0xff] %vm196_vm1, %v12652_v2  ;;  %v395_v20 = vadd.f32 %v7749_v17, %v7733_v13  ;;  %v396_v21 = vadd.f32 %v7750_v18, %v7734_v16  ;;  %v7735_v22 = vld [vmem:[%s10709_s9 + $0xe0] ss:$2 sm:$0xff]  ;;  %v7736_v23 = vld [vmem:[%s10709_s9 + $0xf0] ss:$2 sm:$0xff]  ;;  %v404_v25 = vadd.f32 %v394_v15, %v393_v14 }
  0x22   : > { %225 = vst.msk [vmem:[#allocation2 + $0x38] sm:$0xff] %vm196_vm1, %v12652_v2  ;;  %226 = vst.msk [vmem:[#allocation2 + $0x58] sm:$0xff] %vm196_vm1, %v12652_v2  ;;  %v7751_v24 = vld [vmem:[%s10709_s9 + $0xe1] ss:$2 sm:$0xff]  ;;  %v7752_v26 = vld [vmem:[%s10709_s9 + $0xf1] ss:$2 sm:$0xff] }
  0x23   : > { %227 = vst.msk [vmem:[#allocation2 + $0x78] sm:$0xff] %vm196_vm1, %v12652_v2  ;;  %228 = vst.msk [vmem:[#allocation2 + $0x98] sm:$0xff] %vm196_vm1, %v12652_v2  ;;  %v397_v27 = vadd.f32 %v7751_v24, %v7735_v22  ;;  %v411_v28 = vmul.f32 0.25, %v403_v19  ;;  %v405_v29 = vadd.f32 %v396_v21, %v395_v20  ;;  %v398_v30 = vadd.f32 %v7752_v26, %v7736_v23  ;;  %v288_v32 = vld [vmem:[%s10709_s9] sm:$0xff]  ;;  %v289_v33 = vld [vmem:[%s10709_s9 + $0x8] sm:$0xff]  ;;  %s10524_s28 = smov [#allocation4]  }
  0x24   : > { %229 = vst.msk [vmem:[#allocation2 + $0xb8] sm:$0xff] %vm196_vm1, %v12652_v2  ;;  %230 = vst.msk [vmem:[#allocation2 + $0xd8] sm:$0xff] %vm196_vm1, %v12652_v2  ;;  %v290_v34 = vld [vmem:[%s10709_s9 + $0x10] sm:$0xff]  ;;  %v412_v35 = vmul.f32 0.25, %v404_v25  ;;  %v549_v36 = vmax.f32 %v288_v32, 0.0  ;;  %v550_v37 = vmax.f32 %v289_v33, 0.0 }
  0x25   : > { %231 = vst.msk [vmem:[#allocation2 + $0xf8] sm:$0xff] %vm196_vm1, %v12652_v2  ;;  %232 = vst.msk [vmem:[#allocation2 + $0x118] sm:$0xff] %vm196_vm1, %v12652_v2  ;;  %v551_v38 = vmax.f32 %v290_v34, 0.0  ;;  %v291_v39 = vld [vmem:[%s10709_s9 + $0x18] sm:$0xff]  ;;  %v292_v40 = vld [vmem:[%s10709_s9 + $0x20] sm:$0xff]  ;;  %8981 = vmatprep.mubr.msk.f32.mxu1 %vm196_vm1, %v411_v28  ;;  %v413_v41 = vmul.f32 0.25, %v405_v29  ;;  %v406_v42 = vadd.f32 %v398_v30, %v397_v27 }
  0x26   : > { %233 = vst.msk [vmem:[#allocation2 + $0x138] sm:$0xff] %vm196_vm1, %v12652_v2  ;;  %234 = vst.msk [vmem:[#allocation2 + $0x158] sm:$0xff] %vm196_vm1, %v12652_v2  ;;  %v552_v43 = vmax.f32 %v291_v39, 0.0  ;;  %v553_v44 = vmax.f32 %v292_v40, 0.0  ;;  %v293_v45 = vld [vmem:[%s10709_s9 + $0x28] sm:$0xff]  ;;  %v294_v46 = vld [vmem:[%s10709_s9 + $0x30] sm:$0xff]  ;;  %8982 = vmatmul.mubr.msk.f32.vlgmr.msra.gmra.mrb[0].mxu1 %vm196_vm1, %v412_v35 }
  0x27   : > { %235 = vst.msk [vmem:[#allocation2 + $0x178] sm:$0xff] %vm196_vm1, %v12652_v2  ;;  %236 = vst.msk [vmem:[#allocation2 + $0x198] sm:$0xff] %vm196_vm1, %v12652_v2  ;;  %v295_v47 = vld [vmem:[%s10709_s9 + $0x38] sm:$0xff]  ;;  %v647_v48 = vld [vmem:[#allocation2 + $0x8] sm:$0xff]  ;;  %v554_v49 = vmax.f32 %v293_v45, 0.0  ;;  %v555_v50 = vmax.f32 %v294_v46, 0.0  ;;  %8988 = vmatpush3.msk.msra.mxu1 %vm440_vm0, %v10608_v1  ;;  %8984 = vmatprep.mubr.msk.f32.mxu1 %vm196_vm1, %v413_v41 }
  0x28   : > { %237 = vst.msk [vmem:[#allocation2 + $0x1b8] sm:$0xff] %vm196_vm1, %v12652_v2  ;;  %238 = vst.msk [vmem:[#allocation2 + $0x1d8] sm:$0xff] %vm196_vm1, %v12652_v2  ;;  %v556_v51 = vmax.f32 %v295_v47, 0.0  ;;  %v296_v52 = vld [vmem:[%s10709_s9 + $0x40] sm:$0xff]  ;;  %v297_v53 = vld [vmem:[%s10709_s9 + $0x48] sm:$0xff]  ;;  %v414_v55 = vmul.f32 0.25, %v406_v42  ;;  %9037 = vmatprep.subr.msk.mxu1 %vm440_vm0, %v10730_v31 }
  0x29   : > { %239 = vst.msk [vmem:[#allocation2 + $0x1f8] sm:$0xff] %vm196_vm1, %v12652_v2  ;;  %240 = vst.msk [vmem:[#allocation2 + $0x218] sm:$0xff] %vm196_vm1, %v12652_v2  ;;  %v298_v54 = vld [vmem:[%s10709_s9 + $0x50] sm:$0xff]  ;;  %v557_v56 = vmax.f32 %v296_v52, 0.0  ;;  %v558_v57 = vmax.f32 %v297_v53, 0.0  ;;  %v299_v59 = vld [vmem:[%s10709_s9 + $0x58] sm:$0xff] }
  0x2a   : > { %206 = vst.msk [vmem:[#allocation2] sm:$0xff] %vm196_vm1, %v12652_v2  ;;  %223 = vst.msk [vmem:[#allocation2 + $0x220] sm:$0xff] %vm196_vm1, %v12652_v2  ;;  %v559_v58 = vmax.f32 %v298_v54, 0.0  ;;  %v300_v60 = vld [vmem:[%s10709_s9 + $0x60] sm:$0xff]  ;;  %v560_v61 = vmax.f32 %v299_v59, 0.0  ;;  %v301_v63 = vld [vmem:[%s10709_s9 + $0x68] sm:$0xff]  ;;  %8985 = vmatmul.mubr.msk.f32.gmra.mrb[2].mxu1 %vm196_vm1, %v414_v55 }
  0x2b   : > { %224 = vst.msk [vmem:[#allocation2 + $0x18] sm:$0xff] %vm196_vm1, %v12652_v2  ;;  %241 = vst.msk [vmem:[#allocation2 + $0x238] sm:$0xff] %vm196_vm1, %v12652_v2  ;;  %v561_v62 = vmax.f32 %v300_v60, 0.0  ;;  %v302_v0 = vld [vmem:[%s10709_s9 + $0x70] sm:$0xff]  ;;  %v303_v1 = vld [vmem:[%s10709_s9 + $0x78] sm:$0xff]  ;;  %v562_v4 = vmax.f32 %v301_v63, 0.0  ;;  %8989 = vmatprep.mubr.msk.f32.mxu1 %vm196_vm1, %v647_v48 }
  0x2c   : > { %582 = vst.msk [vmem:[#allocation2 + $0x28] sm:$0xff] %vm196_vm1, %v549_v36  ;;  %583 = vst.msk [vmem:[#allocation2 + $0x30] sm:$0xff] %vm196_vm1, %v550_v37  ;;  %v648_v3 = vld [vmem:[#allocation2 + $0x10] sm:$0xff]  ;;  %v563_v5 = vmax.f32 %v302_v0, 0.0  ;;  %v564_v6 = vmax.f32 %v303_v1, 0.0  ;;  %v304_v7 = vld [vmem:[%s10709_s9 + $0x80] sm:$0xff] }
  0x2d   : > { %584 = vst.msk [vmem:[#allocation2 + $0x48] sm:$0xff] %vm196_vm1, %v551_v38  ;;  %585 = vst.msk [vmem:[#allocation2 + $0x50] sm:$0xff] %vm196_vm1, %v552_v43  ;;  %v305_v8 = vld [vmem:[%s10709_s9 + $0x88] sm:$0xff]  ;;  %v306_v9 = vld [vmem:[%s10709_s9 + $0x90] sm:$0xff]  ;;  %v565_v10 = vmax.f32 %v304_v7, 0.0  ;;  %s10463_s29 = sshll.u32 %s10524_s28, 4  ;;  %s10464_s29 = int_to_ptr.vmem [resolvable:$false] %s10463_s29 }
  0x2e   : > { %586 = vst.msk [vmem:[#allocation2 + $0x68] sm:$0xff] %vm196_vm1, %v553_v44  ;;  %587 = vst.msk [vmem:[#allocation2 + $0x70] sm:$0xff] %vm196_vm1, %v554_v49  ;;  %v566_v11 = vmax.f32 %v305_v8, 0.0  ;;  %v567_v12 = vmax.f32 %v306_v9, 0.0  ;;  %v307_v13 = vld [vmem:[%s10709_s9 + $0x98] sm:$0xff]  ;;  %v308_v14 = vld [vmem:[%s10709_s9 + $0xa0] sm:$0xff]  ;;  %8990 = vmatmul.mubr.msk.f32.vlgmr.msra.gmra.mrb[4].mxu1 %vm196_vm1, %v648_v3 }
  0x2f   : > { %588 = vst.msk [vmem:[#allocation2 + $0x88] sm:$0xff] %vm196_vm1, %v555_v50  ;;  %589 = vst.msk [vmem:[#allocation2 + $0x90] sm:$0xff] %vm196_vm1, %v556_v51  ;;  %v309_v15 = vld [vmem:[%s10709_s9 + $0xa8] sm:$0xff]  ;;  %v568_v16 = vmax.f32 %v307_v13, 0.0  ;;  %v569_v17 = vmax.f32 %v308_v14, 0.0  ;;  %v310_v19 = vld [vmem:[%s10709_s9 + $0xb0] sm:$0xff]  ;;  %9038 = vmatpush3.msk.msra.mxu1 %vm440_vm0, %v10730_v31 }
  0x30   : > { %590 = vst.msk [vmem:[#allocation2 + $0xa8] sm:$0xff] %vm196_vm1, %v557_v56  ;;  %591 = vst.msk [vmem:[#allocation2 + $0xb0] sm:$0xff] %vm196_vm1, %v558_v57  ;;  %v570_v18 = vmax.f32 %v309_v15, 0.0  ;;  %v311_v20 = vld [vmem:[%s10709_s9 + $0xb8] sm:$0xff]  ;;  %v312_v21 = vld [vmem:[%s10709_s9 + $0xc0] sm:$0xff]  ;;  %v571_v22 = vmax.f32 %v310_v19, 0.0 }
  0x31   : > { %592 = vst.msk [vmem:[#allocation2 + $0xc8] sm:$0xff] %vm196_vm1, %v559_v58  ;;  %593 = vst.msk [vmem:[#allocation2 + $0xd0] sm:$0xff] %vm196_vm1, %v560_v61  ;;  %v572_v23 = vmax.f32 %v311_v20, 0.0  ;;  %v573_v24 = vmax.f32 %v312_v21, 0.0  ;;  %v313_v25 = vld [vmem:[%s10709_s9 + $0xc8] sm:$0xff]  ;;  %v314_v26 = vld [vmem:[%s10709_s9 + $0xd0] sm:$0xff] }
  0x32   : > { %594 = vst.msk [vmem:[#allocation2 + $0xe8] sm:$0xff] %vm196_vm1, %v561_v62  ;;  %595 = vst.msk [vmem:[#allocation2 + $0xf0] sm:$0xff] %vm196_vm1, %v562_v4  ;;  %v315_v27 = vld [vmem:[%s10709_s9 + $0xd8] sm:$0xff]  ;;  %v574_v29 = vmax.f32 %v313_v25, 0.0  ;;  %v575_v30 = vmax.f32 %v314_v26, 0.0  ;;  %v316_v34 = vld [vmem:[%s10709_s9 + $0xe0] sm:$0xff] }
  0x33   : > { %596 = vst.msk [vmem:[#allocation2 + $0x108] sm:$0xff] %vm196_vm1, %v563_v5  ;;  %597 = vst.msk [vmem:[#allocation2 + $0x110] sm:$0xff] %vm196_vm1, %v564_v6  ;;  %v10788_v28 = vld [vmem:[#allocation2 + $0x28] sm:$0xff]  ;;  %v576_v32 = vmax.f32 %v315_v27, 0.0  ;;  %v10807_v35 = vld [vmem:[#allocation2 + $0x30] sm:$0xff]  ;;  %v577_v36 = vmax.f32 %v316_v34, 0.0 }
  0x34   : > { %598 = vst.msk [vmem:[#allocation2 + $0x128] sm:$0xff] %vm196_vm1, %v565_v10  ;;  %599 = vst.msk [vmem:[#allocation2 + $0x130] sm:$0xff] %vm196_vm1, %v566_v11  ;;  %v10796_v33 = vld [vmem:[%s12649_s2 + $0x8] sm:$0xf]  ;;  %8992 = vmatprep.mubr.msk.f32.mxu1 %vm196_vm1, %v10788_v28  ;;  %v10822_v39 = vld [vmem:[#allocation2 + $0x50] sm:$0xff]  ;;  %s10465_s30 = scalar_lea.vmem %s10464_s29, 2048 }
  0x35   : > { %600 = vst.msk [vmem:[#allocation2 + $0x148] sm:$0xff] %vm196_vm1, %v567_v12  ;;  %601 = vst.msk [vmem:[#allocation2 + $0x150] sm:$0xff] %vm196_vm1, %v568_v16  ;;  %v10812_v37 = vld [vmem:[#allocation2 + $0x48] sm:$0xff]  ;;  %9087 = vmatprep.subr.msk.mxu1 %vm440_vm0, %v10796_v33  ;;  %8993 = vmatmul.mubr.msk.f32.gmra.mrb[6].mxu1 %vm196_vm1, %v10807_v35  ;;  %v10831_v41 = vld [vmem:[#allocation2 + $0x70] sm:$0xff] }
  0x36   : > { %602 = vst.msk [vmem:[#allocation2 + $0x168] sm:$0xff] %vm196_vm1, %v569_v17  ;;  %603 = vst.msk [vmem:[#allocation2 + $0x170] sm:$0xff] %vm196_vm1, %v570_v18  ;;  %v317_v31 = vld [vmem:[%s10709_s9 + $0xe8] sm:$0xff]  ;;  %8995 = vmatprep.mubr.msk.f32.mxu1 %vm196_vm1, %v10812_v37  ;;  %v10839_v43 = vld [vmem:[#allocation2 + $0x90] sm:$0xff] }
  0x37   : > { %604 = vst.msk [vmem:[#allocation2 + $0x188] sm:$0xff] %vm196_vm1, %v571_v22  ;;  %605 = vst.msk [vmem:[#allocation2 + $0x190] sm:$0xff] %vm196_vm1, %v572_v23  ;;  %v578_v38 = vmax.f32 %v317_v31, 0.0  ;;  %v10824_v40 = vld [vmem:[#allocation2 + $0x68] sm:$0xff]  ;;  %v10847_v45 = vld [vmem:[#allocation2 + $0xb0] sm:$0xff] }
  0x38   : > { %606 = vst.msk [vmem:[#allocation2 + $0x1a8] sm:$0xff] %vm196_vm1, %v573_v24  ;;  %607 = vst.msk [vmem:[#allocation2 + $0x1b0] sm:$0xff] %vm196_vm1, %v574_v29  ;;  %v10833_v42 = vld [vmem:[#allocation2 + $0x88] sm:$0xff]  ;;  %v10855_v47 = vld [vmem:[#allocation2 + $0xd0] sm:$0xff] }
  0x39   : > { %608 = vst.msk [vmem:[#allocation2 + $0x1c8] sm:$0xff] %vm196_vm1, %v575_v30  ;;  %609 = vst.msk [vmem:[#allocation2 + $0x1d0] sm:$0xff] %vm196_vm1, %v576_v32  ;;  %8996 = vmatmul.mubr.msk.f32.gmra.mrb[8].mxu1 %vm196_vm1, %v10822_v39  ;;  %v10841_v44 = vld [vmem:[#allocation2 + $0xa8] sm:$0xff]  ;;  %v10863_v49 = vld [vmem:[#allocation2 + $0xf0] sm:$0xff] }
  0x3a   : > { %610 = vst.msk [vmem:[#allocation2 + $0x1e8] sm:$0xff] %vm196_vm1, %v577_v36  ;;  %611 = vst.msk [vmem:[#allocation2 + $0x1f0] sm:$0xff] %vm196_vm1, %v578_v38  ;;  %8998 = vmatprep.mubr.msk.f32.mxu1 %vm196_vm1, %v10824_v40  ;;  %v10849_v46 = vld [vmem:[#allocation2 + $0xc8] sm:$0xff]  ;;  %v10871_v51 = vld [vmem:[#allocation2 + $0x110] sm:$0xff] }
  0x3b   : > { %v10857_v48 = vld [vmem:[#allocation2 + $0xe8] sm:$0xff]  ;;  %v10879_v53 = vld [vmem:[#allocation2 + $0x130] sm:$0xff]  ;;  %v319_v31 = vld [vmem:[%s10709_s9 + $0xf8] sm:$0xff] }
  0x3c   : > { %v10865_v50 = vld [vmem:[#allocation2 + $0x108] sm:$0xff]  ;;  %v10887_v55 = vld [vmem:[#allocation2 + $0x150] sm:$0xff] }
  0x3d   : > { %8999 = vmatmul.mubr.msk.f32.gmra.mrb[10].mxu1 %vm196_vm1, %v10831_v41  ;;  %v10873_v52 = vld [vmem:[#allocation2 + $0x128] sm:$0xff]  ;;  %v10895_v57 = vld [vmem:[#allocation2 + $0x170] sm:$0xff] }
  0x3e   : > { %9001 = vmatprep.mubr.msk.f32.mxu1 %vm196_vm1, %v10833_v42  ;;  %v10881_v54 = vld [vmem:[#allocation2 + $0x148] sm:$0xff]  ;;  %v10903_v59 = vld [vmem:[#allocation2 + $0x190] sm:$0xff] }
  0x3f   : > { %v10889_v56 = vld [vmem:[#allocation2 + $0x168] sm:$0xff]  ;;  %v10911_v61 = vld [vmem:[#allocation2 + $0x1b0] sm:$0xff] }
  0x40   : > { %v10897_v58 = vld [vmem:[#allocation2 + $0x188] sm:$0xff]  ;;  %v10919_v63 = vld [vmem:[#allocation2 + $0x1d0] sm:$0xff] }
  0x41   : > { %9002 = vmatmul.mubr.msk.f32.gmra.mrb[12].mxu1 %vm196_vm1, %v10839_v43  ;;  %v10905_v60 = vld [vmem:[#allocation2 + $0x1a8] sm:$0xff]  ;;  %12770 = vst [vmem:[#allocation7_spill] sm:$0xff] %v10919_v63  ;;  %v10927_v1 = vld [vmem:[#allocation2 + $0x1f0] sm:$0xff] }
  0x42   : > { %9004 = vmatprep.mubr.msk.f32.mxu1 %vm196_vm1, %v10841_v44  ;;  %v10913_v62 = vld [vmem:[#allocation2 + $0x1c8] sm:$0xff]  ;;  %12772 = vst [vmem:[#allocation9_spill] sm:$0xff] %v10927_v1 }
  0x43   : > { %v10921_v0 = vld [vmem:[#allocation2 + $0x1e8] sm:$0xff] }
  0x44   : > { %12771 = vst [vmem:[#allocation8_spill] sm:$0xff] %v10921_v0  ;;  %v614_v3 = vld [vmem:[#allocation2 + $0x7] sm:$0xff]  ;;  %v615_v4 = vld [vmem:[#allocation2 + $0xf] sm:$0xff] }
  0x45   : > { %9005 = vmatmul.mubr.msk.f32.gmra.mrb[14].mxu1 %vm196_vm1, %v10847_v45  ;;  %v10932_v5 = vld [vmem:[#allocation2 + $0x27] sm:$0xff]  ;;  %v10944_v7 = vld [vmem:[#allocation2 + $0x2f] sm:$0xff] }
  0x46   : > { %9007 = vmatprep.mubr.msk.f32.mxu1 %vm196_vm1, %v10849_v46  ;;  %v10937_v6 = vld [vmem:[%s12649_s2 + $0xc] sm:$0xf] }
  0x47   : > { %v10946_v8 = vld [vmem:[#allocation2 + $0x47] sm:$0xff]  ;;  %v10954_v9 = vld [vmem:[#allocation2 + $0x4f] sm:$0xff] }
  0x48   : > { %12773 = vst [vmem:[#allocation10_spill] sm:$0xff] %v10954_v9  ;;  %v10956_v10 = vld [vmem:[#allocation2 + $0x67] sm:$0xff]  ;;  %v10962_v11 = vld [vmem:[#allocation2 + $0x6f] sm:$0xff] }
  0x49   : > { %9008 = vmatmul.mubr.msk.f32.gmra.mrb[16].mxu1 %vm196_vm1, %v10855_v47  ;;  %v10964_v12 = vld [vmem:[#allocation2 + $0x87] sm:$0xff]  ;;  %v10970_v13 = vld [vmem:[#allocation2 + $0x8f] sm:$0xff] }
  0x4a   : > { %9010 = vmatprep.mubr.msk.f32.mxu1 %vm196_vm1, %v10857_v48  ;;  %v10972_v14 = vld [vmem:[#allocation2 + $0xa7] sm:$0xff]  ;;  %v10978_v15 = vld [vmem:[#allocation2 + $0xaf] sm:$0xff] }
  0x4b   : > { %v10980_v16 = vld [vmem:[#allocation2 + $0xc7] sm:$0xff]  ;;  %v10986_v17 = vld [vmem:[#allocation2 + $0xcf] sm:$0xff] }
  0x4c   : > { %v10988_v18 = vld [vmem:[#allocation2 + $0xe7] sm:$0xff]  ;;  %v10994_v19 = vld [vmem:[#allocation2 + $0xef] sm:$0xff] }
  0x4d   : > { %9011 = vmatmul.mubr.msk.f32.gmra.mrb[18].mxu1 %vm196_vm1, %v10863_v49  ;;  %v10996_v20 = vld [vmem:[#allocation2 + $0x107] sm:$0xff]  ;;  %v11002_v21 = vld [vmem:[#allocation2 + $0x10f] sm:$0xff] }
  0x4e   : > { %9013 = vmatprep.mubr.msk.f32.mxu1 %vm196_vm1, %v10865_v50  ;;  %v11004_v22 = vld [vmem:[#allocation2 + $0x127] sm:$0xff]  ;;  %v11010_v23 = vld [vmem:[#allocation2 + $0x12f] sm:$0xff] }
  0x4f   : > { %v11012_v24 = vld [vmem:[#allocation2 + $0x147] sm:$0xff]  ;;  %v11018_v25 = vld [vmem:[#allocation2 + $0x14f] sm:$0xff] }
  0x50   : > { %v11020_v26 = vld [vmem:[#allocation2 + $0x167] sm:$0xff]  ;;  %v11026_v27 = vld [vmem:[#allocation2 + $0x16f] sm:$0xff] }
  0x51   : > { %9014 = vmatmul.mubr.msk.f32.gmra.mrb[20].mxu1 %vm196_vm1, %v10871_v51  ;;  %v11028_v29 = vld [vmem:[#allocation2 + $0x187] sm:$0xff]  ;;  %v11034_v30 = vld [vmem:[#allocation2 + $0x18f] sm:$0xff] }
  0x52   : > { %9016 = vmatprep.mubr.msk.f32.mxu1 %vm196_vm1, %v10873_v52  ;;  %v11036_v32 = vld [vmem:[#allocation2 + $0x1a7] sm:$0xff]  ;;  %v11043_v34 = vld [vmem:[#allocation2 + $0x1af] sm:$0xff] }
  0x53   : > { %v11046_v38 = vld [vmem:[#allocation2 + $0x1c7] sm:$0xff] }
  0x54   : > { %v11056_v2 = vld [vmem:[#allocation2 + $0x1e7] sm:$0xff] }
  0x55   : > { %9017 = vmatmul.mubr.msk.f32.gmra.mrb[22].mxu1 %vm196_vm1, %v10879_v53 }
  0x56   : > { %9019 = vmatprep.mubr.msk.f32.mxu1 %vm196_vm1, %v10881_v54 }
  0x59   : > { %9020 = vmatmul.mubr.msk.f32.gmra.mrb[24].mxu1 %vm196_vm1, %v10887_v55 }
  0x5a   : > { %9022 = vmatprep.mubr.msk.f32.mxu1 %vm196_vm1, %v10889_v56 }
  0x5d   : > { %9023 = vmatmul.mubr.msk.f32.gmra.mrb[26].mxu1 %vm196_vm1, %v10895_v57 }
  0x5e   : > { %9025 = vmatprep.mubr.msk.f32.mxu1 %vm196_vm1, %v10897_v58 }
  0x61   : > { %9026 = vmatmul.mubr.msk.f32.gmra.mrb[28].mxu1 %vm196_vm1, %v10903_v59 }
  0x62   : > { %9028 = vmatprep.mubr.msk.f32.mxu1 %vm196_vm1, %v10905_v60 }
  0x65   : > { %9029 = vmatmul.mubr.msk.f32.gmra.mrb[30].mxu1 %vm196_vm1, %v10911_v61 }
  0x66   : > { %9031 = vmatprep.mubr.msk.f32.mxu1 %vm196_vm1, %v10913_v62 }
  0x69   : > { %9032 = vmatmul.mubr.msk.f32.gmra.mrb[32].mxu1 %vm196_vm1, %v10919_v63  ;;  %v11081_v63 = vld [vmem:[#allocation2 + $0x49] sm:$0xff] }
  0x6a   : > { %9034 = vmatprep.mubr.msk.f32.mxu1 %vm196_vm1, %v10921_v0  ;;  %v11079_v0 = vld [vmem:[#allocation2 + $0x31] sm:$0xff]  ;;  %12776 = vst [vmem:[#allocation13_spill] sm:$0xff] %v11081_v63 }
  0x6b   : > { %12775 = vst [vmem:[#allocation12_spill] sm:$0xff] %v11079_v0 }
  0x6d   : > { %9035 = vmatmul.mubr.msk.f32.gmra.mrb[34].mxu1 %vm196_vm1, %v10927_v1  ;;  %v11072_v1 = vld [vmem:[%s12649_s2 + $0x10] sm:$0xf] }
  0x6e   : > { %9039 = vmatprep.mubr.msk.f32.mxu1 %vm196_vm1, %v614_v3  ;;  %v580_v3 = vmax.f32 %v319_v31, 0.0  ;;  %v1330_v31 = vld [vmem:[#allocation2 + $0x11] sm:$0xff] }
  0x70   : > { %613 = vst.msk [vmem:[#allocation2 + $0x210] sm:$0xff] %vm196_vm1, %v580_v3  ;;  %v11067_v3 = vld [vmem:[#allocation2 + $0x29] sm:$0xff] }
  0x71   : > { %9040 = vmatmul.mubr.msk.f32.vlgmr.msra.gmra.mrb[4].mxu1 %vm196_vm1, %v615_v4  ;;  %v11054_v4 = vld [vmem:[#allocation2 + $0x1cf] sm:$0xff]  ;;  %12774 = vst [vmem:[#allocation11_spill] sm:$0xff] %v11067_v3 }
  0x72   : > { %9088 = vmatpush3.msk.msra.mxu1 %vm440_vm0, %v10796_v33  ;;  %9042 = vmatprep.mubr.msk.f32.mxu1 %vm196_vm1, %v10932_v5  ;;  %v318_v33 = vld [vmem:[%s10709_s9 + $0xf0] sm:$0xff] }
  0x73   : > { %9137 = vmatprep.subr.msk.mxu1 %vm440_vm0, %v10937_v6  ;;  %v579_v36 = vmax.f32 %v318_v33, 0.0  ;;  %v11062_v33 = vld [vmem:[#allocation2 + $0x1ef] sm:$0xff] }
  0x75   : > { %9043 = vmatmul.mubr.msk.f32.gmra.mrb[6].mxu1 %vm196_vm1, %v10944_v7  ;;  %612 = vst.msk [vmem:[#allocation2 + $0x208] sm:$0xff] %vm196_vm1, %v579_v36  ;;  %v1329_v36 = vld [vmem:[#allocation2 + $0x9] sm:$0xff] }
  0x76   : > { %9045 = vmatprep.mubr.msk.f32.mxu1 %vm196_vm1, %v10946_v8 }
  0x79   : > { %9046 = vmatmul.mubr.msk.f32.gmra.mrb[8].mxu1 %vm196_vm1, %v10954_v9 }
  0x7a   : > { %9048 = vmatprep.mubr.msk.f32.mxu1 %vm196_vm1, %v10956_v10 }
  0x7d   : > { %9049 = vmatmul.mubr.msk.f32.gmra.mrb[10].mxu1 %vm196_vm1, %v10962_v11 }
  0x7e   : > { %9051 = vmatprep.mubr.msk.f32.mxu1 %vm196_vm1, %v10964_v12 }
  0x81   : > { %9052 = vmatmul.mubr.msk.f32.gmra.mrb[12].mxu1 %vm196_vm1, %v10970_v13 }
  0x82   : > { %9054 = vmatprep.mubr.msk.f32.mxu1 %vm196_vm1, %v10972_v14 }
  0x85   : > { %9055 = vmatmul.mubr.msk.f32.gmra.mrb[14].mxu1 %vm196_vm1, %v10978_v15 }
  0x86   : > { %9057 = vmatprep.mubr.msk.f32.mxu1 %vm196_vm1, %v10980_v16 }
  0x89   : > { %9058 = vmatmul.mubr.msk.f32.gmra.mrb[16].mxu1 %vm196_vm1, %v10986_v17 }
  0x8a   : > { %9060 = vmatprep.mubr.msk.f32.mxu1 %vm196_vm1, %v10988_v18 }
  0x8d   : > { %9061 = vmatmul.mubr.msk.f32.gmra.mrb[18].mxu1 %vm196_vm1, %v10994_v19 }
  0x8e   : > { %9063 = vmatprep.mubr.msk.f32.mxu1 %vm196_vm1, %v10996_v20 }
  0x91   : > { %9064 = vmatmul.mubr.msk.f32.gmra.mrb[20].mxu1 %vm196_vm1, %v11002_v21 }
  0x92   : > { %9066 = vmatprep.mubr.msk.f32.mxu1 %vm196_vm1, %v11004_v22 }
  0x95   : > { %9067 = vmatmul.mubr.msk.f32.gmra.mrb[22].mxu1 %vm196_vm1, %v11010_v23 }
  0x96   : > { %9069 = vmatprep.mubr.msk.f32.mxu1 %vm196_vm1, %v11012_v24 }
  0x99   : > { %9070 = vmatmul.mubr.msk.f32.gmra.mrb[24].mxu1 %vm196_vm1, %v11018_v25 }
  0x9a   : > { %9072 = vmatprep.mubr.msk.f32.mxu1 %vm196_vm1, %v11020_v26 }
  0x9d   : > { %9073 = vmatmul.mubr.msk.f32.gmra.mrb[26].mxu1 %vm196_vm1, %v11026_v27 }
  0x9e   : > { %9075 = vmatprep.mubr.msk.f32.mxu1 %vm196_vm1, %v11028_v29 }
  0xa1   : > { %9076 = vmatmul.mubr.msk.f32.gmra.mrb[28].mxu1 %vm196_vm1, %v11034_v30 }
  0xa2   : > { %9078 = vmatprep.mubr.msk.f32.mxu1 %vm196_vm1, %v11036_v32 }
  0xa5   : > { %9079 = vmatmul.mubr.msk.f32.gmra.mrb[30].mxu1 %vm196_vm1, %v11043_v34 }
  0xa6   : > { %9081 = vmatprep.mubr.msk.f32.mxu1 %vm196_vm1, %v11046_v38 }
  0xa9   : > { %9082 = vmatmul.mubr.msk.f32.gmra.mrb[32].mxu1 %vm196_vm1, %v11054_v4 }
  0xaa   : > { %9084 = vmatprep.mubr.msk.f32.mxu1 %vm196_vm1, %v11056_v2 }
  0xad   : > { %9085 = vmatmul.mubr.msk.f32.gmra.mrb[34].mxu1 %vm196_vm1, %v11062_v33 }
  0xae   : > { %9089 = vmatprep.mubr.msk.f32.mxu1 %vm196_vm1, %v1329_v36  ;;  %v11089_v36 = vld [vmem:[#allocation2 + $0x51] sm:$0xff] }
  0xaf   : > { %12777 = vst [vmem:[#allocation14_spill] sm:$0xff] %v11089_v36 }
  0xb1   : > { %9090 = vmatmul.mubr.msk.f32.vlgmr.msra.gmra.mrb[4].mxu1 %vm196_vm1, %v1330_v31  ;;  %v11091_v31 = vld [vmem:[#allocation2 + $0x69] sm:$0xff] }
  0xb2   : > { %9138 = vmatpush3.msk.msra.mxu1 %vm440_vm0, %v10937_v6  ;;  %9092 = vmatprep.mubr.msk.f32.mxu1 %vm196_vm1, %v11067_v3  ;;  %12778 = vst [vmem:[#allocation15_spill] sm:$0xff] %v11091_v31  ;;  %v11097_v6 = vld [vmem:[#allocation2 + $0x71] sm:$0xff]  ;;  %v11099_v3 = vld [vmem:[#allocation2 + $0x89] sm:$0xff] }
  0xb3   : > { %9187 = vmatprep.subr.msk.mxu1 %vm440_vm0, %v11072_v1  ;;  %12779 = vst [vmem:[#allocation16_spill] sm:$0xff] %v11097_v6  ;;  %12780 = vst [vmem:[#allocation17_spill] sm:$0xff] %v11099_v3 }
  0xb5   : > { %9093 = vmatmul.mubr.msk.f32.gmra.mrb[6].mxu1 %vm196_vm1, %v11079_v0  ;;  %v11107_v0 = vld [vmem:[#allocation2 + $0xa9] sm:$0xff] }
  0xb6   : > { %9095 = vmatprep.mubr.msk.f32.mxu1 %vm196_vm1, %v11081_v63  ;;  %v11105_v63 = vld [vmem:[#allocation2 + $0x91] sm:$0xff]  ;;  %12782 = vst [vmem:[#allocation19_spill] sm:$0xff] %v11107_v0 }
  0xb7   : > { %12781 = vst [vmem:[#allocation18_spill] sm:$0xff] %v11105_v63 }
  0xb9   : > { %9096 = vmatmul.mubr.msk.f32.gmra.mrb[8].mxu1 %vm196_vm1, %v11089_v36  ;;  %v11115_v36 = vld [vmem:[#allocation2 + $0xc9] sm:$0xff] }
  0xba   : > { %9098 = vmatprep.mubr.msk.f32.mxu1 %vm196_vm1, %v11091_v31  ;;  %v11113_v31 = vld [vmem:[#allocation2 + $0xb1] sm:$0xff]  ;;  %12784 = vst [vmem:[#allocation21_spill] sm:$0xff] %v11115_v36 }
  0xbb   : > { %12783 = vst [vmem:[#allocation20_spill] sm:$0xff] %v11113_v31 }
  0xbd   : > { %9099 = vmatmul.mubr.msk.f32.gmra.mrb[10].mxu1 %vm196_vm1, %v11097_v6  ;;  %v11123_v6 = vld [vmem:[#allocation2 + $0xe9] sm:$0xff] }
  0xbe   : > { %9101 = vmatprep.mubr.msk.f32.mxu1 %vm196_vm1, %v11099_v3  ;;  %v11121_v3 = vld [vmem:[#allocation2 + $0xd1] sm:$0xff]  ;;  %12786 = vst [vmem:[#allocation23_spill] sm:$0xff] %v11123_v6 }
  0xbf   : > { %12785 = vst [vmem:[#allocation22_spill] sm:$0xff] %v11121_v3 }
  0xc1   : > { %9102 = vmatmul.mubr.msk.f32.gmra.mrb[12].mxu1 %vm196_vm1, %v11105_v63  ;;  %v11131_v63 = vld [vmem:[#allocation2 + $0x109] sm:$0xff] }
  0xc2   : > { %9104 = vmatprep.mubr.msk.f32.mxu1 %vm196_vm1, %v11107_v0  ;;  %v11129_v0 = vld [vmem:[#allocation2 + $0xf1] sm:$0xff]  ;;  %12788 = vst [vmem:[#allocation25_spill] sm:$0xff] %v11131_v63 }
  0xc3   : > { %12787 = vst [vmem:[#allocation24_spill] sm:$0xff] %v11129_v0 }
  0xc5   : > { %9105 = vmatmul.mubr.msk.f32.gmra.mrb[14].mxu1 %vm196_vm1, %v11113_v31  ;;  %v11139_v31 = vld [vmem:[#allocation2 + $0x129] sm:$0xff] }
  0xc6   : > { %9107 = vmatprep.mubr.msk.f32.mxu1 %vm196_vm1, %v11115_v36  ;;  %v11137_v36 = vld [vmem:[#allocation2 + $0x111] sm:$0xff]  ;;  %12790 = vst [vmem:[#allocation27_spill] sm:$0xff] %v11139_v31 }
  0xc7   : > { %12789 = vst [vmem:[#allocation26_spill] sm:$0xff] %v11137_v36 }
  0xc9   : > { %9108 = vmatmul.mubr.msk.f32.gmra.mrb[16].mxu1 %vm196_vm1, %v11121_v3  ;;  %v11147_v3 = vld [vmem:[#allocation2 + $0x149] sm:$0xff] }
  0xca   : > { %9110 = vmatprep.mubr.msk.f32.mxu1 %vm196_vm1, %v11123_v6  ;;  %v11145_v6 = vld [vmem:[#allocation2 + $0x131] sm:$0xff]  ;;  %12792 = vst [vmem:[#allocation29_spill] sm:$0xff] %v11147_v3 }
  0xcb   : > { %12791 = vst [vmem:[#allocation28_spill] sm:$0xff] %v11145_v6 }
  0xcd   : > { %9111 = vmatmul.mubr.msk.f32.gmra.mrb[18].mxu1 %vm196_vm1, %v11129_v0  ;;  %v11155_v0 = vld [vmem:[#allocation2 + $0x169] sm:$0xff] }
  0xce   : > { %9113 = vmatprep.mubr.msk.f32.mxu1 %vm196_vm1, %v11131_v63  ;;  %v11153_v63 = vld [vmem:[#allocation2 + $0x151] sm:$0xff]  ;;  %12794 = vst [vmem:[#allocation31_spill] sm:$0xff] %v11155_v0 }
  0xcf   : > { %12793 = vst [vmem:[#allocation30_spill] sm:$0xff] %v11153_v63 }
  0xd1   : > { %9114 = vmatmul.mubr.msk.f32.gmra.mrb[20].mxu1 %vm196_vm1, %v11137_v36  ;;  %v11163_v36 = vld [vmem:[#allocation2 + $0x189] sm:$0xff] }
  0xd2   : > { %9116 = vmatprep.mubr.msk.f32.mxu1 %vm196_vm1, %v11139_v31  ;;  %v11161_v31 = vld [vmem:[#allocation2 + $0x171] sm:$0xff]  ;;  %12796 = vst [vmem:[#allocation33_spill] sm:$0xff] %v11163_v36 }
  0xd3   : > { %12795 = vst [vmem:[#allocation32_spill] sm:$0xff] %v11161_v31 }
  0xd5   : > { %9117 = vmatmul.mubr.msk.f32.gmra.mrb[22].mxu1 %vm196_vm1, %v11145_v6  ;;  %v11171_v6 = vld [vmem:[#allocation2 + $0x1a9] sm:$0xff] }
  0xd6   : > { %9119 = vmatprep.mubr.msk.f32.mxu1 %vm196_vm1, %v11147_v3  ;;  %v11169_v3 = vld [vmem:[#allocation2 + $0x191] sm:$0xff]  ;;  %12797 = vst [vmem:[#allocation34_spill] sm:$0xff] %v11171_v6 }
  0xd9   : > { %9120 = vmatmul.mubr.msk.f32.gmra.mrb[24].mxu1 %vm196_vm1, %v11153_v63  ;;  %v11179_v63 = vld [vmem:[#allocation2 + $0x1c9] sm:$0xff] }
  0xda   : > { %9122 = vmatprep.mubr.msk.f32.mxu1 %vm196_vm1, %v11155_v0  ;;  %v11177_v0 = vld [vmem:[#allocation2 + $0x1b1] sm:$0xff]  ;;  %12798 = vst [vmem:[#allocation35_spill] sm:$0xff] %v11179_v63 }
  0xdd   : > { %9123 = vmatmul.mubr.msk.f32.gmra.mrb[26].mxu1 %vm196_vm1, %v11161_v31  ;;  %v11187_v31 = vld [vmem:[#allocation2 + $0x1e9] sm:$0xff] }
  0xde   : > { %9125 = vmatprep.mubr.msk.f32.mxu1 %vm196_vm1, %v11163_v36  ;;  %v11185_v36 = vld [vmem:[#allocation2 + $0x1d1] sm:$0xff]  ;;  %12800 = vst [vmem:[#allocation37_spill] sm:$0xff] %v11187_v31 }
  0xdf   : > { %12799 = vst [vmem:[#allocation36_spill] sm:$0xff] %v11185_v36 }
  0xe1   : > { %9126 = vmatmul.mubr.msk.f32.gmra.mrb[28].mxu1 %vm196_vm1, %v11169_v3 }
  0xe2   : > { %9128 = vmatprep.mubr.msk.f32.mxu1 %vm196_vm1, %v11171_v6  ;;  %v11193_v6 = vld [vmem:[#allocation2 + $0x1f1] sm:$0xff] }
  0xe5   : > { %9129 = vmatmul.mubr.msk.f32.gmra.mrb[30].mxu1 %vm196_vm1, %v11177_v0 }
  0xe6   : > { %9131 = vmatprep.mubr.msk.f32.mxu1 %vm196_vm1, %v11179_v63  ;;  %v7931_v63 = vld [vmem:[%s12649_s2 + $0x14] sm:$0xf] }
  0xe9   : > { %9132 = vmatmul.mubr.msk.f32.gmra.mrb[32].mxu1 %vm196_vm1, %v11185_v36 }
  0xea   : > { %9134 = vmatprep.mubr.msk.f32.mxu1 %vm196_vm1, %v11187_v31 }
  0xed   : > { %9135 = vmatmul.mubr.msk.f32.gmra.mrb[34].mxu1 %vm196_vm1, %v11193_v6 }
  0xee   : > { %9139 = vmatprep.mubr.msk.f32.mxu1 %vm196_vm1, %v10932_v5 }
  0xf1   : > { %9140 = vmatmul.mubr.msk.f32.vlgmr.msra.gmra.mrb[4].mxu1 %vm196_vm1, %v10944_v7 }
  0xf2   : > { %9188 = vmatpush3.msk.msra.mxu1 %vm440_vm0, %v11072_v1  ;;  %9142 = vmatprep.mubr.msk.f32.mxu1 %vm196_vm1, %v10946_v8 }
  0xf3   : > { %9237 = vmatprep.subr.msk.mxu1 %vm440_vm0, %v7931_v63 }
  0xf5   : > { %9143 = vmatmul.mubr.msk.f32.gmra.mrb[6].mxu1 %vm196_vm1, %v10954_v9 }
  0xf6   : > { %9145 = vmatprep.mubr.msk.f32.mxu1 %vm196_vm1, %v10956_v10 }
  0xf9   : > { %9146 = vmatmul.mubr.msk.f32.gmra.mrb[8].mxu1 %vm196_vm1, %v10962_v11  ;;  %v11217_v5 = vpop.f32.mrb[0].mxu1 }
  0xfa   : > { %9148 = vmatprep.mubr.msk.f32.mxu1 %vm196_vm1, %v10964_v12  ;;  %12801 = vst [vmem:[#allocation38_spill] sm:$0xff] %v11217_v5  ;;  %v11219_v1 = vpop.f32.mrb[1].mxu1  ;;  %v7965_v5 = vld [vmem:[%s12649_s2 + $0x18] sm:$0xf] }
  0xfb   : > { %12802 = vst [vmem:[#allocation39_spill] sm:$0xff] %v11219_v1  ;;  %v12822_v1 = vld [vmem:[#allocation25_spill] sm:$0xff] }
  0xfd   : > { %9149 = vmatmul.mubr.msk.f32.gmra.mrb[10].mxu1 %vm196_vm1, %v10970_v13  ;;  %v11225_v7 = vpop.f32.mrb[2].mxu1 }
  0xfe   : > { %9151 = vmatprep.mubr.msk.f32.mxu1 %vm196_vm1, %v10972_v14  ;;  %12803 = vst [vmem:[#allocation40_spill] sm:$0xff] %v11225_v7  ;;  %v11227_v9 = vpop.f32.mrb[3].mxu1  ;;  %v11269_v7 = vld [vmem:[#allocation2 + $0x207] sm:$0xff] }
  0xff   : > { %12804 = vst [vmem:[#allocation41_spill] sm:$0xff] %v11227_v9  ;;  %v11275_v9 = vld [vmem:[#allocation2 + $0x20f] sm:$0xff] }
 0x101   : > { %9152 = vmatmul.mubr.msk.f32.gmra.mrb[12].mxu1 %vm196_vm1, %v10978_v15 }
 0x102   : > { %9154 = vmatprep.mubr.msk.f32.mxu1 %vm196_vm1, %v10980_v16 }
 0x105   : > { %9155 = vmatmul.mubr.msk.f32.gmra.mrb[14].mxu1 %vm196_vm1, %v10986_v17 }
 0x106   : > { %9157 = vmatprep.mubr.msk.f32.mxu1 %vm196_vm1, %v10988_v18 }
 0x109   : > { %9158 = vmatmul.mubr.msk.f32.gmra.mrb[16].mxu1 %vm196_vm1, %v10994_v19 }
 0x10a   : > { %9160 = vmatprep.mubr.msk.f32.mxu1 %vm196_vm1, %v10996_v20 }
 0x10d   : > { %9161 = vmatmul.mubr.msk.f32.gmra.mrb[18].mxu1 %vm196_vm1, %v11002_v21 }
 0x10e   : > { %9163 = vmatprep.mubr.msk.f32.mxu1 %vm196_vm1, %v11004_v22 }
 0x111   : > { %9164 = vmatmul.mubr.msk.f32.gmra.mrb[20].mxu1 %vm196_vm1, %v11010_v23 }
 0x112   : > { %9166 = vmatprep.mubr.msk.f32.mxu1 %vm196_vm1, %v11012_v24 }
 0x115   : > { %9167 = vmatmul.mubr.msk.f32.gmra.mrb[22].mxu1 %vm196_vm1, %v11018_v25 }
 0x116   : > { %9169 = vmatprep.mubr.msk.f32.mxu1 %vm196_vm1, %v11020_v26 }
 0x119   : > { %9170 = vmatmul.mubr.msk.f32.gmra.mrb[24].mxu1 %vm196_vm1, %v11026_v27 }
 0x11a   : > { %9172 = vmatprep.mubr.msk.f32.mxu1 %vm196_vm1, %v11028_v29 }
 0x11d   : > { %9173 = vmatmul.mubr.msk.f32.gmra.mrb[26].mxu1 %vm196_vm1, %v11034_v30 }
 0x11e   : > { %9175 = vmatprep.mubr.msk.f32.mxu1 %vm196_vm1, %v11036_v32 }
 0x121   : > { %9176 = vmatmul.mubr.msk.f32.gmra.mrb[28].mxu1 %vm196_vm1, %v11043_v34 }
 0x122   : > { %9178 = vmatprep.mubr.msk.f32.mxu1 %vm196_vm1, %v11046_v38 }
 0x125   : > { %9179 = vmatmul.mubr.msk.f32.gmra.mrb[30].mxu1 %vm196_vm1, %v11054_v4 }
 0x126   : > { %9181 = vmatprep.mubr.msk.f32.mxu1 %vm196_vm1, %v11056_v2 }
 0x129   : > { %9182 = vmatmul.mubr.msk.f32.gmra.mrb[32].mxu1 %vm196_vm1, %v11062_v33 }
 0x12a   : > { %9184 = vmatprep.mubr.msk.f32.mxu1 %vm196_vm1, %v11269_v7 }
 0x12d   : > { %9185 = vmatmul.mubr.msk.f32.gmra.mrb[34].mxu1 %vm196_vm1, %v11275_v9 }
 0x12e   : > { %9189 = vmatprep.mubr.msk.f32.mxu1 %vm196_vm1, %v10788_v28  ;;  %v12805_v28 = vld [vmem:[#allocation7_spill] sm:$0xff] }
 0x131   : > { %9190 = vmatmul.mubr.msk.f32.vlgmr.msra.gmra.mrb[4].mxu1 %vm196_vm1, %v10807_v35  ;;  %v12806_v35 = vld [vmem:[#allocation8_spill] sm:$0xff] }
 0x132   : > { %9238 = vmatpush3.msk.msra.mxu1 %vm440_vm0, %v7931_v63  ;;  %9192 = vmatprep.mubr.msk.f32.mxu1 %vm196_vm1, %v10812_v37  ;;  %v11342_v37 = vld [vmem:[#allocation2 + $0x208] sm:$0xff]  ;;  %v12818_v63 = vld [vmem:[#allocation21_spill] sm:$0xff] }
 0x133   : > { %9287 = vmatprep.subr.msk.mxu1 %vm440_vm0, %v7965_v5 }
 0x135   : > { %9193 = vmatmul.mubr.msk.f32.gmra.mrb[6].mxu1 %vm196_vm1, %v10822_v39  ;;  %v12807_v39 = vld [vmem:[#allocation9_spill] sm:$0xff] }
 0x136   : > { %9195 = vmatprep.mubr.msk.f32.mxu1 %vm196_vm1, %v10824_v40  ;;  %v11348_v40 = vld [vmem:[#allocation2 + $0x210] sm:$0xff] }
 0x139   : > { %9196 = vmatmul.mubr.msk.f32.gmra.mrb[8].mxu1 %vm196_vm1, %v10831_v41  ;;  %v12808_v41 = vld [vmem:[#allocation11_spill] sm:$0xff] }
 0x13a   : > { %9198 = vmatprep.mubr.msk.f32.mxu1 %vm196_vm1, %v10833_v42  ;;  %v7999_v42 = vld [vmem:[%s12649_s2 + $0x1c] sm:$0xf] }
 0x13d   : > { %9199 = vmatmul.mubr.msk.f32.gmra.mrb[10].mxu1 %vm196_vm1, %v10839_v43  ;;  %v12809_v43 = vld [vmem:[#allocation12_spill] sm:$0xff] }
 0x13e   : > { %9201 = vmatprep.mubr.msk.f32.mxu1 %vm196_vm1, %v10841_v44  ;;  %v12810_v44 = vld [vmem:[#allocation13_spill] sm:$0xff] }
 0x141   : > { %9202 = vmatmul.mubr.msk.f32.gmra.mrb[12].mxu1 %vm196_vm1, %v10847_v45  ;;  %v12811_v45 = vld [vmem:[#allocation14_spill] sm:$0xff] }
 0x142   : > { %9204 = vmatprep.mubr.msk.f32.mxu1 %vm196_vm1, %v10849_v46  ;;  %v12812_v46 = vld [vmem:[#allocation15_spill] sm:$0xff] }
 0x145   : > { %9205 = vmatmul.mubr.msk.f32.gmra.mrb[14].mxu1 %vm196_vm1, %v10855_v47  ;;  %v12813_v47 = vld [vmem:[#allocation16_spill] sm:$0xff] }
 0x146   : > { %9207 = vmatprep.mubr.msk.f32.mxu1 %vm196_vm1, %v10857_v48  ;;  %v12814_v48 = vld [vmem:[#allocation17_spill] sm:$0xff] }
 0x149   : > { %9208 = vmatmul.mubr.msk.f32.gmra.mrb[16].mxu1 %vm196_vm1, %v10863_v49  ;;  %v12815_v49 = vld [vmem:[#allocation18_spill] sm:$0xff] }
 0x14a   : > { %9210 = vmatprep.mubr.msk.f32.mxu1 %vm196_vm1, %v10865_v50  ;;  %v12816_v50 = vld [vmem:[#allocation19_spill] sm:$0xff] }
 0x14d   : > { %9211 = vmatmul.mubr.msk.f32.gmra.mrb[18].mxu1 %vm196_vm1, %v10871_v51  ;;  %v12817_v51 = vld [vmem:[#allocation20_spill] sm:$0xff] }
 0x14e   : > { %9213 = vmatprep.mubr.msk.f32.mxu1 %vm196_vm1, %v10873_v52 }
 0x151   : > { %9214 = vmatmul.mubr.msk.f32.gmra.mrb[20].mxu1 %vm196_vm1, %v10879_v53 }
 0x152   : > { %9216 = vmatprep.mubr.msk.f32.mxu1 %vm196_vm1, %v10881_v54 }
 0x155   : > { %9217 = vmatmul.mubr.msk.f32.gmra.mrb[22].mxu1 %vm196_vm1, %v10887_v55 }
 0x156   : > { %9219 = vmatprep.mubr.msk.f32.mxu1 %vm196_vm1, %v10889_v56 }
 0x159   : > { %9220 = vmatmul.mubr.msk.f32.gmra.mrb[24].mxu1 %vm196_vm1, %v10895_v57 }
 0x15a   : > { %9222 = vmatprep.mubr.msk.f32.mxu1 %vm196_vm1, %v10897_v58 }
 0x15d   : > { %9223 = vmatmul.mubr.msk.f32.gmra.mrb[26].mxu1 %vm196_vm1, %v10903_v59 }
 0x15e   : > { %9225 = vmatprep.mubr.msk.f32.mxu1 %vm196_vm1, %v10905_v60 }
 0x161   : > { %9226 = vmatmul.mubr.msk.f32.gmra.mrb[28].mxu1 %vm196_vm1, %v10911_v61 }
 0x162   : > { %9228 = vmatprep.mubr.msk.f32.mxu1 %vm196_vm1, %v10913_v62 }
 0x165   : > { %9229 = vmatmul.mubr.msk.f32.gmra.mrb[30].mxu1 %vm196_vm1, %v12805_v28 }
 0x166   : > { %9231 = vmatprep.mubr.msk.f32.mxu1 %vm196_vm1, %v12806_v35 }
 0x169   : > { %9232 = vmatmul.mubr.msk.f32.gmra.mrb[32].mxu1 %vm196_vm1, %v12807_v39 }
 0x16a   : > { %9234 = vmatprep.mubr.msk.f32.mxu1 %vm196_vm1, %v11342_v37 }
 0x16d   : > { %9235 = vmatmul.mubr.msk.f32.gmra.mrb[34].mxu1 %vm196_vm1, %v11348_v40 }
 0x16e   : > { %9239 = vmatprep.mubr.msk.f32.mxu1 %vm196_vm1, %v12808_v41  ;;  %v12820_v41 = vld [vmem:[#allocation23_spill] sm:$0xff] }
 0x171   : > { %9240 = vmatmul.mubr.msk.f32.vlgmr.msra.gmra.mrb[4].mxu1 %vm196_vm1, %v12809_v43  ;;  %v12821_v43 = vld [vmem:[#allocation24_spill] sm:$0xff] }
 0x172   : > { %9288 = vmatpush3.msk.msra.mxu1 %vm440_vm0, %v7965_v5  ;;  %9242 = vmatprep.mubr.msk.f32.mxu1 %vm196_vm1, %v12810_v44  ;;  %v12819_v5 = vld [vmem:[#allocation22_spill] sm:$0xff] }
 0x173   : > { %9337 = vmatprep.subr.msk.mxu1 %vm440_vm0, %v7999_v42 }
 0x175   : > { %9243 = vmatmul.mubr.msk.f32.gmra.mrb[6].mxu1 %vm196_vm1, %v12811_v45 }
 0x176   : > { %9245 = vmatprep.mubr.msk.f32.mxu1 %vm196_vm1, %v12812_v46 }
 0x179   : > { %9246 = vmatmul.mubr.msk.f32.gmra.mrb[8].mxu1 %vm196_vm1, %v12813_v47 }
 0x17a   : > { %9248 = vmatprep.mubr.msk.f32.mxu1 %vm196_vm1, %v12814_v48 }
 0x17d   : > { %9249 = vmatmul.mubr.msk.f32.gmra.mrb[10].mxu1 %vm196_vm1, %v12815_v49  ;;  %v12823_v49 = vld [vmem:[#allocation26_spill] sm:$0xff] }
 0x17e   : > { %9251 = vmatprep.mubr.msk.f32.mxu1 %vm196_vm1, %v12816_v50  ;;  %v12824_v50 = vld [vmem:[#allocation27_spill] sm:$0xff] }
 0x181   : > { %9252 = vmatmul.mubr.msk.f32.gmra.mrb[12].mxu1 %vm196_vm1, %v12817_v51  ;;  %v12825_v51 = vld [vmem:[#allocation28_spill] sm:$0xff] }
 0x182   : > { %9254 = vmatprep.mubr.msk.f32.mxu1 %vm196_vm1, %v12818_v63  ;;  %v12826_v63 = vld [vmem:[#allocation29_spill] sm:$0xff] }
 0x185   : > { %9255 = vmatmul.mubr.msk.f32.gmra.mrb[14].mxu1 %vm196_vm1, %v12819_v5  ;;  %v12827_v5 = vld [vmem:[#allocation30_spill] sm:$0xff] }
 0x186   : > { %9257 = vmatprep.mubr.msk.f32.mxu1 %vm196_vm1, %v12820_v41  ;;  %v12828_v41 = vld [vmem:[#allocation31_spill] sm:$0xff] }
 0x189   : > { %9258 = vmatmul.mubr.msk.f32.gmra.mrb[16].mxu1 %vm196_vm1, %v12821_v43  ;;  %v12829_v43 = vld [vmem:[#allocation32_spill] sm:$0xff] }
 0x18a   : > { %9260 = vmatprep.mubr.msk.f32.mxu1 %vm196_vm1, %v12822_v1  ;;  %v12830_v1 = vld [vmem:[#allocation33_spill] sm:$0xff] }
 0x18d   : > { %9261 = vmatmul.mubr.msk.f32.gmra.mrb[18].mxu1 %vm196_vm1, %v12823_v49 }
 0x18e   : > { %9263 = vmatprep.mubr.msk.f32.mxu1 %vm196_vm1, %v12824_v50  ;;  %v12831_v50 = vld [vmem:[#allocation34_spill] sm:$0xff] }
 0x191   : > { %9264 = vmatmul.mubr.msk.f32.gmra.mrb[20].mxu1 %vm196_vm1, %v12825_v51 }
 0x192   : > { %9266 = vmatprep.mubr.msk.f32.mxu1 %vm196_vm1, %v12826_v63  ;;  %v12832_v63 = vld [vmem:[#allocation35_spill] sm:$0xff] }
 0x195   : > { %9267 = vmatmul.mubr.msk.f32.gmra.mrb[22].mxu1 %vm196_vm1, %v12827_v5 }
 0x196   : > { %9269 = vmatprep.mubr.msk.f32.mxu1 %vm196_vm1, %v12828_v41 }
 0x199   : > { %9270 = vmatmul.mubr.msk.f32.gmra.mrb[24].mxu1 %vm196_vm1, %v12829_v43  ;;  %v11415_v43 = vld [vmem:[#allocation2 + $0x209] sm:$0xff] }
 0x19a   : > { %9272 = vmatprep.mubr.msk.f32.mxu1 %vm196_vm1, %v12830_v1 }
 0x19d   : > { %9273 = vmatmul.mubr.msk.f32.gmra.mrb[26].mxu1 %vm196_vm1, %v11169_v3 }
 0x19e   : > { %9275 = vmatprep.mubr.msk.f32.mxu1 %vm196_vm1, %v12831_v50  ;;  %v11421_v50 = vld [vmem:[#allocation2 + $0x211] sm:$0xff] }
 0x1a1   : > { %9276 = vmatmul.mubr.msk.f32.gmra.mrb[28].mxu1 %vm196_vm1, %v11177_v0 }
 0x1a2   : > { %9278 = vmatprep.mubr.msk.f32.mxu1 %vm196_vm1, %v12832_v63 }
 0x1a5   : > { %9279 = vmatmul.mubr.msk.f32.gmra.mrb[30].mxu1 %vm196_vm1, %v11185_v36  ;;  %v12833_v36 = vld [vmem:[#allocation10_spill] sm:$0xff] }
 0x1a6   : > { %9281 = vmatprep.mubr.msk.f32.mxu1 %vm196_vm1, %v11187_v31  ;;  %v11430_v31 = vld [vmem:[%s12649_s2 + $0x20] sm:$0xf] }
 0x1a9   : > { %9282 = vmatmul.mubr.msk.f32.gmra.mrb[32].mxu1 %vm196_vm1, %v11193_v6 }
 0x1aa   : > { %9284 = vmatprep.mubr.msk.f32.mxu1 %vm196_vm1, %v11415_v43 }
 0x1ad   : > { %9285 = vmatmul.mubr.msk.f32.gmra.mrb[34].mxu1 %vm196_vm1, %v11421_v50 }
 0x1ae   : > { %9289 = vmatprep.mubr.msk.f32.mxu1 %vm196_vm1, %v10946_v8  ;;  %v2920_v8 = vld [vmem:[#allocation2 + $0x227] sm:$0xff] }
 0x1b1   : > { %9290 = vmatmul.mubr.msk.f32.vlgmr.msra.gmra.mrb[4].mxu1 %vm196_vm1, %v12833_v36 }
 0x1b2   : > { %9338 = vmatpush3.msk.msra.mxu1 %vm440_vm0, %v7999_v42  ;;  %9292 = vmatprep.mubr.msk.f32.mxu1 %vm196_vm1, %v10956_v10  ;;  %v2921_v10 = vld [vmem:[#allocation2 + $0x22f] sm:$0xff] }
 0x1b3   : > { %9387 = vmatprep.subr.msk.mxu1 %vm440_vm0, %v11430_v31  ;;  %v7743_v42 = vld [vmem:[%s10709_s9 + $0x61] ss:$2 sm:$0xff] }
 0x1b5   : > { %9293 = vmatmul.mubr.msk.f32.gmra.mrb[6].mxu1 %vm196_vm1, %v10962_v11  ;;  %v3280_v11 = vld [vmem:[#allocation2 + $0x48] sm:$0xff] }
 0x1b6   : > { %9295 = vmatprep.mubr.msk.f32.mxu1 %vm196_vm1, %v10964_v12  ;;  %v3281_v12 = vld [vmem:[#allocation2 + $0x50] sm:$0xff] }
 0x1b9   : > { %9296 = vmatmul.mubr.msk.f32.gmra.mrb[8].mxu1 %vm196_vm1, %v10970_v13  ;;  %v320_v13 = vld [vmem:[%s10709_s9] ss:$2 sm:$0xff] }
 0x1ba   : > { %9298 = vmatprep.mubr.msk.f32.mxu1 %vm196_vm1, %v10972_v14  ;;  %v7722_v14 = vld [vmem:[%s10709_s9 + $0x10] ss:$2 sm:$0xff] }
 0x1bd   : > { %9299 = vmatmul.mubr.msk.f32.gmra.mrb[10].mxu1 %vm196_vm1, %v10978_v15  ;;  %v7737_v15 = vld [vmem:[%s10709_s9 + $0x1] ss:$2 sm:$0xff] }
 0x1be   : > { %9301 = vmatprep.mubr.msk.f32.mxu1 %vm196_vm1, %v10980_v16  ;;  %v383_v16 = vadd.f32 %v7737_v15, %v320_v13 }
 0x1c1   : > { %9302 = vmatmul.mubr.msk.f32.gmra.mrb[12].mxu1 %vm196_vm1, %v10986_v17  ;;  %v7723_v17 = vld [vmem:[%s10709_s9 + $0x20] ss:$2 sm:$0xff] }
 0x1c2   : > { %9304 = vmatprep.mubr.msk.f32.mxu1 %vm196_vm1, %v10988_v18  ;;  %v7724_v18 = vld [vmem:[%s10709_s9 + $0x30] ss:$2 sm:$0xff] }
 0x1c5   : > { %9305 = vmatmul.mubr.msk.f32.gmra.mrb[14].mxu1 %vm196_vm1, %v10994_v19 }
 0x1c6   : > { %9307 = vmatprep.mubr.msk.f32.mxu1 %vm196_vm1, %v10996_v20  ;;  %v7739_v20 = vld [vmem:[%s10709_s9 + $0x21] ss:$2 sm:$0xff] }
 0x1c9   : > { %9308 = vmatmul.mubr.msk.f32.gmra.mrb[16].mxu1 %vm196_vm1, %v11002_v21  ;;  %v7740_v21 = vld [vmem:[%s10709_s9 + $0x31] ss:$2 sm:$0xff] }
 0x1ca   : > { %9310 = vmatprep.mubr.msk.f32.mxu1 %vm196_vm1, %v11004_v22  ;;  %v11509_v22 = vld [vmem:[%s12650_s3 + $0x8] sm:$0xff] }
 0x1cb   : > { %9437 = vmatprep.subr.mxu0 %v11509_v22 }
 0x1cd   : > { %9311 = vmatmul.mubr.msk.f32.gmra.mrb[18].mxu1 %vm196_vm1, %v11010_v23  ;;  %v385_v23 = vadd.f32 %v7739_v20, %v7723_v17  ;;  %v3289_v20 = vld [vmem:[#allocation2 + $0xd0] sm:$0xff] }
 0x1ce   : > { %9313 = vmatprep.mubr.msk.f32.mxu1 %vm196_vm1, %v11012_v24  ;;  %v386_v24 = vadd.f32 %v7740_v21, %v7724_v18  ;;  %v3287_v18 = vld [vmem:[#allocation2 + $0xb0] sm:$0xff]  ;;  %v3290_v21 = vld [vmem:[#allocation2 + $0xe8] sm:$0xff] }
 0x1d0   : > { %v400_v36 = vadd.f32 %v386_v24, %v385_v23  ;;  %v3292_v23 = vld [vmem:[#allocation2 + $0x108] sm:$0xff]  ;;  %v3293_v24 = vld [vmem:[#allocation2 + $0x110] sm:$0xff] }
 0x1d1   : > { %9314 = vmatmul.mubr.msk.f32.gmra.mrb[20].mxu1 %vm196_vm1, %v11018_v25  ;;  %v7725_v25 = vld [vmem:[%s10709_s9 + $0x40] ss:$2 sm:$0xff] }
 0x1d2   : > { %9316 = vmatprep.mubr.msk.f32.mxu1 %vm196_vm1, %v11020_v26  ;;  %v7726_v26 = vld [vmem:[%s10709_s9 + $0x50] ss:$2 sm:$0xff] }
 0x1d5   : > { %9317 = vmatmul.mubr.msk.f32.gmra.mrb[22].mxu1 %vm196_vm1, %v11026_v27  ;;  %v7741_v27 = vld [vmem:[%s10709_s9 + $0x41] ss:$2 sm:$0xff] }
 0x1d6   : > { %9319 = vmatprep.mubr.msk.f32.mxu1 %vm196_vm1, %v11028_v29  ;;  %v12834_v29 = vmov 0.0  }
 0x1d7   : > { %243 = vst.msk [vmem:[#allocation3] sm:$0xff] %vm242_vm2, %v12834_v29  ;;  %244 = vst.msk [vmem:[#allocation3 + $0x8] sm:$0xff] %vm242_vm2, %v12834_v29 }
 0x1d8   : > { %245 = vst.msk [vmem:[#allocation3 + $0x10] sm:$0xff] %vm242_vm2, %v12834_v29  ;;  %246 = vst.msk [vmem:[#allocation3 + $0x18] sm:$0xff] %vm242_vm2, %v12834_v29 }
 0x1d9   : > { %9320 = vmatmul.mubr.msk.f32.gmra.mrb[24].mxu1 %vm196_vm1, %v11034_v30  ;;  %248 = vst.msk [vmem:[#allocation3 + $0x220] sm:$0xff] %vm242_vm2, %v12834_v29  ;;  %249 = vst.msk [vmem:[#allocation3 + $0x228] sm:$0xff] %vm242_vm2, %v12834_v29 }
 0x1da   : > { %9322 = vmatprep.mubr.msk.f32.mxu1 %vm196_vm1, %v11036_v32  ;;  %250 = vst.msk [vmem:[#allocation3 + $0x230] sm:$0xff] %vm242_vm2, %v12834_v29  ;;  %251 = vst.msk [vmem:[#allocation3 + $0x238] sm:$0xff] %vm242_vm2, %v12834_v29  ;;  %v7742_v32 = vld [vmem:[%s10709_s9 + $0x51] ss:$2 sm:$0xff] }
 0x1db   : > { %253 = vst.msk [vmem:[#allocation3 + $0x20] sm:$0xff] %vm242_vm2, %v12834_v29  ;;  %254 = vst.msk [vmem:[#allocation3 + $0x40] sm:$0xff] %vm242_vm2, %v12834_v29 }
 0x1dc   : > { %255 = vst.msk [vmem:[#allocation3 + $0x60] sm:$0xff] %vm242_vm2, %v12834_v29  ;;  %256 = vst.msk [vmem:[#allocation3 + $0x80] sm:$0xff] %vm242_vm2, %v12834_v29 }
 0x1dd   : > { %9323 = vmatmul.mubr.msk.f32.gmra.mrb[26].mxu1 %vm196_vm1, %v11043_v34  ;;  %257 = vst.msk [vmem:[#allocation3 + $0xa0] sm:$0xff] %vm242_vm2, %v12834_v29  ;;  %258 = vst.msk [vmem:[#allocation3 + $0xc0] sm:$0xff] %vm242_vm2, %v12834_v29  ;;  %v387_v34 = vadd.f32 %v7741_v27, %v7725_v25 }
 0x1de   : > { %9325 = vmatprep.mubr.msk.f32.mxu1 %vm196_vm1, %v11046_v38  ;;  %259 = vst.msk [vmem:[#allocation3 + $0xe0] sm:$0xff] %vm242_vm2, %v12834_v29  ;;  %260 = vst.msk [vmem:[#allocation3 + $0x100] sm:$0xff] %vm242_vm2, %v12834_v29  ;;  %v7727_v38 = vld [vmem:[%s10709_s9 + $0x60] ss:$2 sm:$0xff] }
 0x1df   : > { %261 = vst.msk [vmem:[#allocation3 + $0x120] sm:$0xff] %vm242_vm2, %v12834_v29  ;;  %262 = vst.msk [vmem:[#allocation3 + $0x140] sm:$0xff] %vm242_vm2, %v12834_v29 }
 0x1e0   : > { %263 = vst.msk [vmem:[#allocation3 + $0x160] sm:$0xff] %vm242_vm2, %v12834_v29  ;;  %264 = vst.msk [vmem:[#allocation3 + $0x180] sm:$0xff] %vm242_vm2, %v12834_v29 }
 0x1e1   : > { %9326 = vmatmul.mubr.msk.f32.gmra.mrb[28].mxu1 %vm196_vm1, %v11054_v4  ;;  %265 = vst.msk [vmem:[#allocation3 + $0x1a0] sm:$0xff] %vm242_vm2, %v12834_v29  ;;  %266 = vst.msk [vmem:[#allocation3 + $0x1c0] sm:$0xff] %vm242_vm2, %v12834_v29  ;;  %v7728_v4 = vld [vmem:[%s10709_s9 + $0x70] ss:$2 sm:$0xff] }
 0x1e2   : > { %9328 = vmatprep.mubr.msk.f32.mxu1 %vm196_vm1, %v11056_v2  ;;  %v11495_v2 = vld [vmem:[#allocation2 + $0x68] sm:$0xff]  ;;  %267 = vst.msk [vmem:[#allocation3 + $0x1e0] sm:$0xff] %vm242_vm2, %v12834_v29  ;;  %268 = vst.msk [vmem:[#allocation3 + $0x200] sm:$0xff] %vm242_vm2, %v12834_v29 }
 0x1e3   : > { %271 = vst.msk [vmem:[#allocation3 + $0x38] sm:$0xff] %vm242_vm2, %v12834_v29  ;;  %272 = vst.msk [vmem:[#allocation3 + $0x58] sm:$0xff] %vm242_vm2, %v12834_v29 }
 0x1e4   : > { %273 = vst.msk [vmem:[#allocation3 + $0x78] sm:$0xff] %vm242_vm2, %v12834_v29  ;;  %274 = vst.msk [vmem:[#allocation3 + $0x98] sm:$0xff] %vm242_vm2, %v12834_v29 }
 0x1e5   : > { %9329 = vmatmul.mubr.msk.f32.gmra.mrb[30].mxu1 %vm196_vm1, %v11062_v33  ;;  %275 = vst.msk [vmem:[#allocation3 + $0xb8] sm:$0xff] %vm242_vm2, %v12834_v29  ;;  %276 = vst.msk [vmem:[#allocation3 + $0xd8] sm:$0xff] %vm242_vm2, %v12834_v29  ;;  %v3283_v33 = vld [vmem:[#allocation2 + $0x70] sm:$0xff] }
 0x1e6   : > { %9331 = vmatprep.mubr.msk.f32.mxu1 %vm196_vm1, %v11269_v7  ;;  %277 = vst.msk [vmem:[#allocation3 + $0xf8] sm:$0xff] %vm242_vm2, %v12834_v29  ;;  %278 = vst.msk [vmem:[#allocation3 + $0x118] sm:$0xff] %vm242_vm2, %v12834_v29  ;;  %v388_v7 = vadd.f32 %v7742_v32, %v7726_v26 }
 0x1e7   : > { %279 = vst.msk [vmem:[#allocation3 + $0x138] sm:$0xff] %vm242_vm2, %v12834_v29  ;;  %280 = vst.msk [vmem:[#allocation3 + $0x158] sm:$0xff] %vm242_vm2, %v12834_v29 }
 0x1e8   : > { %281 = vst.msk [vmem:[#allocation3 + $0x178] sm:$0xff] %vm242_vm2, %v12834_v29  ;;  %282 = vst.msk [vmem:[#allocation3 + $0x198] sm:$0xff] %vm242_vm2, %v12834_v29  ;;  %v401_v15 = vadd.f32 %v388_v7, %v387_v34 }
 0x1e9   : > { %9332 = vmatmul.mubr.msk.f32.gmra.mrb[32].mxu1 %vm196_vm1, %v11275_v9  ;;  %v7738_v9 = vld [vmem:[%s10709_s9 + $0x11] ss:$2 sm:$0xff]  ;;  %283 = vst.msk [vmem:[#allocation3 + $0x1b8] sm:$0xff] %vm242_vm2, %v12834_v29  ;;  %284 = vst.msk [vmem:[#allocation3 + $0x1d8] sm:$0xff] %vm242_vm2, %v12834_v29 }
 0x1ea   : > { %9334 = vmatprep.mubr.msk.f32.mxu1 %vm196_vm1, %v2920_v8  ;;  %v384_v19 = vadd.f32 %v7738_v9, %v7722_v14  ;;  %285 = vst.msk [vmem:[#allocation3 + $0x1f8] sm:$0xff] %vm242_vm2, %v12834_v29  ;;  %286 = vst.msk [vmem:[#allocation3 + $0x218] sm:$0xff] %vm242_vm2, %v12834_v29  ;;  %v7744_v8 = vld [vmem:[%s10709_s9 + $0x71] ss:$2 sm:$0xff]  ;;  %v408_v14 = vmul.f32 0.25, %v400_v36  ;;  %s7719_s9 = sshll.u32 %s188_s11, 6 }
 0x1eb   : > { %252 = vst.msk [vmem:[#allocation3] sm:$0xff] %vm242_vm2, %v12834_v29  ;;  %269 = vst.msk [vmem:[#allocation3 + $0x220] sm:$0xff] %vm242_vm2, %v12834_v29  ;;  %v390_v13 = vadd.f32 %v7744_v8, %v7728_v4  ;;  %s12558_s12 = scalar_lea.vmem [#allocation4], %s7719_s9 }
 0x1ec   : > { %v399_v30 = vadd.f32 %v384_v19, %v383_v16  ;;  %270 = vst.msk [vmem:[#allocation3 + $0x18] sm:$0xff] %vm242_vm2, %v12834_v29  ;;  %287 = vst.msk [vmem:[#allocation3 + $0x238] sm:$0xff] %vm242_vm2, %v12834_v29  ;;  %v3286_v16 = vld [vmem:[#allocation2 + $0xa8] sm:$0xff]  ;;  %s7653_s14 = sshll.u32 %s12558_s12, 4  ;;  %s12599_s14 = int_to_ptr.vmem [resolvable:$true] %s7653_s14 }
 0x1ed   : > { %9335 = vmatmul.mubr.msk.f32.gmra.mrb[34].mxu1 %vm196_vm1, %v2921_v10  ;;  %v3284_v10 = vld [vmem:[#allocation2 + $0x88] sm:$0xff]  ;;  %s10459_s19 = scalar_lea.vmem %s12599_s14, 1024  ;;  %p10466_p0 = scmp.lt.s32.totalorder %s12599_s14, %s10464_s29 }
 0x1ee   : > { %9339 = vmatprep.mubr.msk.f32.mxu1 %vm196_vm1, %v3280_v11  ;;  %v407_v11 = vmul.f32 0.25, %v399_v30  ;;  %v3288_v19 = vld [vmem:[#allocation2 + $0xc8] sm:$0xff]  ;;  %p10460_p11 = scmp.ne.s32.totalorder %s12599_s14, %s10459_s19  ;;  %p10467_p1 = scmp.lt.s32.totalorder %s10465_s30, %s10459_s19 }
 0x1f0   : > { %8975 = vmatprep.mubr.msk.f32.mxu0 %vm196_vm1, %v407_v11  ;;  %p10461_p12 = pnand %p10460_p11, %p10590_p5  ;;  %p10468_p2 = por %p10467_p1, %p10466_p0 }
 0x1f1   : > { %9340 = vmatmul.mubr.msk.f32.vlgmr.msra.gmra.mrb[4].mxu1 %vm196_vm1, %v3281_v12  ;;  %v389_v12 = vadd.f32 %v7743_v42, %v7727_v38  ;;  %8976 = vmatmul.mubr.msk.f32.vlgmr.msra.gmra.mrb[0].mxu0 %vm196_vm1, %v408_v14 }
 0x1f2   : > { %9388 = vmatpush3.msk.msra.mxu1 %vm440_vm0, %v11430_v31  ;;  %9342 = vmatprep.mubr.msk.f32.mxu1 %vm196_vm1, %v11495_v2  ;;  %v3285_v31 = vld [vmem:[#allocation2 + $0x90] sm:$0xff]  ;;  %v409_v2 = vmul.f32 0.25, %v401_v15  ;;  %p10462_p13 = pneg %p10461_p12 }
 0x1f3   : > { %v402_v9 = vadd.f32 %v390_v13, %v389_v12  ;;  %9438 = vmatpush3.msra.mxu0 %v11509_v22  ;;  %v3291_v22 = vld [vmem:[#allocation2 + $0xf0] sm:$0xff] }
 0x1f4   : > { %8978 = vmatprep.mubr.msk.f32.mxu0 %vm196_vm1, %v409_v2  ;;  %p10469_p3 = pnand %p10468_p2, %p10462_p13 }
 0x1f5   : > { %9343 = vmatmul.mubr.msk.f32.gmra.mrb[6].mxu1 %vm196_vm1, %v3283_v33  ;;  %v410_v17 = vmul.f32 0.25, %v402_v9 }
 0x1f6   : > { %9345 = vmatprep.mubr.msk.f32.mxu1 %vm196_vm1, %v3284_v10 }
 0x1f7   : > { %8979 = vmatmul.mubr.msk.f32.gmra.mrb[2].mxu0 %vm196_vm1, %v410_v17 }
 0x1f9   : > { %9346 = vmatmul.mubr.msk.f32.gmra.mrb[8].mxu1 %vm196_vm1, %v3285_v31 }
 0x1fa   : > { %9348 = vmatprep.mubr.msk.f32.mxu1 %vm196_vm1, %v3286_v16 }
 0x1fd   : > { %9349 = vmatmul.mubr.msk.f32.gmra.mrb[10].mxu1 %vm196_vm1, %v3287_v18 }
 0x1fe   : > { %9351 = vmatprep.mubr.msk.f32.mxu1 %vm196_vm1, %v3288_v19 }
 0x201   : > { %9352 = vmatmul.mubr.msk.f32.gmra.mrb[12].mxu1 %vm196_vm1, %v3289_v20 }
 0x202   : > { %9354 = vmatprep.mubr.msk.f32.mxu1 %vm196_vm1, %v3290_v21 }
 0x205   : > { %9355 = vmatmul.mubr.msk.f32.gmra.mrb[14].mxu1 %vm196_vm1, %v3291_v22 }
 0x206   : > { %9357 = vmatprep.mubr.msk.f32.mxu1 %vm196_vm1, %v3292_v23 }
 0x209   : > { %9358 = vmatmul.mubr.msk.f32.gmra.mrb[16].mxu1 %vm196_vm1, %v3293_v24 }
 0x20a   : > { %9360 = vmatprep.mubr.msk.f32.mxu1 %vm196_vm1, %v10873_v52  ;;  %v3310_v52 = vld [vmem:[#allocation2 + $0x228] sm:$0xff] }
 0x20d   : > { %9361 = vmatmul.mubr.msk.f32.gmra.mrb[18].mxu1 %vm196_vm1, %v10879_v53  ;;  %v3311_v53 = vld [vmem:[#allocation2 + $0x230] sm:$0xff] }
 0x20e   : > { %9363 = vmatprep.mubr.msk.f32.mxu1 %vm196_vm1, %v10881_v54  ;;  %v12835_v54 = vld [vmem:[#allocation18_spill] sm:$0xff] }
 0x211   : > { %9364 = vmatmul.mubr.msk.f32.gmra.mrb[20].mxu1 %vm196_vm1, %v10887_v55  ;;  %v12836_v55 = vld [vmem:[#allocation19_spill] sm:$0xff] }
 0x212   : > { %9366 = vmatprep.mubr.msk.f32.mxu1 %vm196_vm1, %v10889_v56  ;;  %v12837_v56 = vld [vmem:[#allocation20_spill] sm:$0xff] }
 0x215   : > { %9367 = vmatmul.mubr.msk.f32.gmra.mrb[22].mxu1 %vm196_vm1, %v10895_v57  ;;  %v12838_v57 = vld [vmem:[#allocation21_spill] sm:$0xff] }
 0x216   : > { %9369 = vmatprep.mubr.msk.f32.mxu1 %vm196_vm1, %v10897_v58  ;;  %v12839_v58 = vld [vmem:[#allocation22_spill] sm:$0xff] }
 0x219   : > { %9370 = vmatmul.mubr.msk.f32.gmra.mrb[24].mxu1 %vm196_vm1, %v10903_v59  ;;  %v12840_v59 = vld [vmem:[#allocation23_spill] sm:$0xff] }
 0x21a   : > { %9372 = vmatprep.mubr.msk.f32.mxu1 %vm196_vm1, %v10905_v60  ;;  %v12841_v60 = vld [vmem:[#allocation24_spill] sm:$0xff] }
 0x21d   : > { %9373 = vmatmul.mubr.msk.f32.gmra.mrb[26].mxu1 %vm196_vm1, %v10911_v61  ;;  %v12842_v61 = vld [vmem:[#allocation25_spill] sm:$0xff] }
 0x21e   : > { %9375 = vmatprep.mubr.msk.f32.mxu1 %vm196_vm1, %v10913_v62  ;;  %v12843_v62 = vld [vmem:[#allocation27_spill] sm:$0xff] }
 0x221   : > { %9376 = vmatmul.mubr.msk.f32.gmra.mrb[28].mxu1 %vm196_vm1, %v12805_v28  ;;  %v12844_v28 = vld [vmem:[#allocation29_spill] sm:$0xff] }
 0x222   : > { %9378 = vmatprep.mubr.msk.f32.mxu1 %vm196_vm1, %v12806_v35  ;;  %v12845_v35 = vld [vmem:[#allocation32_spill] sm:$0xff] }
 0x225   : > { %9379 = vmatmul.mubr.msk.f32.gmra.mrb[30].mxu1 %vm196_vm1, %v12807_v39  ;;  %v12847_v39 = vld [vmem:[#allocation36_spill] sm:$0xff] }
 0x226   : > { %9381 = vmatprep.mubr.msk.f32.mxu1 %vm196_vm1, %v11342_v37  ;;  %v12846_v37 = vld [vmem:[#allocation34_spill] sm:$0xff] }
 0x229   : > { %9382 = vmatmul.mubr.msk.f32.gmra.mrb[32].mxu1 %vm196_vm1, %v11348_v40  ;;  %v12848_v40 = vld [vmem:[#allocation37_spill] sm:$0xff] }
 0x22a   : > { %9384 = vmatprep.mubr.msk.f32.mxu1 %vm196_vm1, %v3310_v52 }
 0x22d   : > { %9385 = vmatmul.mubr.msk.f32.gmra.mrb[34].mxu1 %vm196_vm1, %v3311_v53 }
 0x22e   : > { %9389 = vmatprep.mubr.msk.f32.mxu1 %vm196_vm1, %v12810_v44  ;;  %v4159_v44 = vld [vmem:[#allocation3 + $0x10] sm:$0xff] }
 0x231   : > { %9390 = vmatmul.mubr.msk.f32.vlgmr.msra.gmra.mrb[4].mxu1 %vm196_vm1, %v12811_v45  ;;  %v11733_v45 = vld [vmem:[%s12650_s3 + $0x10] sm:$0xff] }
 0x232   : > { %9392 = vmatprep.mubr.msk.f32.mxu1 %vm196_vm1, %v12812_v46 }
 0x235   : > { %9393 = vmatmul.mubr.msk.f32.gmra.mrb[6].mxu1 %vm196_vm1, %v12813_v47 }
 0x236   : > { %9395 = vmatprep.mubr.msk.f32.mxu1 %vm196_vm1, %v12814_v48 }
 0x239   : > { %9396 = vmatmul.mubr.msk.f32.gmra.mrb[8].mxu1 %vm196_vm1, %v12835_v54 }
 0x23a   : > { %9398 = vmatprep.mubr.msk.f32.mxu1 %vm196_vm1, %v12836_v55 }
 0x23d   : > { %9399 = vmatmul.mubr.msk.f32.gmra.mrb[10].mxu1 %vm196_vm1, %v12837_v56 }
 0x23e   : > { %9401 = vmatprep.mubr.msk.f32.mxu1 %vm196_vm1, %v12838_v57 }
 0x241   : > { %9402 = vmatmul.mubr.msk.f32.gmra.mrb[12].mxu1 %vm196_vm1, %v12839_v58 }
 0x242   : > { %9404 = vmatprep.mubr.msk.f32.mxu1 %vm196_vm1, %v12840_v59 }
 0x245   : > { %9405 = vmatmul.mubr.msk.f32.gmra.mrb[14].mxu1 %vm196_vm1, %v12841_v60 }
 0x246   : > { %9407 = vmatprep.mubr.msk.f32.mxu1 %vm196_vm1, %v12842_v61 }
 0x249   : > { %9408 = vmatmul.mubr.msk.f32.gmra.mrb[16].mxu1 %vm196_vm1, %v12823_v49 }
 0x24a   : > { %9410 = vmatprep.mubr.msk.f32.mxu1 %vm196_vm1, %v12843_v62 }
 0x24d   : > { %9411 = vmatmul.mubr.msk.f32.gmra.mrb[18].mxu1 %vm196_vm1, %v12825_v51 }
 0x24e   : > { %9413 = vmatprep.mubr.msk.f32.mxu1 %vm196_vm1, %v12844_v28 }
 0x251   : > { %9414 = vmatmul.mubr.msk.f32.gmra.mrb[20].mxu1 %vm196_vm1, %v12827_v5 }
 0x252   : > { %9416 = vmatprep.mubr.msk.f32.mxu1 %vm196_vm1, %v12828_v41 }
 0x255   : > { %9417 = vmatmul.mubr.msk.f32.gmra.mrb[22].mxu1 %vm196_vm1, %v12845_v35 }
 0x256   : > { %9419 = vmatprep.mubr.msk.f32.mxu1 %vm196_vm1, %v12830_v1  ;;  %v4158_v1 = vld [vmem:[#allocation3 + $0x8] sm:$0xff] }
 0x257   : > { %9439 = vmatprep.mubr.msk.f32.mxu0 %vm242_vm2, %v4158_v1 }
 0x258   : > { %9440 = vmatmul.mubr.msk.f32.vlgmr.msra.gmra.mrb[4].mxu0 %vm242_vm2, %v4159_v44 }
 0x259   : > { %9420 = vmatmul.mubr.msk.f32.gmra.mrb[24].mxu1 %vm196_vm1, %v11169_v3  ;;  %v3700_v3 = vld [vmem:[#allocation2 + $0x229] sm:$0xff] }
 0x25a   : > { %9422 = vmatprep.mubr.msk.f32.mxu1 %vm196_vm1, %v12846_v37 }
 0x25d   : > { %9423 = vmatmul.mubr.msk.f32.gmra.mrb[26].mxu1 %vm196_vm1, %v11177_v0  ;;  %v3701_v0 = vld [vmem:[#allocation2 + $0x231] sm:$0xff] }
 0x25e   : > { %9425 = vmatprep.mubr.msk.f32.mxu1 %vm196_vm1, %v12832_v63 }
 0x261   : > { %9426 = vmatmul.mubr.msk.f32.gmra.mrb[28].mxu1 %vm196_vm1, %v12847_v39 }
 0x262   : > { %9428 = vmatprep.mubr.msk.f32.mxu1 %vm196_vm1, %v12848_v40 }
 0x265   : > { %9429 = vmatmul.mubr.msk.f32.gmra.mrb[30].mxu1 %vm196_vm1, %v11193_v6  ;;  %v4157_v6 = vld [vmem:[%s12650_s3] sm:$0xff] }
 0x266   : > { %9431 = vmatprep.mubr.msk.f32.mxu1 %vm196_vm1, %v11415_v43  ;;  %9487 = vmatprep.subr.mxu0 %v4157_v6 }
 0x267   : > { %9488 = vmatpush3.msra.mxu0 %v4157_v6 }
 0x268   : > { %9537 = vmatprep.subr.mxu0 %v11733_v45 }
 0x269   : > { %9432 = vmatmul.mubr.msk.f32.gmra.mrb[32].mxu1 %vm196_vm1, %v11421_v50 }
 0x26a   : > { %9434 = vmatprep.mubr.msk.f32.mxu1 %vm196_vm1, %v3700_v3 }
 0x26d   : > { %9435 = vmatmul.mubr.msk.f32.gmra.mrb[34].mxu1 %vm196_vm1, %v3701_v0 }
 0x304   : > { %v9391_v46 = vpop.f32.mrb[4].mxu1 }
 0x305   : > { %v4061_v47 = vmax.f32 %v9391_v46, 0.0  ;;  %v3869_v48 = vpop.f32.mrb[5].mxu1 }
 0x306   : > { %v4060_v49 = vmax.f32 %v3869_v48, 0.0 }
 0x307   : > { %4094 = vst.msk [vmem:[#allocation3 + $0x30] sm:$0xff] %vm242_vm2, %v4061_v47 }
 0x308   : > { %4093 = vst.msk [vmem:[#allocation3 + $0x28] sm:$0xff] %vm242_vm2, %v4060_v49  ;;  %v9394_v50 = vpop.f32.mrb[6].mxu1 }
 0x309   : > { %v4063_v51 = vmax.f32 %v9394_v50, 0.0  ;;  %v3879_v63 = vpop.f32.mrb[7].mxu1 }
 0x30a   : > { %v4062_v5 = vmax.f32 %v3879_v63, 0.0 }
 0x30b   : > { %4096 = vst.msk [vmem:[#allocation3 + $0x50] sm:$0xff] %vm242_vm2, %v4063_v51 }
 0x30c   : > { %4095 = vst.msk [vmem:[#allocation3 + $0x48] sm:$0xff] %vm242_vm2, %v4062_v5  ;;  %v9397_v41 = vpop.f32.mrb[8].mxu1 }
 0x30d   : > { %v4065_v43 = vmax.f32 %v9397_v41, 0.0  ;;  %v3889_v25 = vpop.f32.mrb[9].mxu1 }
 0x30e   : > { %v4064_v26 = vmax.f32 %v3889_v25, 0.0  ;;  %v11746_v30 = vld [vmem:[#allocation3 + $0x30] sm:$0xff] }
 0x30f   : > { %4098 = vst.msk [vmem:[#allocation3 + $0x70] sm:$0xff] %vm242_vm2, %v4065_v43  ;;  %v11741_v27 = vld [vmem:[#allocation3 + $0x28] sm:$0xff] }
 0x310   : > { %4097 = vst.msk [vmem:[#allocation3 + $0x68] sm:$0xff] %vm242_vm2, %v4064_v26  ;;  %v9400_v29 = vpop.f32.mrb[10].mxu1  ;;  %9442 = vmatprep.mubr.msk.f32.mxu0 %vm242_vm2, %v11741_v27 }
 0x311   : > { %v4067_v32 = vmax.f32 %v9400_v29, 0.0  ;;  %v3899_v34 = vpop.f32.mrb[11].mxu1  ;;  %9443 = vmatmul.mubr.msk.f32.gmra.mrb[4].mxu0 %vm242_vm2, %v11746_v30 }
 0x312   : > { %v4066_v38 = vmax.f32 %v3899_v34, 0.0  ;;  %v11756_v36 = vld [vmem:[#allocation3 + $0x50] sm:$0xff] }
 0x313   : > { %4100 = vst.msk [vmem:[#allocation3 + $0x90] sm:$0xff] %vm242_vm2, %v4067_v32  ;;  %v11751_v4 = vld [vmem:[#allocation3 + $0x48] sm:$0xff] }
 0x314   : > { %4099 = vst.msk [vmem:[#allocation3 + $0x88] sm:$0xff] %vm242_vm2, %v4066_v38  ;;  %v9403_v33 = vpop.f32.mrb[12].mxu1  ;;  %9445 = vmatprep.mubr.msk.f32.mxu0 %vm242_vm2, %v11751_v4 }
 0x315   : > { %v4069_v7 = vmax.f32 %v9403_v33, 0.0  ;;  %v3909_v42 = vpop.f32.mrb[13].mxu1  ;;  %9446 = vmatmul.mubr.msk.f32.gmra.mrb[6].mxu0 %vm242_vm2, %v11756_v36 }
 0x316   : > { %v4068_v8 = vmax.f32 %v3909_v42, 0.0  ;;  %v11768_v9 = vld [vmem:[#allocation3 + $0x70] sm:$0xff] }
 0x317   : > { %4102 = vst.msk [vmem:[#allocation3 + $0xb0] sm:$0xff] %vm242_vm2, %v4069_v7  ;;  %v11761_v10 = vld [vmem:[#allocation3 + $0x68] sm:$0xff] }
 0x318   : > { %4101 = vst.msk [vmem:[#allocation3 + $0xa8] sm:$0xff] %vm242_vm2, %v4068_v8  ;;  %v9406_v11 = vpop.f32.mrb[14].mxu1  ;;  %9448 = vmatprep.mubr.msk.f32.mxu0 %vm242_vm2, %v11761_v10 }
 0x319   : > { %v4071_v12 = vmax.f32 %v9406_v11, 0.0  ;;  %v3919_v13 = vpop.f32.mrb[15].mxu1 }
 0x31a   : > { %v4070_v14 = vmax.f32 %v3919_v13, 0.0  ;;  %v11778_v19 = vld [vmem:[#allocation3 + $0x90] sm:$0xff] }
 0x31b   : > { %4104 = vst.msk [vmem:[#allocation3 + $0xd0] sm:$0xff] %vm242_vm2, %v4071_v12  ;;  %v11772_v16 = vld [vmem:[#allocation3 + $0x88] sm:$0xff] }
 0x31c   : > { %4103 = vst.msk [vmem:[#allocation3 + $0xc8] sm:$0xff] %vm242_vm2, %v4070_v14  ;;  %v9409_v15 = vpop.f32.mrb[16].mxu1 }
 0x31d   : > { %v4073_v31 = vmax.f32 %v9409_v15, 0.0  ;;  %v3929_v2 = vpop.f32.mrb[17].mxu1  ;;  %9449 = vmatmul.mubr.msk.f32.gmra.mrb[6].mxu0 %vm242_vm2, %v11768_v9 }
 0x31e   : > { %v4072_v17 = vmax.f32 %v3929_v2, 0.0  ;;  %9451 = vmatprep.mubr.msk.f32.mxu0 %vm242_vm2, %v11772_v16  ;;  %v11790_v56 = vld [vmem:[#allocation3 + $0xb0] sm:$0xff]  ;;  %v11868_v2 = vpop.f32.mrb[0].mxu0 }
 0x31f   : > { %4106 = vst.msk [vmem:[#allocation3 + $0xf0] sm:$0xff] %vm242_vm2, %v4073_v31  ;;  %v11782_v22 = vld [vmem:[#allocation3 + $0xa8] sm:$0xff]  ;;  %12849 = vst [vmem:[#allocation7_spill] sm:$0xff] %v11868_v2  ;;  %v4835_v2 = vld [vmem:[#allocation3 + $0x11] sm:$0xff] }
 0x320   : > { %4105 = vst.msk [vmem:[#allocation3 + $0xe8] sm:$0xff] %vm242_vm2, %v4072_v17  ;;  %v9412_v18 = vpop.f32.mrb[18].mxu1  ;;  %v11870_v17 = vpop.f32.mrb[1].mxu0 }
 0x321   : > { %v4075_v20 = vmax.f32 %v9412_v18, 0.0  ;;  %v3939_v21 = vpop.f32.mrb[19].mxu1  ;;  %9452 = vmatmul.mubr.msk.f32.gmra.mrb[8].mxu0 %vm242_vm2, %v11778_v19  ;;  %12850 = vst [vmem:[#allocation8_spill] sm:$0xff] %v11870_v17  ;;  %v11872_v18 = vpop.f32.mrb[2].mxu0  ;;  %v12029_v17 = vld [vmem:[%s12650_s3 + $0x20] sm:$0xff] }
 0x322   : > { %v4074_v23 = vmax.f32 %v3939_v21, 0.0  ;;  %9454 = vmatprep.mubr.msk.f32.mxu0 %vm242_vm2, %v11782_v22  ;;  %v11800_v62 = vld [vmem:[#allocation3 + $0xd0] sm:$0xff]  ;;  %12851 = vst [vmem:[#allocation9_spill] sm:$0xff] %v11872_v18 }
 0x323   : > { %4108 = vst.msk [vmem:[#allocation3 + $0x110] sm:$0xff] %vm242_vm2, %v4075_v20  ;;  %v11794_v59 = vld [vmem:[#allocation3 + $0xc8] sm:$0xff]  ;;  %v11874_v20 = vpop.f32.mrb[3].mxu0 }
 0x324   : > { %4107 = vst.msk [vmem:[#allocation3 + $0x108] sm:$0xff] %vm242_vm2, %v4074_v23  ;;  %v9415_v24 = vpop.f32.mrb[20].mxu1  ;;  %12852 = vst [vmem:[#allocation11_spill] sm:$0xff] %v11874_v20  ;;  %v4834_v18 = vld [vmem:[#allocation3 + $0x9] sm:$0xff] }
 0x325   : > { %v4077_v52 = vmax.f32 %v9415_v24, 0.0  ;;  %v3949_v53 = vpop.f32.mrb[21].mxu1 }
 0x326   : > { %v4076_v54 = vmax.f32 %v3949_v53, 0.0  ;;  %v11812_v6 = vld [vmem:[#allocation3 + $0xf0] sm:$0xff]  ;;  %v4125_v53 = vld [vmem:[#allocation3 + $0x7] sm:$0xff] }
 0x327   : > { %4110 = vst.msk [vmem:[#allocation3 + $0x130] sm:$0xff] %vm242_vm2, %v4077_v52  ;;  %v11804_v37 = vld [vmem:[#allocation3 + $0xe8] sm:$0xff] }
 0x328   : > { %4109 = vst.msk [vmem:[#allocation3 + $0x128] sm:$0xff] %vm242_vm2, %v4076_v54  ;;  %v9418_v55 = vpop.f32.mrb[22].mxu1 }
 0x329   : > { %v4079_v57 = vmax.f32 %v9418_v55, 0.0  ;;  %v3959_v58 = vpop.f32.mrb[23].mxu1  ;;  %9455 = vmatmul.mubr.msk.f32.gmra.mrb[8].mxu0 %vm242_vm2, %v11790_v56  ;;  %v4126_v55 = vld [vmem:[#allocation3 + $0xf] sm:$0xff] }
 0x32a   : > { %v4078_v60 = vmax.f32 %v3959_v58, 0.0  ;;  %9457 = vmatprep.mubr.msk.f32.mxu0 %vm242_vm2, %v11794_v59  ;;  %v11822_v51 = vld [vmem:[#allocation3 + $0x110] sm:$0xff]  ;;  %v11903_v58 = vld [vmem:[#allocation3 + $0x27] sm:$0xff] }
 0x32b   : > { %4112 = vst.msk [vmem:[#allocation3 + $0x150] sm:$0xff] %vm242_vm2, %v4079_v57  ;;  %v11816_v48 = vld [vmem:[#allocation3 + $0x108] sm:$0xff]  ;;  %v11900_v57 = vld [vmem:[%s12650_s3 + $0x18] sm:$0xff] }
 0x32c   : > { %4111 = vst.msk [vmem:[#allocation3 + $0x148] sm:$0xff] %vm242_vm2, %v4078_v60  ;;  %v9421_v61 = vpop.f32.mrb[24].mxu1  ;;  %v11909_v60 = vld [vmem:[#allocation3 + $0x2f] sm:$0xff] }
 0x32d   : > { %v4081_v28 = vmax.f32 %v9421_v61, 0.0  ;;  %v3969_v35 = vpop.f32.mrb[25].mxu1  ;;  %9458 = vmatmul.mubr.msk.f32.gmra.mrb[10].mxu0 %vm242_vm2, %v11800_v62  ;;  %v11913_v61 = vld [vmem:[#allocation3 + $0x47] sm:$0xff] }
 0x32e   : > { %v4080_v39 = vmax.f32 %v3969_v35, 0.0  ;;  %9460 = vmatprep.mubr.msk.f32.mxu0 %vm242_vm2, %v11804_v37  ;;  %v11834_v38 = vld [vmem:[#allocation3 + $0x130] sm:$0xff] }
 0x32f   : > { %4114 = vst.msk [vmem:[#allocation3 + $0x170] sm:$0xff] %vm242_vm2, %v4081_v28  ;;  %v11826_v41 = vld [vmem:[#allocation3 + $0x128] sm:$0xff] }
 0x330   : > { %4113 = vst.msk [vmem:[#allocation3 + $0x168] sm:$0xff] %vm242_vm2, %v4080_v39  ;;  %v9424_v40 = vpop.f32.mrb[26].mxu1  ;;  %v11917_v28 = vld [vmem:[#allocation3 + $0x4f] sm:$0xff]  ;;  %v11929_v39 = vld [vmem:[#allocation3 + $0x87] sm:$0xff] }
 0x331   : > { %v4083_v3 = vmax.f32 %v9424_v40, 0.0  ;;  %v3979_v0 = vpop.f32.mrb[27].mxu1  ;;  %v11925_v35 = vld [vmem:[#allocation3 + $0x6f] sm:$0xff] }
 0x332   : > { %v4082_v1 = vmax.f32 %v3979_v0, 0.0  ;;  %v11844_v11 = vld [vmem:[#allocation3 + $0x150] sm:$0xff] }
 0x333   : > { %4116 = vst.msk [vmem:[#allocation3 + $0x190] sm:$0xff] %vm242_vm2, %v4083_v3  ;;  %v11838_v42 = vld [vmem:[#allocation3 + $0x148] sm:$0xff] }
 0x334   : > { %4115 = vst.msk [vmem:[#allocation3 + $0x188] sm:$0xff] %vm242_vm2, %v4082_v1  ;;  %v9427_v44 = vpop.f32.mrb[28].mxu1  ;;  %v11933_v40 = vld [vmem:[#allocation3 + $0x8f] sm:$0xff]  ;;  %v11937_v3 = vld [vmem:[#allocation3 + $0xa7] sm:$0xff] }
 0x335   : > { %v4085_v46 = vmax.f32 %v9427_v44, 0.0  ;;  %v3989_v47 = vpop.f32.mrb[29].mxu1  ;;  %9461 = vmatmul.mubr.msk.f32.gmra.mrb[10].mxu0 %vm242_vm2, %v11812_v6  ;;  %v11941_v0 = vld [vmem:[#allocation3 + $0xaf] sm:$0xff]  ;;  %v11945_v1 = vld [vmem:[#allocation3 + $0xc7] sm:$0xff] }
 0x336   : > { %v4084_v49 = vmax.f32 %v3989_v47, 0.0  ;;  %9463 = vmatprep.mubr.msk.f32.mxu0 %vm242_vm2, %v11816_v48  ;;  %v11852_v13 = vld [vmem:[#allocation3 + $0x170] sm:$0xff] }
 0x337   : > { %4118 = vst.msk [vmem:[#allocation3 + $0x1b0] sm:$0xff] %vm242_vm2, %v4085_v46  ;;  %v11848_v12 = vld [vmem:[#allocation3 + $0x168] sm:$0xff] }
 0x338   : > { %4117 = vst.msk [vmem:[#allocation3 + $0x1a8] sm:$0xff] %vm242_vm2, %v4084_v49  ;;  %v9430_v50 = vpop.f32.mrb[30].mxu1  ;;  %v11949_v44 = vld [vmem:[#allocation3 + $0xcf] sm:$0xff]  ;;  %v11953_v46 = vld [vmem:[#allocation3 + $0xe7] sm:$0xff] }
 0x339   : > { %v4087_v63 = vmax.f32 %v9430_v50, 0.0  ;;  %v3999_v5 = vpop.f32.mrb[31].mxu1  ;;  %9464 = vmatmul.mubr.msk.f32.gmra.mrb[12].mxu0 %vm242_vm2, %v11822_v51  ;;  %v11957_v47 = vld [vmem:[#allocation3 + $0xef] sm:$0xff]  ;;  %v11961_v49 = vld [vmem:[#allocation3 + $0x107] sm:$0xff] }
 0x33a   : > { %v4086_v43 = vmax.f32 %v3999_v5, 0.0  ;;  %9466 = vmatprep.mubr.msk.f32.mxu0 %vm242_vm2, %v11826_v41  ;;  %v11860_v15 = vld [vmem:[#allocation3 + $0x190] sm:$0xff] }
 0x33b   : > { %4120 = vst.msk [vmem:[#allocation3 + $0x1d0] sm:$0xff] %vm242_vm2, %v4087_v63  ;;  %v11856_v14 = vld [vmem:[#allocation3 + $0x188] sm:$0xff] }
 0x33c   : > { %4119 = vst.msk [vmem:[#allocation3 + $0x1c8] sm:$0xff] %vm242_vm2, %v4086_v43  ;;  %v9433_v25 = vpop.f32.mrb[32].mxu1  ;;  %v11965_v50 = vld [vmem:[#allocation3 + $0x10f] sm:$0xff]  ;;  %v11969_v63 = vld [vmem:[#allocation3 + $0x127] sm:$0xff] }
 0x33d   : > { %v4089_v26 = vmax.f32 %v9433_v25, 0.0  ;;  %v4009_v29 = vpop.f32.mrb[33].mxu1  ;;  %v11973_v5 = vld [vmem:[#allocation3 + $0x12f] sm:$0xff]  ;;  %v11977_v43 = vld [vmem:[#allocation3 + $0x147] sm:$0xff] }
 0x33e   : > { %v4088_v32 = vmax.f32 %v4009_v29, 0.0  ;;  %v11876_v21 = vld [vmem:[#allocation3 + $0x1b0] sm:$0xff] }
 0x33f   : > { %4122 = vst.msk [vmem:[#allocation3 + $0x1f0] sm:$0xff] %vm242_vm2, %v4089_v26  ;;  %v11864_v31 = vld [vmem:[#allocation3 + $0x1a8] sm:$0xff] }
 0x340   : > { %4121 = vst.msk [vmem:[#allocation3 + $0x1e8] sm:$0xff] %vm242_vm2, %v4088_v32  ;;  %v9436_v34 = vpop.f32.mrb[34].mxu1  ;;  %v11981_v25 = vld [vmem:[#allocation3 + $0x14f] sm:$0xff]  ;;  %v11985_v26 = vld [vmem:[#allocation3 + $0x167] sm:$0xff] }
 0x341   : > { %v4091_v33 = vmax.f32 %v9436_v34, 0.0  ;;  %v4019_v7 = vpop.f32.mrb[35].mxu1  ;;  %9467 = vmatmul.mubr.msk.f32.gmra.mrb[12].mxu0 %vm242_vm2, %v11834_v38  ;;  %v11989_v29 = vld [vmem:[#allocation3 + $0x16f] sm:$0xff]  ;;  %v11993_v32 = vld [vmem:[#allocation3 + $0x187] sm:$0xff] }
 0x342   : > { %v4090_v8 = vmax.f32 %v4019_v7, 0.0  ;;  %9469 = vmatprep.mubr.msk.f32.mxu0 %vm242_vm2, %v11838_v42  ;;  %v11884_v24 = vld [vmem:[#allocation3 + $0x1d0] sm:$0xff] }
 0x343   : > { %4124 = vst.msk [vmem:[#allocation3 + $0x210] sm:$0xff] %vm242_vm2, %v4091_v33  ;;  %v11880_v23 = vld [vmem:[#allocation3 + $0x1c8] sm:$0xff] }
 0x344   : > { %4123 = vst.msk [vmem:[#allocation3 + $0x208] sm:$0xff] %vm242_vm2, %v4090_v8  ;;  %v11997_v34 = vld [vmem:[#allocation3 + $0x18f] sm:$0xff]  ;;  %v12001_v33 = vld [vmem:[#allocation3 + $0x1a7] sm:$0xff] }
 0x345   : > { %9470 = vmatmul.mubr.msk.f32.gmra.mrb[14].mxu0 %vm242_vm2, %v11844_v11  ;;  %v12005_v7 = vld [vmem:[#allocation3 + $0x1af] sm:$0xff]  ;;  %v12009_v8 = vld [vmem:[#allocation3 + $0x1c7] sm:$0xff] }
 0x346   : > { %9472 = vmatprep.mubr.msk.f32.mxu0 %vm242_vm2, %v11848_v12  ;;  %v11892_v54 = vld [vmem:[#allocation3 + $0x1f0] sm:$0xff] }
 0x347   : > { %v11888_v52 = vld [vmem:[#allocation3 + $0x1e8] sm:$0xff]  ;;  %12854 = vst [vmem:[#allocation13_spill] sm:$0xff] %v11892_v54 }
 0x348   : > { %12853 = vst [vmem:[#allocation12_spill] sm:$0xff] %v11888_v52  ;;  %v12021_v20 = vld [vmem:[#allocation3 + $0x1ef] sm:$0xff] }
 0x34d   : > { %9473 = vmatmul.mubr.msk.f32.gmra.mrb[14].mxu0 %vm242_vm2, %v11852_v13 }
 0x34e   : > { %9475 = vmatprep.mubr.msk.f32.mxu0 %vm242_vm2, %v11856_v14 }
 0x351   : > { %9476 = vmatmul.mubr.msk.f32.gmra.mrb[16].mxu0 %vm242_vm2, %v11860_v15 }
 0x352   : > { %9478 = vmatprep.mubr.msk.f32.mxu0 %vm242_vm2, %v11864_v31 }
 0x359   : > { %9479 = vmatmul.mubr.msk.f32.gmra.mrb[16].mxu0 %vm242_vm2, %v11876_v21 }
 0x35a   : > { %9481 = vmatprep.mubr.msk.f32.mxu0 %vm242_vm2, %v11880_v23 }
 0x35d   : > { %9482 = vmatmul.mubr.msk.f32.gmra.mrb[18].mxu0 %vm242_vm2, %v11884_v24 }
 0x35e   : > { %9484 = vmatprep.mubr.msk.f32.mxu0 %vm242_vm2, %v11888_v52  ;;  %v12038_v52 = vld [vmem:[#allocation3 + $0x31] sm:$0xff] }
 0x35f   : > { %12856 = vst [vmem:[#allocation15_spill] sm:$0xff] %v12038_v52 }
 0x365   : > { %9485 = vmatmul.mubr.msk.f32.gmra.mrb[18].mxu0 %vm242_vm2, %v11892_v54  ;;  %v12032_v54 = vld [vmem:[#allocation3 + $0x29] sm:$0xff] }
 0x366   : > { %9489 = vmatprep.mubr.msk.f32.mxu0 %vm242_vm2, %v4125_v53  ;;  %v12013_v53 = vld [vmem:[#allocation3 + $0x1cf] sm:$0xff]  ;;  %12855 = vst [vmem:[#allocation14_spill] sm:$0xff] %v12032_v54 }
 0x369   : > { %9490 = vmatmul.mubr.msk.f32.vlgmr.msra.gmra.mrb[4].mxu0 %vm242_vm2, %v4126_v55  ;;  %v12017_v55 = vld [vmem:[#allocation3 + $0x1e7] sm:$0xff] }
 0x36a   : > { %9538 = vmatpush3.msra.mxu0 %v11733_v45  ;;  %9492 = vmatprep.mubr.msk.f32.mxu0 %vm242_vm2, %v11903_v58  ;;  %v11921_v45 = vld [vmem:[#allocation3 + $0x67] sm:$0xff] }
 0x36b   : > { %9587 = vmatprep.subr.mxu0 %v11900_v57 }
 0x371   : > { %9493 = vmatmul.mubr.msk.f32.gmra.mrb[4].mxu0 %vm242_vm2, %v11909_v60 }
 0x372   : > { %9495 = vmatprep.mubr.msk.f32.mxu0 %vm242_vm2, %v11913_v61 }
 0x375   : > { %9496 = vmatmul.mubr.msk.f32.gmra.mrb[6].mxu0 %vm242_vm2, %v11917_v28 }
 0x376   : > { %9498 = vmatprep.mubr.msk.f32.mxu0 %vm242_vm2, %v11921_v45 }
 0x37d   : > { %9499 = vmatmul.mubr.msk.f32.gmra.mrb[6].mxu0 %vm242_vm2, %v11925_v35 }
 0x37e   : > { %9501 = vmatprep.mubr.msk.f32.mxu0 %vm242_vm2, %v11929_v39 }
 0x381   : > { %9502 = vmatmul.mubr.msk.f32.gmra.mrb[8].mxu0 %vm242_vm2, %v11933_v40 }
 0x382   : > { %9504 = vmatprep.mubr.msk.f32.mxu0 %vm242_vm2, %v11937_v3 }
 0x389   : > { %9505 = vmatmul.mubr.msk.f32.gmra.mrb[8].mxu0 %vm242_vm2, %v11941_v0 }
 0x38a   : > { %9507 = vmatprep.mubr.msk.f32.mxu0 %vm242_vm2, %v11945_v1 }
 0x38d   : > { %9508 = vmatmul.mubr.msk.f32.gmra.mrb[10].mxu0 %vm242_vm2, %v11949_v44 }
 0x38e   : > { %9510 = vmatprep.mubr.msk.f32.mxu0 %vm242_vm2, %v11953_v46 }
 0x395   : > { %9511 = vmatmul.mubr.msk.f32.gmra.mrb[10].mxu0 %vm242_vm2, %v11957_v47 }
 0x396   : > { %9513 = vmatprep.mubr.msk.f32.mxu0 %vm242_vm2, %v11961_v49 }
 0x399   : > { %9514 = vmatmul.mubr.msk.f32.gmra.mrb[12].mxu0 %vm242_vm2, %v11965_v50 }
 0x39a   : > { %9516 = vmatprep.mubr.msk.f32.mxu0 %vm242_vm2, %v11969_v63 }
 0x3a1   : > { %9517 = vmatmul.mubr.msk.f32.gmra.mrb[12].mxu0 %vm242_vm2, %v11973_v5 }
 0x3a2   : > { %9519 = vmatprep.mubr.msk.f32.mxu0 %vm242_vm2, %v11977_v43 }
 0x3a5   : > { %9520 = vmatmul.mubr.msk.f32.gmra.mrb[14].mxu0 %vm242_vm2, %v11981_v25 }
 0x3a6   : > { %9522 = vmatprep.mubr.msk.f32.mxu0 %vm242_vm2, %v11985_v26 }
 0x3ad   : > { %9523 = vmatmul.mubr.msk.f32.gmra.mrb[14].mxu0 %vm242_vm2, %v11989_v29 }
 0x3ae   : > { %9525 = vmatprep.mubr.msk.f32.mxu0 %vm242_vm2, %v11993_v32 }
 0x3b1   : > { %9526 = vmatmul.mubr.msk.f32.gmra.mrb[16].mxu0 %vm242_vm2, %v11997_v34 }
 0x3b2   : > { %9528 = vmatprep.mubr.msk.f32.mxu0 %vm242_vm2, %v12001_v33 }
 0x3b9   : > { %9529 = vmatmul.mubr.msk.f32.gmra.mrb[16].mxu0 %vm242_vm2, %v12005_v7 }
 0x3ba   : > { %9531 = vmatprep.mubr.msk.f32.mxu0 %vm242_vm2, %v12009_v8 }
 0x3bd   : > { %9532 = vmatmul.mubr.msk.f32.gmra.mrb[18].mxu0 %vm242_vm2, %v12013_v53 }
 0x3be   : > { %9534 = vmatprep.mubr.msk.f32.mxu0 %vm242_vm2, %v12017_v55 }
 0x3c5   : > { %9535 = vmatmul.mubr.msk.f32.gmra.mrb[18].mxu0 %vm242_vm2, %v12021_v20 }
 0x3c6   : > { %9539 = vmatprep.mubr.msk.f32.mxu0 %vm242_vm2, %v4834_v18  ;;  %v12042_v18 = vld [vmem:[#allocation3 + $0x49] sm:$0xff] }
 0x3c7   : > { %12857 = vst [vmem:[#allocation16_spill] sm:$0xff] %v12042_v18 }
 0x3c9   : > { %9540 = vmatmul.mubr.msk.f32.vlgmr.msra.gmra.mrb[4].mxu0 %vm242_vm2, %v4835_v2  ;;  %v12046_v2 = vld [vmem:[#allocation3 + $0x51] sm:$0xff] }
 0x3ca   : > { %9588 = vmatpush3.msra.mxu0 %v11900_v57  ;;  %9542 = vmatprep.mubr.msk.f32.mxu0 %vm242_vm2, %v12032_v54  ;;  %12858 = vst [vmem:[#allocation17_spill] sm:$0xff] %v12046_v2  ;;  %v12050_v57 = vld [vmem:[#allocation3 + $0x69] sm:$0xff]  ;;  %v12054_v54 = vld [vmem:[#allocation3 + $0x71] sm:$0xff] }
 0x3cb   : > { %9637 = vmatprep.subr.mxu0 %v12029_v17  ;;  %12859 = vst [vmem:[#allocation26_spill] sm:$0xff] %v12050_v57  ;;  %12860 = vst [vmem:[#allocation28_spill] sm:$0xff] %v12054_v54 }
 0x3d1   : > { %9543 = vmatmul.mubr.msk.f32.gmra.mrb[4].mxu0 %vm242_vm2, %v12038_v52  ;;  %v12058_v52 = vld [vmem:[#allocation3 + $0x89] sm:$0xff] }
 0x3d2   : > { %9545 = vmatprep.mubr.msk.f32.mxu0 %vm242_vm2, %v12042_v18  ;;  %12861 = vst [vmem:[#allocation30_spill] sm:$0xff] %v12058_v52  ;;  %v12062_v18 = vld [vmem:[#allocation3 + $0x91] sm:$0xff] }
 0x3d3   : > { %12862 = vst [vmem:[#allocation31_spill] sm:$0xff] %v12062_v18 }
 0x3d5   : > { %9546 = vmatmul.mubr.msk.f32.gmra.mrb[6].mxu0 %vm242_vm2, %v12046_v2  ;;  %v12066_v2 = vld [vmem:[#allocation3 + $0xa9] sm:$0xff] }
 0x3d6   : > { %9548 = vmatprep.mubr.msk.f32.mxu0 %vm242_vm2, %v12050_v57  ;;  %12863 = vst [vmem:[#allocation33_spill] sm:$0xff] %v12066_v2  ;;  %v12070_v57 = vld [vmem:[#allocation3 + $0xb1] sm:$0xff] }
 0x3d7   : > { %12864 = vst [vmem:[#allocation35_spill] sm:$0xff] %v12070_v57 }
 0x3dd   : > { %9549 = vmatmul.mubr.msk.f32.gmra.mrb[6].mxu0 %vm242_vm2, %v12054_v54  ;;  %v12074_v54 = vld [vmem:[#allocation3 + $0xc9] sm:$0xff] }
 0x3de   : > { %9551 = vmatprep.mubr.msk.f32.mxu0 %vm242_vm2, %v12058_v52  ;;  %12865 = vst [vmem:[#allocation10_spill] sm:$0xff] %v12074_v54  ;;  %v12078_v52 = vld [vmem:[#allocation3 + $0xd1] sm:$0xff] }
 0x3df   : > { %12866 = vst [vmem:[#allocation18_spill] sm:$0xff] %v12078_v52 }
 0x3e1   : > { %9552 = vmatmul.mubr.msk.f32.gmra.mrb[8].mxu0 %vm242_vm2, %v12062_v18  ;;  %v12082_v18 = vld [vmem:[#allocation3 + $0xe9] sm:$0xff] }
 0x3e2   : > { %9554 = vmatprep.mubr.msk.f32.mxu0 %vm242_vm2, %v12066_v2  ;;  %12867 = vst [vmem:[#allocation19_spill] sm:$0xff] %v12082_v18  ;;  %v12086_v2 = vld [vmem:[#allocation3 + $0xf1] sm:$0xff] }
 0x3e3   : > { %12868 = vst [vmem:[#allocation20_spill] sm:$0xff] %v12086_v2 }
 0x3e9   : > { %9555 = vmatmul.mubr.msk.f32.gmra.mrb[8].mxu0 %vm242_vm2, %v12070_v57  ;;  %v12090_v57 = vld [vmem:[#allocation3 + $0x109] sm:$0xff] }
 0x3ea   : > { %9557 = vmatprep.mubr.msk.f32.mxu0 %vm242_vm2, %v12074_v54  ;;  %12869 = vst [vmem:[#allocation21_spill] sm:$0xff] %v12090_v57  ;;  %v12094_v54 = vld [vmem:[#allocation3 + $0x111] sm:$0xff] }
 0x3eb   : > { %12870 = vst [vmem:[#allocation22_spill] sm:$0xff] %v12094_v54 }
 0x3ed   : > { %9558 = vmatmul.mubr.msk.f32.gmra.mrb[10].mxu0 %vm242_vm2, %v12078_v52  ;;  %v12098_v52 = vld [vmem:[#allocation3 + $0x129] sm:$0xff] }
 0x3ee   : > { %9560 = vmatprep.mubr.msk.f32.mxu0 %vm242_vm2, %v12082_v18  ;;  %12871 = vst [vmem:[#allocation23_spill] sm:$0xff] %v12098_v52  ;;  %v12102_v18 = vld [vmem:[#allocation3 + $0x131] sm:$0xff] }
 0x3ef   : > { %12872 = vst [vmem:[#allocation24_spill] sm:$0xff] %v12102_v18 }
 0x3f5   : > { %9561 = vmatmul.mubr.msk.f32.gmra.mrb[10].mxu0 %vm242_vm2, %v12086_v2  ;;  %v12106_v2 = vld [vmem:[#allocation3 + $0x149] sm:$0xff] }
 0x3f6   : > { %9563 = vmatprep.mubr.msk.f32.mxu0 %vm242_vm2, %v12090_v57  ;;  %12873 = vst [vmem:[#allocation25_spill] sm:$0xff] %v12106_v2  ;;  %v12110_v57 = vld [vmem:[#allocation3 + $0x151] sm:$0xff] }
 0x3f7   : > { %12874 = vst [vmem:[#allocation27_spill] sm:$0xff] %v12110_v57 }
 0x3f9   : > { %9564 = vmatmul.mubr.msk.f32.gmra.mrb[12].mxu0 %vm242_vm2, %v12094_v54  ;;  %v12114_v54 = vld [vmem:[#allocation3 + $0x169] sm:$0xff] }
 0x3fa   : > { %9566 = vmatprep.mubr.msk.f32.mxu0 %vm242_vm2, %v12098_v52  ;;  %12875 = vst [vmem:[#allocation29_spill] sm:$0xff] %v12114_v54  ;;  %v12118_v52 = vld [vmem:[#allocation3 + $0x171] sm:$0xff] }
 0x3fb   : > { %12876 = vst [vmem:[#allocation32_spill] sm:$0xff] %v12118_v52 }
 0x401   : > { %9567 = vmatmul.mubr.msk.f32.gmra.mrb[12].mxu0 %vm242_vm2, %v12102_v18  ;;  %v12122_v18 = vld [vmem:[#allocation3 + $0x189] sm:$0xff] }
 0x402   : > { %9569 = vmatprep.mubr.msk.f32.mxu0 %vm242_vm2, %v12106_v2  ;;  %12877 = vst [vmem:[#allocation34_spill] sm:$0xff] %v12122_v18  ;;  %v12126_v2 = vld [vmem:[#allocation3 + $0x191] sm:$0xff] }
 0x403   : > { %12878 = vst [vmem:[#allocation36_spill] sm:$0xff] %v12126_v2 }
 0x405   : > { %9570 = vmatmul.mubr.msk.f32.gmra.mrb[14].mxu0 %vm242_vm2, %v12110_v57  ;;  %v12130_v57 = vld [vmem:[#allocation3 + $0x1a9] sm:$0xff] }
 0x406   : > { %9572 = vmatprep.mubr.msk.f32.mxu0 %vm242_vm2, %v12114_v54  ;;  %12879 = vst [vmem:[#allocation37_spill] sm:$0xff] %v12130_v57  ;;  %v12134_v54 = vld [vmem:[#allocation3 + $0x1b1] sm:$0xff] }
 0x40d   : > { %9573 = vmatmul.mubr.msk.f32.gmra.mrb[14].mxu0 %vm242_vm2, %v12118_v52  ;;  %v12138_v52 = vld [vmem:[#allocation3 + $0x1c9] sm:$0xff] }
 0x40e   : > { %9575 = vmatprep.mubr.msk.f32.mxu0 %vm242_vm2, %v12122_v18  ;;  %12880 = vst [vmem:[#allocation42_spill] sm:$0xff] %v12138_v52  ;;  %v12142_v18 = vld [vmem:[#allocation3 + $0x1d1] sm:$0xff] }
 0x411   : > { %9576 = vmatmul.mubr.msk.f32.gmra.mrb[16].mxu0 %vm242_vm2, %v12126_v2  ;;  %v12146_v2 = vld [vmem:[#allocation3 + $0x1e9] sm:$0xff] }
 0x412   : > { %9578 = vmatprep.mubr.msk.f32.mxu0 %vm242_vm2, %v12130_v57  ;;  %12881 = vst [vmem:[#allocation43_spill] sm:$0xff] %v12146_v2  ;;  %v12150_v57 = vld [vmem:[#allocation3 + $0x1f1] sm:$0xff] }
 0x419   : > { %9579 = vmatmul.mubr.msk.f32.gmra.mrb[16].mxu0 %vm242_vm2, %v12134_v54 }
 0x41a   : > { %9581 = vmatprep.mubr.msk.f32.mxu0 %vm242_vm2, %v12138_v52  ;;  %v8231_v52 = vld [vmem:[%s12650_s3 + $0x28] sm:$0xff] }
 0x41d   : > { %9582 = vmatmul.mubr.msk.f32.gmra.mrb[18].mxu0 %vm242_vm2, %v12142_v18 }
 0x41e   : > { %9584 = vmatprep.mubr.msk.f32.mxu0 %vm242_vm2, %v12146_v2 }
 0x425   : > { %9585 = vmatmul.mubr.msk.f32.gmra.mrb[18].mxu0 %vm242_vm2, %v12150_v57 }
 0x426   : > { %9589 = vmatprep.mubr.msk.f32.mxu0 %vm242_vm2, %v11903_v58  ;;  %v12222_v58 = vld [vmem:[#allocation3 + $0x20f] sm:$0xff] }
 0x429   : > { %9590 = vmatmul.mubr.msk.f32.vlgmr.msra.gmra.mrb[4].mxu0 %vm242_vm2, %v11909_v60  ;;  %v8264_v60 = vld [vmem:[%s12650_s3 + $0x30] sm:$0xff] }
 0x42a   : > { %9638 = vmatpush3.msra.mxu0 %v12029_v17  ;;  %9592 = vmatprep.mubr.msk.f32.mxu0 %vm242_vm2, %v11913_v61  ;;  %v12218_v17 = vld [vmem:[#allocation3 + $0x207] sm:$0xff] }
 0x42b   : > { %9687 = vmatprep.subr.mxu0 %v8231_v52 }
 0x431   : > { %9593 = vmatmul.mubr.msk.f32.gmra.mrb[4].mxu0 %vm242_vm2, %v11917_v28 }
 0x432   : > { %9595 = vmatprep.mubr.msk.f32.mxu0 %vm242_vm2, %v11921_v45 }
 0x435   : > { %9596 = vmatmul.mubr.msk.f32.gmra.mrb[6].mxu0 %vm242_vm2, %v11925_v35 }
 0x436   : > { %9598 = vmatprep.mubr.msk.f32.mxu0 %vm242_vm2, %v11929_v39 }
 0x43d   : > { %9599 = vmatmul.mubr.msk.f32.gmra.mrb[6].mxu0 %vm242_vm2, %v11933_v40 }
 0x43e   : > { %9601 = vmatprep.mubr.msk.f32.mxu0 %vm242_vm2, %v11937_v3 }
 0x441   : > { %9602 = vmatmul.mubr.msk.f32.gmra.mrb[8].mxu0 %vm242_vm2, %v11941_v0 }
 0x442   : > { %9604 = vmatprep.mubr.msk.f32.mxu0 %vm242_vm2, %v11945_v1 }
 0x449   : > { %9605 = vmatmul.mubr.msk.f32.gmra.mrb[8].mxu0 %vm242_vm2, %v11949_v44 }
 0x44a   : > { %9607 = vmatprep.mubr.msk.f32.mxu0 %vm242_vm2, %v11953_v46 }
 0x44d   : > { %9608 = vmatmul.mubr.msk.f32.gmra.mrb[10].mxu0 %vm242_vm2, %v11957_v47 }
 0x44e   : > { %9610 = vmatprep.mubr.msk.f32.mxu0 %vm242_vm2, %v11961_v49 }
 0x455   : > { %9611 = vmatmul.mubr.msk.f32.gmra.mrb[10].mxu0 %vm242_vm2, %v11965_v50 }
 0x456   : > { %9613 = vmatprep.mubr.msk.f32.mxu0 %vm242_vm2, %v11969_v63 }
 0x459   : > { %9614 = vmatmul.mubr.msk.f32.gmra.mrb[12].mxu0 %vm242_vm2, %v11973_v5 }
 0x45a   : > { %9616 = vmatprep.mubr.msk.f32.mxu0 %vm242_vm2, %v11977_v43 }
 0x461   : > { %9617 = vmatmul.mubr.msk.f32.gmra.mrb[12].mxu0 %vm242_vm2, %v11981_v25 }
 0x462   : > { %9619 = vmatprep.mubr.msk.f32.mxu0 %vm242_vm2, %v11985_v26 }
 0x465   : > { %9620 = vmatmul.mubr.msk.f32.gmra.mrb[14].mxu0 %vm242_vm2, %v11989_v29 }
 0x466   : > { %9622 = vmatprep.mubr.msk.f32.mxu0 %vm242_vm2, %v11993_v32 }
 0x46d   : > { %9623 = vmatmul.mubr.msk.f32.gmra.mrb[14].mxu0 %vm242_vm2, %v11997_v34 }
 0x46e   : > { %9625 = vmatprep.mubr.msk.f32.mxu0 %vm242_vm2, %v12001_v33 }
 0x471   : > { %9626 = vmatmul.mubr.msk.f32.gmra.mrb[16].mxu0 %vm242_vm2, %v12005_v7 }
 0x472   : > { %9628 = vmatprep.mubr.msk.f32.mxu0 %vm242_vm2, %v12009_v8 }
 0x479   : > { %9629 = vmatmul.mubr.msk.f32.gmra.mrb[16].mxu0 %vm242_vm2, %v12013_v53 }
 0x47a   : > { %9631 = vmatprep.mubr.msk.f32.mxu0 %vm242_vm2, %v12017_v55 }
 0x47d   : > { %9632 = vmatmul.mubr.msk.f32.gmra.mrb[18].mxu0 %vm242_vm2, %v12021_v20 }
 0x47e   : > { %9634 = vmatprep.mubr.msk.f32.mxu0 %vm242_vm2, %v12218_v17 }
 0x485   : > { %9635 = vmatmul.mubr.msk.f32.gmra.mrb[18].mxu0 %vm242_vm2, %v12222_v58 }
 0x486   : > { %9639 = vmatprep.mubr.msk.f32.mxu0 %vm242_vm2, %v11741_v27  ;;  %v12882_v27 = vld [vmem:[#allocation12_spill] sm:$0xff] }
 0x489   : > { %9640 = vmatmul.mubr.msk.f32.vlgmr.msra.gmra.mrb[4].mxu0 %vm242_vm2, %v11746_v30  ;;  %v12883_v30 = vld [vmem:[#allocation13_spill] sm:$0xff] }
 0x48a   : > { %9688 = vmatpush3.msra.mxu0 %v8231_v52  ;;  %9642 = vmatprep.mubr.msk.f32.mxu0 %vm242_vm2, %v11751_v4  ;;  %v12289_v4 = vld [vmem:[#allocation3 + $0x208] sm:$0xff]  ;;  %v12890_v52 = vld [vmem:[#allocation26_spill] sm:$0xff] }
 0x48b   : > { %9737 = vmatprep.subr.mxu0 %v8264_v60  ;;  %12884 = vst [vmem:[#allocation12_spill] sm:$0xff] %v12289_v4 }
 0x491   : > { %9643 = vmatmul.mubr.msk.f32.gmra.mrb[4].mxu0 %vm242_vm2, %v11756_v36  ;;  %v12293_v36 = vld [vmem:[#allocation3 + $0x210] sm:$0xff] }
 0x492   : > { %9645 = vmatprep.mubr.msk.f32.mxu0 %vm242_vm2, %v11761_v10  ;;  %12885 = vst [vmem:[#allocation13_spill] sm:$0xff] %v12293_v36  ;;  %v12886_v10 = vld [vmem:[#allocation14_spill] sm:$0xff] }
 0x495   : > { %9646 = vmatmul.mubr.msk.f32.gmra.mrb[6].mxu0 %vm242_vm2, %v11768_v9  ;;  %v8297_v9 = vld [vmem:[%s12650_s3 + $0x38] sm:$0xff] }
 0x496   : > { %9648 = vmatprep.mubr.msk.f32.mxu0 %vm242_vm2, %v11772_v16  ;;  %v12887_v16 = vld [vmem:[#allocation15_spill] sm:$0xff] }
 0x49d   : > { %9649 = vmatmul.mubr.msk.f32.gmra.mrb[6].mxu0 %vm242_vm2, %v11778_v19  ;;  %v12888_v19 = vld [vmem:[#allocation16_spill] sm:$0xff] }
 0x49e   : > { %9651 = vmatprep.mubr.msk.f32.mxu0 %vm242_vm2, %v11782_v22  ;;  %v12889_v22 = vld [vmem:[#allocation17_spill] sm:$0xff] }
 0x4a1   : > { %9652 = vmatmul.mubr.msk.f32.gmra.mrb[8].mxu0 %vm242_vm2, %v11790_v56 }
 0x4a2   : > { %9654 = vmatprep.mubr.msk.f32.mxu0 %vm242_vm2, %v11794_v59 }
 0x4a9   : > { %9655 = vmatmul.mubr.msk.f32.gmra.mrb[8].mxu0 %vm242_vm2, %v11800_v62 }
 0x4aa   : > { %9657 = vmatprep.mubr.msk.f32.mxu0 %vm242_vm2, %v11804_v37 }
 0x4ad   : > { %9658 = vmatmul.mubr.msk.f32.gmra.mrb[10].mxu0 %vm242_vm2, %v11812_v6 }
 0x4ae   : > { %9660 = vmatprep.mubr.msk.f32.mxu0 %vm242_vm2, %v11816_v48 }
 0x4b5   : > { %9661 = vmatmul.mubr.msk.f32.gmra.mrb[10].mxu0 %vm242_vm2, %v11822_v51 }
 0x4b6   : > { %9663 = vmatprep.mubr.msk.f32.mxu0 %vm242_vm2, %v11826_v41 }
 0x4b9   : > { %9664 = vmatmul.mubr.msk.f32.gmra.mrb[12].mxu0 %vm242_vm2, %v11834_v38 }
 0x4ba   : > { %9666 = vmatprep.mubr.msk.f32.mxu0 %vm242_vm2, %v11838_v42 }
 0x4c1   : > { %9667 = vmatmul.mubr.msk.f32.gmra.mrb[12].mxu0 %vm242_vm2, %v11844_v11 }
 0x4c2   : > { %9669 = vmatprep.mubr.msk.f32.mxu0 %vm242_vm2, %v11848_v12 }
 0x4c5   : > { %9670 = vmatmul.mubr.msk.f32.gmra.mrb[14].mxu0 %vm242_vm2, %v11852_v13 }
 0x4c6   : > { %9672 = vmatprep.mubr.msk.f32.mxu0 %vm242_vm2, %v11856_v14 }
 0x4cd   : > { %9673 = vmatmul.mubr.msk.f32.gmra.mrb[14].mxu0 %vm242_vm2, %v11860_v15 }
 0x4ce   : > { %9675 = vmatprep.mubr.msk.f32.mxu0 %vm242_vm2, %v11864_v31 }
 0x4d1   : > { %9676 = vmatmul.mubr.msk.f32.gmra.mrb[16].mxu0 %vm242_vm2, %v11876_v21 }
 0x4d2   : > { %9678 = vmatprep.mubr.msk.f32.mxu0 %vm242_vm2, %v11880_v23 }
 0x4d9   : > { %9679 = vmatmul.mubr.msk.f32.gmra.mrb[16].mxu0 %vm242_vm2, %v11884_v24 }
 0x4da   : > { %9681 = vmatprep.mubr.msk.f32.mxu0 %vm242_vm2, %v12882_v27 }
 0x4dd   : > { %9682 = vmatmul.mubr.msk.f32.gmra.mrb[18].mxu0 %vm242_vm2, %v12883_v30 }
 0x4de   : > { %9684 = vmatprep.mubr.msk.f32.mxu0 %vm242_vm2, %v12289_v4  ;;  %v12893_v4 = vld [vmem:[#allocation31_spill] sm:$0xff] }
 0x4e5   : > { %9685 = vmatmul.mubr.msk.f32.gmra.mrb[18].mxu0 %vm242_vm2, %v12293_v36  ;;  %v12891_v36 = vld [vmem:[#allocation28_spill] sm:$0xff] }
 0x4e6   : > { %9689 = vmatprep.mubr.msk.f32.mxu0 %vm242_vm2, %v12886_v10  ;;  %v12892_v10 = vld [vmem:[#allocation30_spill] sm:$0xff] }
 0x4e9   : > { %9690 = vmatmul.mubr.msk.f32.vlgmr.msra.gmra.mrb[4].mxu0 %vm242_vm2, %v12887_v16  ;;  %v12895_v16 = vld [vmem:[#allocation35_spill] sm:$0xff] }
 0x4ea   : > { %9738 = vmatpush3.msra.mxu0 %v8264_v60  ;;  %9692 = vmatprep.mubr.msk.f32.mxu0 %vm242_vm2, %v12888_v19  ;;  %v12894_v60 = vld [vmem:[#allocation33_spill] sm:$0xff]  ;;  %v12896_v19 = vld [vmem:[#allocation10_spill] sm:$0xff] }
 0x4eb   : > { %9787 = vmatprep.subr.mxu0 %v8297_v9 }
 0x4f1   : > { %9693 = vmatmul.mubr.msk.f32.gmra.mrb[4].mxu0 %vm242_vm2, %v12889_v22  ;;  %v12897_v22 = vld [vmem:[#allocation18_spill] sm:$0xff] }
 0x4f2   : > { %9695 = vmatprep.mubr.msk.f32.mxu0 %vm242_vm2, %v12890_v52  ;;  %v12898_v52 = vld [vmem:[#allocation19_spill] sm:$0xff] }
 0x4f5   : > { %9696 = vmatmul.mubr.msk.f32.gmra.mrb[6].mxu0 %vm242_vm2, %v12891_v36  ;;  %v12899_v36 = vld [vmem:[#allocation20_spill] sm:$0xff] }
 0x4f6   : > { %9698 = vmatprep.mubr.msk.f32.mxu0 %vm242_vm2, %v12892_v10  ;;  %v12900_v10 = vld [vmem:[#allocation21_spill] sm:$0xff] }
 0x4fd   : > { %9699 = vmatmul.mubr.msk.f32.gmra.mrb[6].mxu0 %vm242_vm2, %v12893_v4  ;;  %v12901_v4 = vld [vmem:[#allocation22_spill] sm:$0xff] }
 0x4fe   : > { %9701 = vmatprep.mubr.msk.f32.mxu0 %vm242_vm2, %v12894_v60  ;;  %v12902_v60 = vld [vmem:[#allocation23_spill] sm:$0xff] }
 0x501   : > { %9702 = vmatmul.mubr.msk.f32.gmra.mrb[8].mxu0 %vm242_vm2, %v12895_v16  ;;  %v12903_v16 = vld [vmem:[#allocation24_spill] sm:$0xff] }
 0x502   : > { %9704 = vmatprep.mubr.msk.f32.mxu0 %vm242_vm2, %v12896_v19  ;;  %v12904_v19 = vld [vmem:[#allocation25_spill] sm:$0xff] }
 0x509   : > { %9705 = vmatmul.mubr.msk.f32.gmra.mrb[8].mxu0 %vm242_vm2, %v12897_v22  ;;  %v12905_v22 = vld [vmem:[#allocation27_spill] sm:$0xff] }
 0x50a   : > { %9707 = vmatprep.mubr.msk.f32.mxu0 %vm242_vm2, %v12898_v52  ;;  %v12906_v52 = vld [vmem:[#allocation29_spill] sm:$0xff] }
 0x50d   : > { %9708 = vmatmul.mubr.msk.f32.gmra.mrb[10].mxu0 %vm242_vm2, %v12899_v36  ;;  %v12907_v36 = vld [vmem:[#allocation32_spill] sm:$0xff] }
 0x50e   : > { %9710 = vmatprep.mubr.msk.f32.mxu0 %vm242_vm2, %v12900_v10  ;;  %v12908_v10 = vld [vmem:[#allocation34_spill] sm:$0xff] }
 0x515   : > { %9711 = vmatmul.mubr.msk.f32.gmra.mrb[10].mxu0 %vm242_vm2, %v12901_v4  ;;  %v12909_v4 = vld [vmem:[#allocation36_spill] sm:$0xff] }
 0x516   : > { %9713 = vmatprep.mubr.msk.f32.mxu0 %vm242_vm2, %v12902_v60  ;;  %v12910_v60 = vld [vmem:[#allocation37_spill] sm:$0xff] }
 0x519   : > { %9714 = vmatmul.mubr.msk.f32.gmra.mrb[12].mxu0 %vm242_vm2, %v12903_v16 }
 0x51a   : > { %9716 = vmatprep.mubr.msk.f32.mxu0 %vm242_vm2, %v12904_v19  ;;  %v12911_v19 = vld [vmem:[#allocation42_spill] sm:$0xff] }
 0x521   : > { %9717 = vmatmul.mubr.msk.f32.gmra.mrb[12].mxu0 %vm242_vm2, %v12905_v22 }
 0x522   : > { %9719 = vmatprep.mubr.msk.f32.mxu0 %vm242_vm2, %v12906_v52 }
 0x525   : > { %9720 = vmatmul.mubr.msk.f32.gmra.mrb[14].mxu0 %vm242_vm2, %v12907_v36 }
 0x526   : > { %9722 = vmatprep.mubr.msk.f32.mxu0 %vm242_vm2, %v12908_v10  ;;  %v12360_v10 = vld [vmem:[#allocation3 + $0x209] sm:$0xff] }
 0x52d   : > { %9723 = vmatmul.mubr.msk.f32.gmra.mrb[14].mxu0 %vm242_vm2, %v12909_v4 }
 0x52e   : > { %9725 = vmatprep.mubr.msk.f32.mxu0 %vm242_vm2, %v12910_v60  ;;  %v12364_v60 = vld [vmem:[#allocation3 + $0x211] sm:$0xff] }
 0x531   : > { %9726 = vmatmul.mubr.msk.f32.gmra.mrb[16].mxu0 %vm242_vm2, %v12134_v54 }
 0x532   : > { %9728 = vmatprep.mubr.msk.f32.mxu0 %vm242_vm2, %v12911_v19 }
 0x539   : > { %9729 = vmatmul.mubr.msk.f32.gmra.mrb[16].mxu0 %vm242_vm2, %v12142_v18 }
 0x53a   : > { %9731 = vmatprep.mubr.msk.f32.mxu0 %vm242_vm2, %v12146_v2  ;;  %v8330_v2 = vld [vmem:[%s12650_s3 + $0x40] sm:$0xff] }
 0x53d   : > { %9732 = vmatmul.mubr.msk.f32.gmra.mrb[18].mxu0 %vm242_vm2, %v12150_v57 }
 0x53e   : > { %9734 = vmatprep.mubr.msk.f32.mxu0 %vm242_vm2, %v12360_v10 }
 0x545   : > { %9735 = vmatmul.mubr.msk.f32.gmra.mrb[18].mxu0 %vm242_vm2, %v12364_v60 }
 0x546   : > { %9739 = vmatprep.mubr.msk.f32.mxu0 %vm242_vm2, %v11913_v61  ;;  %v6413_v61 = vld [vmem:[#allocation3 + $0x227] sm:$0xff] }
 0x549   : > { %9740 = vmatmul.mubr.msk.f32.vlgmr.msra.gmra.mrb[4].mxu0 %vm242_vm2, %v11917_v28  ;;  %v6414_v28 = vld [vmem:[#allocation3 + $0x22f] sm:$0xff] }
 0x54a   : > { %9788 = vmatpush3.msra.mxu0 %v8297_v9  ;;  %9742 = vmatprep.mubr.msk.f32.mxu0 %vm242_vm2, %v11921_v45  ;;  %v6770_v45 = vld [vmem:[#allocation3 + $0x48] sm:$0xff] }
 0x54b   : > { %9837 = vmatprep.subr.mxu0 %v8330_v2 }
 0x551   : > { %9743 = vmatmul.mubr.msk.f32.gmra.mrb[4].mxu0 %vm242_vm2, %v11925_v35  ;;  %v6771_v35 = vld [vmem:[#allocation3 + $0x50] sm:$0xff] }
 0x552   : > { %9745 = vmatprep.mubr.msk.f32.mxu0 %vm242_vm2, %v11929_v39  ;;  %v6772_v39 = vld [vmem:[#allocation3 + $0x68] sm:$0xff] }
 0x555   : > { %9746 = vmatmul.mubr.msk.f32.gmra.mrb[6].mxu0 %vm242_vm2, %v11933_v40  ;;  %v6774_v40 = vld [vmem:[#allocation3 + $0x88] sm:$0xff] }
 0x556   : > { %9748 = vmatprep.mubr.msk.f32.mxu0 %vm242_vm2, %v11937_v3  ;;  %v6775_v3 = vld [vmem:[#allocation3 + $0x90] sm:$0xff] }
 0x55d   : > { %9749 = vmatmul.mubr.msk.f32.gmra.mrb[6].mxu0 %vm242_vm2, %v11941_v0  ;;  %v6776_v0 = vld [vmem:[#allocation3 + $0xa8] sm:$0xff] }
 0x55e   : > { %9751 = vmatprep.mubr.msk.f32.mxu0 %vm242_vm2, %v11945_v1  ;;  %v12929_v1 = vld [vmem:[#allocation25_spill] sm:$0xff] }
 0x561   : > { %9752 = vmatmul.mubr.msk.f32.gmra.mrb[8].mxu0 %vm242_vm2, %v11949_v44  ;;  %v12930_v44 = vld [vmem:[#allocation34_spill] sm:$0xff] }
 0x562   : > { %9754 = vmatprep.mubr.msk.f32.mxu0 %vm242_vm2, %v11953_v46  ;;  %v12931_v46 = vld [vmem:[#allocation37_spill] sm:$0xff] }
 0x569   : > { %9755 = vmatmul.mubr.msk.f32.gmra.mrb[8].mxu0 %vm242_vm2, %v11957_v47  ;;  %v12932_v47 = vld [vmem:[#allocation43_spill] sm:$0xff] }
 0x56a   : > { %9757 = vmatprep.mubr.msk.f32.mxu0 %vm242_vm2, %v11961_v49  ;;  %v7187_v49 = vld [vmem:[#allocation3 + $0x229] sm:$0xff] }
 0x56d   : > { %9758 = vmatmul.mubr.msk.f32.gmra.mrb[10].mxu0 %vm242_vm2, %v11965_v50 }
 0x56e   : > { %9760 = vmatprep.mubr.msk.f32.mxu0 %vm242_vm2, %v11969_v63 }
 0x575   : > { %9761 = vmatmul.mubr.msk.f32.gmra.mrb[10].mxu0 %vm242_vm2, %v11973_v5 }
 0x576   : > { %9763 = vmatprep.mubr.msk.f32.mxu0 %vm242_vm2, %v11977_v43 }
 0x579   : > { %9764 = vmatmul.mubr.msk.f32.gmra.mrb[12].mxu0 %vm242_vm2, %v11981_v25 }
 0x57a   : > { %9766 = vmatprep.mubr.msk.f32.mxu0 %vm242_vm2, %v11985_v26 }
 0x581   : > { %9767 = vmatmul.mubr.msk.f32.gmra.mrb[12].mxu0 %vm242_vm2, %v11989_v29 }
 0x582   : > { %9769 = vmatprep.mubr.msk.f32.mxu0 %vm242_vm2, %v11993_v32 }
 0x585   : > { %9770 = vmatmul.mubr.msk.f32.gmra.mrb[14].mxu0 %vm242_vm2, %v11997_v34  ;;  %v12933_v34 = vld [vmem:[#allocation8_spill] sm:$0xff] }
 0x586   : > { %9772 = vmatprep.mubr.msk.f32.mxu0 %vm242_vm2, %v12001_v33 }
 0x58d   : > { %9773 = vmatmul.mubr.msk.f32.gmra.mrb[14].mxu0 %vm242_vm2, %v12005_v7 }
 0x58e   : > { %9775 = vmatprep.mubr.msk.f32.mxu0 %vm242_vm2, %v12009_v8 }
 0x591   : > { %9776 = vmatmul.mubr.msk.f32.gmra.mrb[16].mxu0 %vm242_vm2, %v12013_v53 }
 0x592   : > { %9778 = vmatprep.mubr.msk.f32.mxu0 %vm242_vm2, %v12017_v55 }
 0x599   : > { %9779 = vmatmul.mubr.msk.f32.gmra.mrb[16].mxu0 %vm242_vm2, %v12021_v20  ;;  %v6773_v20 = vld [vmem:[#allocation3 + $0x70] sm:$0xff] }
 0x59a   : > { %9781 = vmatprep.mubr.msk.f32.mxu0 %vm242_vm2, %v12218_v17 }
 0x59d   : > { %9782 = vmatmul.mubr.msk.f32.gmra.mrb[18].mxu0 %vm242_vm2, %v12222_v58 }
 0x59e   : > { %9784 = vmatprep.mubr.msk.f32.mxu0 %vm242_vm2, %v6413_v61 }
 0x5a5   : > { %9785 = vmatmul.mubr.msk.f32.gmra.mrb[18].mxu0 %vm242_vm2, %v6414_v28 }
 0x5a6   : > { %9789 = vmatprep.mubr.msk.f32.mxu0 %vm242_vm2, %v6770_v45  ;;  %v12936_v45 = vld [vmem:[#allocation9_spill] sm:$0xff] }
 0x5a9   : > { %9790 = vmatmul.mubr.msk.f32.vlgmr.msra.gmra.mrb[4].mxu0 %vm242_vm2, %v6771_v35 }
 0x5aa   : > { %9838 = vmatpush3.msra.mxu0 %v8330_v2  ;;  %9792 = vmatprep.mubr.msk.f32.mxu0 %vm242_vm2, %v6772_v39 }
 0x5b1   : > { %9793 = vmatmul.mubr.msk.f32.gmra.mrb[4].mxu0 %vm242_vm2, %v6773_v20 }
 0x5b2   : > { %9795 = vmatprep.mubr.msk.f32.mxu0 %vm242_vm2, %v6774_v40 }
 0x5b5   : > { %9796 = vmatmul.mubr.msk.f32.gmra.mrb[6].mxu0 %vm242_vm2, %v6775_v3 }
 0x5b6   : > { %9798 = vmatprep.mubr.msk.f32.mxu0 %vm242_vm2, %v6776_v0 }
 0x5bd   : > { %9799 = vmatmul.mubr.msk.f32.gmra.mrb[6].mxu0 %vm242_vm2, %v11790_v56  ;;  %v12912_v56 = vld [vmem:[#allocation12_spill] sm:$0xff] }
 0x5be   : > { %9801 = vmatprep.mubr.msk.f32.mxu0 %vm242_vm2, %v11794_v59  ;;  %v6800_v59 = vld [vmem:[#allocation3 + $0x228] sm:$0xff] }
 0x5c1   : > { %9802 = vmatmul.mubr.msk.f32.gmra.mrb[8].mxu0 %vm242_vm2, %v11800_v62  ;;  %v12913_v62 = vld [vmem:[#allocation13_spill] sm:$0xff] }
 0x5c2   : > { %9804 = vmatprep.mubr.msk.f32.mxu0 %vm242_vm2, %v11804_v37  ;;  %v6801_v37 = vld [vmem:[#allocation3 + $0x230] sm:$0xff] }
 0x5c9   : > { %9805 = vmatmul.mubr.msk.f32.gmra.mrb[8].mxu0 %vm242_vm2, %v11812_v6  ;;  %v12914_v6 = vld [vmem:[#allocation16_spill] sm:$0xff] }
 0x5ca   : > { %9807 = vmatprep.mubr.msk.f32.mxu0 %vm242_vm2, %v11816_v48  ;;  %v12915_v48 = vld [vmem:[#allocation17_spill] sm:$0xff] }
 0x5cd   : > { %9808 = vmatmul.mubr.msk.f32.gmra.mrb[10].mxu0 %vm242_vm2, %v11822_v51  ;;  %v12916_v51 = vld [vmem:[#allocation26_spill] sm:$0xff] }
 0x5ce   : > { %9810 = vmatprep.mubr.msk.f32.mxu0 %vm242_vm2, %v11826_v41  ;;  %v12917_v41 = vld [vmem:[#allocation28_spill] sm:$0xff] }
 0x5d5   : > { %9811 = vmatmul.mubr.msk.f32.gmra.mrb[10].mxu0 %vm242_vm2, %v11834_v38  ;;  %v12918_v38 = vld [vmem:[#allocation30_spill] sm:$0xff] }
 0x5d6   : > { %9813 = vmatprep.mubr.msk.f32.mxu0 %vm242_vm2, %v11838_v42  ;;  %v12919_v42 = vld [vmem:[#allocation31_spill] sm:$0xff] }
 0x5d9   : > { %9814 = vmatmul.mubr.msk.f32.gmra.mrb[12].mxu0 %vm242_vm2, %v11844_v11  ;;  %v12920_v11 = vld [vmem:[#allocation33_spill] sm:$0xff] }
 0x5da   : > { %9816 = vmatprep.mubr.msk.f32.mxu0 %vm242_vm2, %v11848_v12  ;;  %v12921_v12 = vld [vmem:[#allocation35_spill] sm:$0xff] }
 0x5e1   : > { %9817 = vmatmul.mubr.msk.f32.gmra.mrb[12].mxu0 %vm242_vm2, %v11852_v13  ;;  %v12922_v13 = vld [vmem:[#allocation10_spill] sm:$0xff] }
 0x5e2   : > { %9819 = vmatprep.mubr.msk.f32.mxu0 %vm242_vm2, %v11856_v14  ;;  %v12923_v14 = vld [vmem:[#allocation18_spill] sm:$0xff] }
 0x5e5   : > { %9820 = vmatmul.mubr.msk.f32.gmra.mrb[14].mxu0 %vm242_vm2, %v11860_v15  ;;  %v12924_v15 = vld [vmem:[#allocation19_spill] sm:$0xff] }
 0x5e6   : > { %9822 = vmatprep.mubr.msk.f32.mxu0 %vm242_vm2, %v11864_v31  ;;  %v12925_v31 = vld [vmem:[#allocation20_spill] sm:$0xff] }
 0x5ed   : > { %9823 = vmatmul.mubr.msk.f32.gmra.mrb[14].mxu0 %vm242_vm2, %v11876_v21  ;;  %v12926_v21 = vld [vmem:[#allocation21_spill] sm:$0xff] }
 0x5ee   : > { %9825 = vmatprep.mubr.msk.f32.mxu0 %vm242_vm2, %v11880_v23  ;;  %v12927_v23 = vld [vmem:[#allocation22_spill] sm:$0xff] }
 0x5f1   : > { %9826 = vmatmul.mubr.msk.f32.gmra.mrb[16].mxu0 %vm242_vm2, %v11884_v24  ;;  %v12928_v24 = vld [vmem:[#allocation23_spill] sm:$0xff] }
 0x5f2   : > { %9828 = vmatprep.mubr.msk.f32.mxu0 %vm242_vm2, %v12882_v27 }
 0x5f9   : > { %9829 = vmatmul.mubr.msk.f32.gmra.mrb[16].mxu0 %vm242_vm2, %v12883_v30 }
 0x5fa   : > { %9831 = vmatprep.mubr.msk.f32.mxu0 %vm242_vm2, %v12912_v56 }
 0x5fd   : > { %9832 = vmatmul.mubr.msk.f32.gmra.mrb[18].mxu0 %vm242_vm2, %v12913_v62 }
 0x5fe   : > { %9834 = vmatprep.mubr.msk.f32.mxu0 %vm242_vm2, %v6800_v59  ;;  %v12937_v59 = vld [vmem:[#allocation39_spill] sm:$0xff] }
 0x605   : > { %9835 = vmatmul.mubr.msk.f32.gmra.mrb[18].mxu0 %vm242_vm2, %v6801_v37 }
 0x606   : > { %9839 = vmatprep.mubr.msk.f32.mxu0 %vm242_vm2, %v12914_v6 }
 0x609   : > { %9840 = vmatmul.mubr.msk.f32.vlgmr.msra.gmra.mrb[4].mxu0 %vm242_vm2, %v12915_v48 }
 0x60a   : > { %9842 = vmatprep.mubr.msk.f32.mxu0 %vm242_vm2, %v12916_v51 }
 0x611   : > { %9843 = vmatmul.mubr.msk.f32.gmra.mrb[4].mxu0 %vm242_vm2, %v12917_v41 }
 0x612   : > { %9845 = vmatprep.mubr.msk.f32.mxu0 %vm242_vm2, %v12918_v38 }
 0x615   : > { %9846 = vmatmul.mubr.msk.f32.gmra.mrb[6].mxu0 %vm242_vm2, %v12919_v42  ;;  %v12938_v42 = vld [vmem:[#allocation38_spill] sm:$0xff] }
 0x616   : > { %9848 = vmatprep.mubr.msk.f32.mxu0 %vm242_vm2, %v12920_v11 }
 0x61d   : > { %9849 = vmatmul.mubr.msk.f32.gmra.mrb[6].mxu0 %vm242_vm2, %v12921_v12 }
 0x61e   : > { %9851 = vmatprep.mubr.msk.f32.mxu0 %vm242_vm2, %v12922_v13 }
 0x621   : > { %9852 = vmatmul.mubr.msk.f32.gmra.mrb[8].mxu0 %vm242_vm2, %v12923_v14 }
 0x622   : > { %9854 = vmatprep.mubr.msk.f32.mxu0 %vm242_vm2, %v12924_v15 }
 0x629   : > { %9855 = vmatmul.mubr.msk.f32.gmra.mrb[8].mxu0 %vm242_vm2, %v12925_v31 }
 0x62a   : > { %9857 = vmatprep.mubr.msk.f32.mxu0 %vm242_vm2, %v12926_v21 }
 0x62d   : > { %9858 = vmatmul.mubr.msk.f32.gmra.mrb[10].mxu0 %vm242_vm2, %v12927_v23  ;;  %v12939_v23 = vld [vmem:[#allocation41_spill] sm:$0xff] }
 0x62e   : > { %9860 = vmatprep.mubr.msk.f32.mxu0 %vm242_vm2, %v12928_v24 }
 0x635   : > { %9861 = vmatmul.mubr.msk.f32.gmra.mrb[10].mxu0 %vm242_vm2, %v12903_v16 }
 0x636   : > { %9863 = vmatprep.mubr.msk.f32.mxu0 %vm242_vm2, %v12929_v1 }
 0x639   : > { %9864 = vmatmul.mubr.msk.f32.gmra.mrb[12].mxu0 %vm242_vm2, %v12905_v22 }
 0x63a   : > { %9866 = vmatprep.mubr.msk.f32.mxu0 %vm242_vm2, %v12906_v52 }
 0x641   : > { %9867 = vmatmul.mubr.msk.f32.gmra.mrb[12].mxu0 %vm242_vm2, %v12907_v36 }
 0x642   : > { %9869 = vmatprep.mubr.msk.f32.mxu0 %vm242_vm2, %v12930_v44 }
 0x645   : > { %9870 = vmatmul.mubr.msk.f32.gmra.mrb[14].mxu0 %vm242_vm2, %v12909_v4 }
 0x646   : > { %9872 = vmatprep.mubr.msk.f32.mxu0 %vm242_vm2, %v12931_v46 }
 0x64d   : > { %9873 = vmatmul.mubr.msk.f32.gmra.mrb[14].mxu0 %vm242_vm2, %v12134_v54  ;;  %v7188_v54 = vld [vmem:[#allocation3 + $0x231] sm:$0xff] }
 0x64e   : > { %9875 = vmatprep.mubr.msk.f32.mxu0 %vm242_vm2, %v12911_v19  ;;  %v12935_v19 = vld [vmem:[#allocation11_spill] sm:$0xff] }
 0x651   : > { %9876 = vmatmul.mubr.msk.f32.gmra.mrb[16].mxu0 %vm242_vm2, %v12142_v18 }
 0x652   : > { %9878 = vmatprep.mubr.msk.f32.mxu0 %vm242_vm2, %v12932_v47 }
 0x659   : > { %9879 = vmatmul.mubr.msk.f32.gmra.mrb[16].mxu0 %vm242_vm2, %v12150_v57  ;;  %v12934_v57 = vld [vmem:[#allocation7_spill] sm:$0xff] }
 0x65a   : > { %9881 = vmatprep.mubr.msk.f32.mxu0 %vm242_vm2, %v12360_v10 }
 0x65d   : > { %9882 = vmatmul.mubr.msk.f32.gmra.mrb[18].mxu0 %vm242_vm2, %v12364_v60 }
 0x65e   : > { %9884 = vmatprep.mubr.msk.f32.mxu0 %vm242_vm2, %v7187_v49  ;;  %v12940_v49 = vld [vmem:[#allocation40_spill] sm:$0xff] }
 0x665   : > { %9885 = vmatmul.mubr.msk.f32.gmra.mrb[18].mxu0 %vm242_vm2, %v7188_v54 }
 0x6e4   : > { %v9844_v50 = vpop.f32.mrb[4].mxu0 }
 0x6e5   : > { %7561 = vst.msk [vmem:[#allocation3 + $0x8] sm:$0xff] %vm242_vm2, %v9844_v50  ;;  %v7363_v63 = vpop.f32.mrb[5].mxu0 }
 0x6e6   : > { %7560 = vst.msk [vmem:[#allocation3] sm:$0xff] %vm242_vm2, %v7363_v63 }
 0x6ed   : > { %v7576_v5 = vld [vmem:[#allocation3] ss:$2 sm:$0xff]  ;;  %v7592_v43 = vld [vmem:[#allocation3 + $0x1] ss:$2 sm:$0xff] }
 0x6ee   : > { %v7607_v25 = vadd.f32 %v7592_v43, %v7576_v5 }
 0x6f0   : > { %v7615_v26 = vmul.f32 0.25, %v7607_v25  ;;  %v9850_v29 = vpop.f32.mrb[6].mxu0 }
 0x6f1   : > { %7563 = vst.msk [vmem:[#allocation3 + $0x28] sm:$0xff] %vm242_vm2, %v9850_v29  ;;  %v7383_v32 = vpop.f32.mrb[7].mxu0 }
 0x6f2   : > { %v7623_v33 = vadd.f32 %v7615_v26, %v12933_v34  ;;  %7562 = vst.msk [vmem:[#allocation3 + $0x20] sm:$0xff] %vm242_vm2, %v7383_v32 }
 0x6f4   : > { %7631 = vst.msk [vmem:[%s12558_s12] sm:$0xff] %vm242_vm2, %v7623_v33 }
 0x6f9   : > { %v7578_v7 = vld [vmem:[#allocation3 + $0x20] ss:$2 sm:$0xff]  ;;  %v7594_v8 = vld [vmem:[#allocation3 + $0x21] ss:$2 sm:$0xff] }
 0x6fa   : > { %v7608_v53 = vadd.f32 %v7594_v8, %v7578_v7 }
 0x6fc   : > { %v7616_v55 = vmul.f32 0.25, %v7608_v53  ;;  %v9856_v18 = vpop.f32.mrb[8].mxu0 }
 0x6fd   : > { %7565 = vst.msk [vmem:[#allocation3 + $0x48] sm:$0xff] %vm242_vm2, %v9856_v18  ;;  %v7403_v2 = vpop.f32.mrb[9].mxu0 }
 0x6fe   : > { %v7624_v17 = vadd.f32 %v12934_v57, %v7616_v55  ;;  %7564 = vst.msk [vmem:[#allocation3 + $0x40] sm:$0xff] %vm242_vm2, %v7403_v2 }
 0x700   : > { %7632 = vst.msk [vmem:[%s12558_s12 + $0x8] sm:$0xff] %vm242_vm2, %v7624_v17 }
 0x705   : > { %v7580_v58 = vld [vmem:[#allocation3 + $0x40] ss:$2 sm:$0xff]  ;;  %v7596_v27 = vld [vmem:[#allocation3 + $0x41] ss:$2 sm:$0xff] }
 0x706   : > { %v7609_v30 = vadd.f32 %v7596_v27, %v7580_v58 }
 0x708   : > { %v7617_v4 = vmul.f32 0.25, %v7609_v30  ;;  %v9862_v36 = vpop.f32.mrb[10].mxu0 }
 0x709   : > { %7567 = vst.msk [vmem:[#allocation3 + $0x68] sm:$0xff] %vm242_vm2, %v9862_v36  ;;  %v7423_v9 = vpop.f32.mrb[11].mxu0 }
 0x70a   : > { %v7625_v22 = vadd.f32 %v7617_v4, %v12935_v19  ;;  %7566 = vst.msk [vmem:[#allocation3 + $0x60] sm:$0xff] %vm242_vm2, %v7423_v9 }
 0x70c   : > { %7633 = vst.msk [vmem:[%s12558_s12 + $0x10] sm:$0xff] %vm242_vm2, %v7625_v22 }
 0x711   : > { %v7582_v52 = vld [vmem:[#allocation3 + $0x60] ss:$2 sm:$0xff]  ;;  %v7598_v10 = vld [vmem:[#allocation3 + $0x61] ss:$2 sm:$0xff] }
 0x712   : > { %v7610_v60 = vadd.f32 %v7598_v10, %v7582_v52 }
 0x714   : > { %v7618_v16 = vmul.f32 0.25, %v7610_v60  ;;  %v9868_v61 = vpop.f32.mrb[12].mxu0 }
 0x715   : > { %7569 = vst.msk [vmem:[#allocation3 + $0x88] sm:$0xff] %vm242_vm2, %v9868_v61  ;;  %v7443_v28 = vpop.f32.mrb[13].mxu0 }
 0x716   : > { %v7626_v35 = vadd.f32 %v12936_v45, %v7618_v16  ;;  %7568 = vst.msk [vmem:[#allocation3 + $0x80] sm:$0xff] %vm242_vm2, %v7443_v28 }
 0x718   : > { %7634 = vst.msk [vmem:[%s12558_s12 + $0x18] sm:$0xff] %vm242_vm2, %v7626_v35 }
 0x71d   : > { %v7584_v39 = vld [vmem:[#allocation3 + $0x80] ss:$2 sm:$0xff]  ;;  %v7600_v20 = vld [vmem:[#allocation3 + $0x81] ss:$2 sm:$0xff] }
 0x71e   : > { %v7611_v40 = vadd.f32 %v7600_v20, %v7584_v39 }
 0x720   : > { %v7619_v3 = vmul.f32 0.25, %v7611_v40  ;;  %v9874_v0 = vpop.f32.mrb[14].mxu0 }
 0x721   : > { %7571 = vst.msk [vmem:[#allocation3 + $0xa8] sm:$0xff] %vm242_vm2, %v9874_v0  ;;  %v7463_v56 = vpop.f32.mrb[15].mxu0 }
 0x722   : > { %v7627_v62 = vadd.f32 %v7619_v3, %v12937_v59  ;;  %7570 = vst.msk [vmem:[#allocation3 + $0xa0] sm:$0xff] %vm242_vm2, %v7463_v56 }
 0x724   : > { %7635 = vst.msk [vmem:[%s12558_s12 + $0x20] sm:$0xff] %vm242_vm2, %v7627_v62 }
 0x729   : > { %v7586_v37 = vld [vmem:[#allocation3 + $0xa0] ss:$2 sm:$0xff]  ;;  %v7602_v6 = vld [vmem:[#allocation3 + $0xa1] ss:$2 sm:$0xff] }
 0x72a   : > { %v7612_v48 = vadd.f32 %v7602_v6, %v7586_v37 }
 0x72c   : > { %v7620_v51 = vmul.f32 0.25, %v7612_v48  ;;  %v9880_v41 = vpop.f32.mrb[16].mxu0 }
 0x72d   : > { %7573 = vst.msk [vmem:[#allocation3 + $0xc8] sm:$0xff] %vm242_vm2, %v9880_v41  ;;  %v7483_v38 = vpop.f32.mrb[17].mxu0 }
 0x72e   : > { %v7628_v11 = vadd.f32 %v12938_v42, %v7620_v51  ;;  %7572 = vst.msk [vmem:[#allocation3 + $0xc0] sm:$0xff] %vm242_vm2, %v7483_v38 }
 0x730   : > { %7636 = vst.msk [vmem:[%s12558_s12 + $0x28] sm:$0xff] %vm242_vm2, %v7628_v11 }
 0x735   : > { %v7588_v12 = vld [vmem:[#allocation3 + $0xc0] ss:$2 sm:$0xff]  ;;  %v7604_v13 = vld [vmem:[#allocation3 + $0xc1] ss:$2 sm:$0xff] }
 0x736   : > { %v7613_v14 = vadd.f32 %v7604_v13, %v7588_v12 }
 0x738   : > { %v7621_v15 = vmul.f32 0.25, %v7613_v14  ;;  %v9886_v31 = vpop.f32.mrb[18].mxu0 }
 0x739   : > { %7575 = vst.msk [vmem:[#allocation3 + $0xe8] sm:$0xff] %vm242_vm2, %v9886_v31  ;;  %v7503_v21 = vpop.f32.mrb[19].mxu0 }
 0x73a   : > { %v7629_v24 = vadd.f32 %v7621_v15, %v12939_v23  ;;  %7574 = vst.msk [vmem:[#allocation3 + $0xe0] sm:$0xff] %vm242_vm2, %v7503_v21 }
 0x73c   : > { %7637 = vst.msk [vmem:[%s12558_s12 + $0x30] sm:$0xff] %vm242_vm2, %v7629_v24 }
 0x741   : > { %v7590_v1 = vld [vmem:[#allocation3 + $0xe0] ss:$2 sm:$0xff]  ;;  %v7606_v44 = vld [vmem:[#allocation3 + $0xe1] ss:$2 sm:$0xff] }
 0x742   : > { %v7614_v46 = vadd.f32 %v7606_v44, %v7590_v1 }
 0x744   : > { %v7622_v47 = vmul.f32 0.25, %v7614_v46 }
 0x746   : > { %v7630_v54 = vadd.f32 %v12940_v49, %v7622_v47 }
 0x748   : > { %7638 = vst.msk [vmem:[%s12558_s12 + $0x38] sm:$0xff] %vm242_vm2, %v7630_v54 }
 0x749   : > { %10472 = shalt.err (!%p10469_p3)
}
 0x74a   : > { %s10473_s5 = scalar_lea.hbm %s12597_s23, 1024  ;;  %s10477_s8 = scalar_lea.hbm %s12651_s4, 2048 }
 0x74b   : > { %p10474_p4 = scmp.ne.s32.totalorder %s12597_s23, %s10473_s5  ;;  %p10478_p9 = scmp.lt.u32.totalorder %s12597_s23, %s12651_s4 }
 0x74c   : > { %p10479_p10 = scmp.lt.u32.totalorder %s10477_s8, %s10473_s5  ;;  %p10481_p12 = scmp.lt.u32.totalorder %s10473_s5, %s12597_s23 }
 0x74d   : > { %p10475_p7 = pnand %p10474_p4, %p10590_p5 }
 0x74e   : > { %p10480_p11 = por %p10479_p10, %p10478_p9 }
 0x74f   : > { %p10476_p8 = pneg %p10475_p7 }
 0x750   : > { %p10482_p13 = por %p10481_p12, %p10480_p11 }
 0x752   : > { %p10483_p0 = pnand %p10482_p13, %p10476_p8 }
 0x754   : > { %10486 = shalt.err (!%p10483_p0)
}
 0x755   : > { %s10525_s9 = smov 128   ;;  %s10526_s12 = smov 8  }
 0x756   : > { %10417 = dma.vmem_to_hbm [thread:$0]  (%p10590_p5), %s12599_s14, 1024, %s12597_s23, %s12606_s27, %s10525_s9, %s10525_s9, %s10526_s12  }
 0x757 PF: > { %p10423_p1 = scmp.ge.s32.totalorder %s10521_s18, 2  ;;  %s7668_s13 = sand.u32 1, %s10509_s15  }
 0x758   : > { %s7669_s20 = scalar_lea.sflag [#allocation5], %s7668_s13 }
 0x759   : > { %p10420_p2 = pnand %p10423_p1, %p10594_p6 }
 0x75b   : > { %10504 = dma.done.wait (!%p10420_p2), %s7669_s20, 1024  }
 0x75c   : > { %10506 = vsyncadd (!%p10420_p2), %s7669_s20, 4294966272  ;;  %p14_p3 = scmp.ge.s32.totalorder %s10577_s21, 4   ;;  %s12941_s15 = smov %s10513_s16 }
 0x75d   : > { %s12942_s16 = smov %s10517_s17  ;;  %s12943_s17 = smov %s10588_s24 }
 0x75e   : > { %s12944_s18 = smov %s10577_s21  ;;  %16 = sbr.rel (!%p14_p3) target bundleno = 3 (0x3), region = 139 }
 0x765   :  { %7674 = vsyncpa [#allocation5], 1 }
 0x766   :  { %7676 = vsyncpa [#allocation5 + $0x1], 1 }

</bundles_post_ra>
